<compile_context>
chip_gen: v5e
topology: v5e:2x2
jax: 0.10.0
libtpu: 0.0.40
codegen_flags: <defaults>
</compile_context>

<pallas_src>
import functools

import jax
import jax.numpy as jnp
from jax import lax
from jax.experimental import pallas as pl
from jax.experimental.pallas import tpu as pltpu


def _round_up(x, m):
    return (x + m - 1) // m * m


# ---------------------------------------------------------------------------
# Fused 2-layer LSTM recurrence over one (time_block, batch_block) tile.
#
#   emb_ref : (T, Bb, E)   time-major embedded tokens for this block
#   wih1/whh1/wih2/whh2 : pre-transposed weights (E|H, 4H), resident in VMEM
#   b1/b2   : (1, 4H)      bih + bhh per layer
#   h_out   : (T, Bb, H)   layer-2 hidden state for every step of the block
#   scratch : gates block, layer-1 hidden block, carried h1/c1/h2/c2 states
#
# grid = (batch_blocks, time_blocks); time innermost, sequential.
# ---------------------------------------------------------------------------
def _fused_lstm_kernel(emb_ref, wih1_ref, whh1_ref, b1_ref,
                       wih2_ref, whh2_ref, b2_ref,
                       h_out_ref,
                       gates_sc, h1blk_sc, h1_sc, c1_sc, h2_sc, c2_sc):
    @pl.when(pl.program_id(1) == 0)           # new batch block -> reset state
    def _init():
        h1_sc[...] = jnp.zeros_like(h1_sc)
        c1_sc[...] = jnp.zeros_like(c1_sc)
        h2_sc[...] = jnp.zeros_like(h2_sc)
        c2_sc[...] = jnp.zeros_like(c2_sc)

    T, Bb, E = emb_ref.shape
    H = whh1_ref.shape[0]
    G = whh1_ref.shape[1]                      # 4H

    def run_layer(whh_ref, h_sc, c_sc, hout_ref):
        """Sequential recurrence over T steps; gates_sc holds x@Wih^T + b."""
        whh = whh_ref[...]                     # load once per block

        def step(t, carry):
            h, c = carry
            # Only the recurrent matmul is on the dependent chain.
            gates = gates_sc[t] + jnp.dot(h, whh,
                                          preferred_element_type=jnp.float32)
            # PyTorch gate order along the 4H axis: [i, f, g, o]
            i = jax.nn.sigmoid(gates[:, 0 * H:1 * H])
            f = jax.nn.sigmoid(gates[:, 1 * H:2 * H])
            g = jnp.tanh(gates[:, 2 * H:3 * H])
            o = jax.nn.sigmoid(gates[:, 3 * H:4 * H])
            c_new = f * c + i * g
            h_new = o * jnp.tanh(c_new)
            hout_ref[t] = h_new.astype(hout_ref.dtype)
            return h_new, c_new

        h_fin, c_fin = lax.fori_loop(0, T, step, (h_sc[...], c_sc[...]),
                                     unroll=True)
        h_sc[...] = h_fin
        c_sc[...] = c_fin

    # ---- layer 1: block input projection (one MXU matmul), then recurrence --
    x = emb_ref[...].reshape(T * Bb, E)
    gates_sc[...] = (jnp.dot(x, wih1_ref[...],
                             preferred_element_type=jnp.float32)
                     + b1_ref[...]).reshape(T, Bb, G)
    run_layer(whh1_ref, h1_sc, c1_sc, h1blk_sc)

    # ---- layer 2 (inter-layer dropout is identity in eval mode) -------------
    h1 = h1blk_sc[...].reshape(T * Bb, H)
    gates_sc[...] = (jnp.dot(h1, wih2_ref[...],
                             preferred_element_type=jnp.float32)
                     + b2_ref[...]).reshape(T, Bb, G)
    run_layer(whh2_ref, h2_sc, c2_sc, h_out_ref)


# ---------------------------------------------------------------------------
# Full forward pass: tokens int32 [B, S] -> logits float32 [B, S, V].
# ---------------------------------------------------------------------------
def trajectory_lstm_forward(tokens, params, *, time_block=8, batch_block=None):
    emb_table = params["embedding"]                 # (V, E)
    B, S = tokens.shape
    V, E = emb_table.shape
    H = params["whh1"].shape[1]                     # (4H, H) -> hidden_dim
    G = 4 * H

    # ---- padding / blocking (vreg alignment: 8 sublanes) -------------------
    Bp = _round_up(max(B, 8), 8)
    if batch_block is None:
        batch_block = Bp      # single block; use multiple-of-8 sub-blocks for
                              # large B so the "parallel" axis feeds v7x core 2
    assert Bp % batch_block == 0
    T = min(time_block, S)
    Sp = _round_up(S, T)

    tokens_p = jnp.zeros((Bp, Sp), tokens.dtype).at[:B, :S].set(tokens)

    # ---- embedding lookup (gather, plain XLA), directly time-major ---------
    emb_tm = jnp.take(emb_table, tokens_p.T, axis=0)        # (Sp, Bp, E)

    # ---- weights, pre-transposed for in-kernel (rows, 4H) matmuls ----------
    wih1_t = params["wih1"].T                                # (E, 4H)
    whh1_t = params["whh1"].T                                # (H, 4H)
    b1 = (params["bih1"] + params["bhh1"]).reshape(1, G)
    wih2_t = params["wih2"].T                                # (H, 4H)
    whh2_t = params["whh2"].T                                # (H, 4H)
    b2 = (params["bih2"] + params["bhh2"]).reshape(1, G)

    grid = (Bp // batch_block, Sp // T)
    const = lambda b, t: (0, 0)

    h2 = pl.pallas_call(
        _fused_lstm_kernel,
        out_shape=jax.ShapeDtypeStruct((Sp, Bp, H), jnp.float32),
        grid=grid,
        in_specs=[
            pl.BlockSpec((T, batch_block, E), lambda b, t: (t, b, 0)),
            pl.BlockSpec((E, G), const),        # wih1^T (resident)
            pl.BlockSpec((H, G), const),        # whh1^T
            pl.BlockSpec((1, G), const),        # b1
            pl.BlockSpec((H, G), const),        # wih2^T
            pl.BlockSpec((H, G), const),        # whh2^T
            pl.BlockSpec((1, G), const),        # b2
        ],
        out_specs=pl.BlockSpec((T, batch_block, H), lambda b, t: (t, b, 0)),
        scratch_shapes=[
            pltpu.VMEM((T, batch_block, G), jnp.float32),   # projected gates
            pltpu.VMEM((T, batch_block, H), jnp.float32),   # layer-1 hiddens
            pltpu.VMEM((batch_block, H), jnp.float32),      # h1 carry
            pltpu.VMEM((batch_block, H), jnp.float32),      # c1 carry
            pltpu.VMEM((batch_block, H), jnp.float32),      # h2 carry
            pltpu.VMEM((batch_block, H), jnp.float32),      # c2 carry
        ],
        compiler_params=pltpu.CompilerParams(
            dimension_semantics=("parallel", "arbitrary")),
    )(emb_tm, wih1_t, whh1_t, b1, wih2_t, whh2_t, b2)

    # TODO(synk): training-mode dropout (rate=0.2) not implemented; it is the
    # identity in eval mode, which is what forward() computes here.

    # ---- fc, with the (S,B)->(B,S) transpose fused into the matmul output --
    logits = jnp.einsum("sbh,vh->bsv", h2, params["wfc"],
                        precision=lax.Precision.HIGHEST) + params["bfc"]
    return logits[:B, :S]                                    # (B, S, V)


# ---------------------------------------------------------------------------
# Pure-JAX reference (lax.scan) for correctness checking.
# ---------------------------------------------------------------------------
def trajectory_lstm_reference(tokens, params):
    emb = jnp.take(params["embedding"], tokens, axis=0)      # (B, S, E)
    H = params["whh1"].shape[1]
    hi = lax.Precision.HIGHEST

    def make_cell(wih, whh, bih, bhh):
        def cell(carry, x_t):
            h, c = carry
            gates = (jnp.dot(x_t, wih.T, precision=hi)
                     + jnp.dot(h, whh.T, precision=hi) + bih + bhh)
            i = jax.nn.sigmoid(gates[:, 0 * H:1 * H])
            f = jax.nn.sigmoid(gates[:, 1 * H:2 * H])
            g = jnp.tanh(gates[:, 2 * H:3 * H])
            o = jax.nn.sigmoid(gates[:, 3 * H:4 * H])
            c_new = f * c + i * g
            h_new = o * jnp.tanh(c_new)
            return (h_new, c_new), h_new
        return cell

    B = tokens.shape[0]
    x_tm = jnp.transpose(emb, (1, 0, 2))
    init = (jnp.zeros((B, H), jnp.float32), jnp.zeros((B, H), jnp.float32))
    _, h1_seq = lax.scan(make_cell(params["wih1"], params["whh1"],
                                   params["bih1"], params["bhh1"]), init, x_tm)
    _, h2_seq = lax.scan(make_cell(params["wih2"], params["whh2"],
                                   params["bih2"], params["bhh2"]), init, h1_seq)
    logits = jnp.dot(h2_seq, params["wfc"].T, precision=hi) + params["bfc"]
    return jnp.transpose(logits, (1, 0, 2))


# ---------------------------------------------------------------------------
def init_params(key, vocab_size, embedding_dim, hidden_dim):
    ks = jax.random.split(key, 12)
    s = 0.1
    H4 = 4 * hidden_dim
    return {
        "embedding": s * jax.random.normal(ks[0], (vocab_size, embedding_dim), jnp.float32),
        "wih1": s * jax.random.normal(ks[1], (H4, embedding_dim), jnp.float32),
        "whh1": s * jax.random.normal(ks[2], (H4, hidden_dim), jnp.float32),
        "bih1": s * jax.random.normal(ks[3], (H4,), jnp.float32),
        "bhh1": s * jax.random.normal(ks[4], (H4,), jnp.float32),
        "wih2": s * jax.random.normal(ks[5], (H4, hidden_dim), jnp.float32),
        "whh2": s * jax.random.normal(ks[6], (H4, hidden_dim), jnp.float32),
        "bih2": s * jax.random.normal(ks[7], (H4,), jnp.float32),
        "bhh2": s * jax.random.normal(ks[8], (H4,), jnp.float32),
        "wfc": s * jax.random.normal(ks[9], (vocab_size, hidden_dim), jnp.float32),
        "bfc": s * jax.random.normal(ks[10], (vocab_size,), jnp.float32),
    }


if __name__ == "__main__":
    # Module defaults: embedding_dim=64, hidden_dim=128, n_layers=2.
    # vocab=128 keeps the fc output lane-dense; small batch/seq for the demo.
    VOCAB, EMB, HID = 128, 64, 128
    B, S = 2, 16

    key = jax.random.PRNGKey(0)
    pkey, tkey = jax.random.split(key)
    params = init_params(pkey, VOCAB, EMB, HID)
    tokens = jax.random.randint(tkey, (B, S), 0, VOCAB, dtype=jnp.int32)

    fwd = jax.jit(functools.partial(trajectory_lstm_forward, params=params))
    logits = jax.block_until_ready(fwd(tokens))

    ref = trajectory_lstm_reference(tokens, params)
    assert logits.shape == (B, S, VOCAB), logits.shape
    max_err = float(jnp.max(jnp.abs(logits - ref)))
    assert jnp.allclose(logits, ref, atol=1e-3, rtol=1e-3), max_err

    print("KERNEL_OK")
</pallas_src>

<mosaic_0001>
module attributes {stable_mosaic.version = 11 : i64} {
  func.func @_fused_lstm_kernel(%arg0: i32, %arg1: i32, %arg2: memref<8x8x64xf32, #tpu.memory_space<vmem>>, %arg3: memref<64x512xf32, #tpu.memory_space<vmem>>, %arg4: memref<128x512xf32, #tpu.memory_space<vmem>>, %arg5: memref<1x512xf32, #tpu.memory_space<vmem>>, %arg6: memref<128x512xf32, #tpu.memory_space<vmem>>, %arg7: memref<128x512xf32, #tpu.memory_space<vmem>>, %arg8: memref<1x512xf32, #tpu.memory_space<vmem>>, %arg9: memref<8x8x128xf32, #tpu.memory_space<vmem>>, %arg10: memref<8x8x512xf32, #tpu.memory_space<vmem>>, %arg11: memref<8x8x128xf32, #tpu.memory_space<vmem>>, %arg12: memref<8x128xf32, #tpu.memory_space<vmem>>, %arg13: memref<8x128xf32, #tpu.memory_space<vmem>>, %arg14: memref<8x128xf32, #tpu.memory_space<vmem>>, %arg15: memref<8x128xf32, #tpu.memory_space<vmem>>) attributes {dimension_semantics = [#tpu.dimension_semantics<parallel>, #tpu.dimension_semantics<arbitrary>], iteration_bounds = array<i64: 1, 2>, scalar_prefetch = 0 : i64, scratch_operands = 6 : i64, tpu.core_type = #tpu.core_type<tc>, window_params = [{transform_indices = @transform_0, window_bounds = array<i64: 8, 8, 64>}, {pipeline_mode = #tpu.pipeline_mode<synchronous>, transform_indices = @transform_1, window_bounds = array<i64: 64, 512>}, {pipeline_mode = #tpu.pipeline_mode<synchronous>, transform_indices = @transform_2, window_bounds = array<i64: 128, 512>}, {pipeline_mode = #tpu.pipeline_mode<synchronous>, transform_indices = @transform_3, window_bounds = array<i64: 1, 512>}, {pipeline_mode = #tpu.pipeline_mode<synchronous>, transform_indices = @transform_4, window_bounds = array<i64: 128, 512>}, {pipeline_mode = #tpu.pipeline_mode<synchronous>, transform_indices = @transform_5, window_bounds = array<i64: 128, 512>}, {pipeline_mode = #tpu.pipeline_mode<synchronous>, transform_indices = @transform_6, window_bounds = array<i64: 1, 512>}, {transform_indices = @transform_7, window_bounds = array<i64: 8, 8, 128>}]} {
    %c0_i32 = arith.constant 0 : i32
    %0 = arith.cmpi eq, %arg1, %c0_i32 : i32
    %1 = arith.extui %0 : i1 to i32
    %c0_i32_0 = arith.constant 0 : i32
    %2 = arith.cmpi ne, %1, %c0_i32_0 : i32
    scf.if %2 {
      %cst_179 = arith.constant 0.000000e+00 : f32
      %575 = vector.broadcast %cst_179 : f32 to vector<8x128xf32>
      %c0_180 = arith.constant 0 : index
      %c0_181 = arith.constant 0 : index
      %576 = vector.load %arg12[%c0_180, %c0_181] : memref<8x128xf32, #tpu.memory_space<vmem>>, vector<8x128xf32>
      tpu.vector_store %arg12[%c0_180, %c0_181], %575 {strides = array<i32>} : memref<8x128xf32, #tpu.memory_space<vmem>>, vector<8x128xf32>,
      %cst_182 = arith.constant 0.000000e+00 : f32
      %577 = vector.broadcast %cst_182 : f32 to vector<8x128xf32>
      %c0_183 = arith.constant 0 : index
      %c0_184 = arith.constant 0 : index
      %578 = vector.load %arg13[%c0_183, %c0_184] : memref<8x128xf32, #tpu.memory_space<vmem>>, vector<8x128xf32>
      tpu.vector_store %arg13[%c0_183, %c0_184], %577 {strides = array<i32>} : memref<8x128xf32, #tpu.memory_space<vmem>>, vector<8x128xf32>,
      %cst_185 = arith.constant 0.000000e+00 : f32
      %579 = vector.broadcast %cst_185 : f32 to vector<8x128xf32>
      %c0_186 = arith.constant 0 : index
      %c0_187 = arith.constant 0 : index
      %580 = vector.load %arg14[%c0_186, %c0_187] : memref<8x128xf32, #tpu.memory_space<vmem>>, vector<8x128xf32>
      tpu.vector_store %arg14[%c0_186, %c0_187], %579 {strides = array<i32>} : memref<8x128xf32, #tpu.memory_space<vmem>>, vector<8x128xf32>,
      %cst_188 = arith.constant 0.000000e+00 : f32
      %581 = vector.broadcast %cst_188 : f32 to vector<8x128xf32>
      %c0_189 = arith.constant 0 : index
      %c0_190 = arith.constant 0 : index
      %582 = vector.load %arg15[%c0_189, %c0_190] : memref<8x128xf32, #tpu.memory_space<vmem>>, vector<8x128xf32>
      tpu.vector_store %arg15[%c0_189, %c0_190], %581 {strides = array<i32>} : memref<8x128xf32, #tpu.memory_space<vmem>>, vector<8x128xf32>,
    } else {
    }
    %c0 = arith.constant 0 : index
    %c0_1 = arith.constant 0 : index
    %c0_2 = arith.constant 0 : index
    %3 = vector.load %arg2[%c0, %c0_1, %c0_2] : memref<8x8x64xf32, #tpu.memory_space<vmem>>, vector<8x8x64xf32>
    %4 = vector.shape_cast %3 : vector<8x8x64xf32> to vector<64x64xf32>
    %c0_3 = arith.constant 0 : index
    %c0_4 = arith.constant 0 : index
    %5 = vector.load %arg3[%c0_3, %c0_4] : memref<64x512xf32, #tpu.memory_space<vmem>>, vector<64x512xf32>
    %cst = arith.constant dense<0.000000e+00> : vector<64x512xf32>
    %6 = tpu.matmul %4, %5, %cst {dimension_numbers = #tpu.dot_dimension_numbers<[1], [0], [0], [1], [0, 0, 1, 1], [], []>} : vector<64x64xf32>, vector<64x512xf32>, vector<64x512xf32> -> vector<64x512xf32>
    %c0_5 = arith.constant 0 : index
    %c0_6 = arith.constant 0 : index
    %7 = vector.load %arg5[%c0_5, %c0_6] : memref<1x512xf32, #tpu.memory_space<vmem>>, vector<1x512xf32>
    %8 = vector.broadcast %7 : vector<1x512xf32> to vector<64x512xf32>
    %9 = arith.addf %6, %8 : vector<64x512xf32>
    %10 = vector.shape_cast %9 : vector<64x512xf32> to vector<8x8x512xf32>
    %c0_7 = arith.constant 0 : index
    %c0_8 = arith.constant 0 : index
    %c0_9 = arith.constant 0 : index
    %11 = vector.load %arg10[%c0_7, %c0_8, %c0_9] : memref<8x8x512xf32, #tpu.memory_space<vmem>>, vector<8x8x512xf32>
    tpu.vector_store %arg10[%c0_7, %c0_8, %c0_9], %10 {strides = array<i32>} : memref<8x8x512xf32, #tpu.memory_space<vmem>>, vector<8x8x512xf32>,
    %c0_10 = arith.constant 0 : index
    %c0_11 = arith.constant 0 : index
    %12 = vector.load %arg4[%c0_10, %c0_11] : memref<128x512xf32, #tpu.memory_space<vmem>>, vector<128x512xf32>
    %c0_12 = arith.constant 0 : index
    %c0_13 = arith.constant 0 : index
    %13 = vector.load %arg12[%c0_12, %c0_13] : memref<8x128xf32, #tpu.memory_space<vmem>>, vector<8x128xf32>
    %c0_14 = arith.constant 0 : index
    %c0_15 = arith.constant 0 : index
    %14 = vector.load %arg13[%c0_14, %c0_15] : memref<8x128xf32, #tpu.memory_space<vmem>>, vector<8x128xf32>
    %c0_i32_16 = arith.constant 0 : i32
    %15 = arith.index_cast %c0_i32_16 : i32 to index
    %c0_17 = arith.constant 0 : index
    %c0_18 = arith.constant 0 : index
    %16 = vector.load %arg10[%15, %c0_17, %c0_18] : memref<8x8x512xf32, #tpu.memory_space<vmem>>, vector<1x8x512xf32>
    %17 = vector.shape_cast %16 : vector<1x8x512xf32> to vector<8x512xf32>
    %cst_19 = arith.constant dense<0.000000e+00> : vector<8x512xf32>
    %18 = tpu.matmul %13, %12, %cst_19 {dimension_numbers = #tpu.dot_dimension_numbers<[1], [0], [0], [1], [0, 0, 1, 1], [], []>} : vector<8x128xf32>, vector<128x512xf32>, vector<8x512xf32> -> vector<8x512xf32>
    %19 = arith.addf %17, %18 : vector<8x512xf32>
    %20 = vector.extract_strided_slice %19 {offsets = [0, 0], sizes = [8, 128], strides = [1, 1]} : vector<8x512xf32> to vector<8x128xf32>
    %21 = arith.negf %20 : vector<8x128xf32>
    %22 = math.exp %21 : vector<8x128xf32>
    %cst_20 = arith.constant 1.000000e+00 : f32
    %23 = vector.broadcast %cst_20 : f32 to vector<8x128xf32>
    %24 = arith.addf %23, %22 : vector<8x128xf32>
    %25 = arith.divf %23, %24 : vector<8x128xf32>
    %26 = vector.extract_strided_slice %19 {offsets = [0, 128], sizes = [8, 128], strides = [1, 1]} : vector<8x512xf32> to vector<8x128xf32>
    %27 = arith.negf %26 : vector<8x128xf32>
    %28 = math.exp %27 : vector<8x128xf32>
    %cst_21 = arith.constant 1.000000e+00 : f32
    %29 = vector.broadcast %cst_21 : f32 to vector<8x128xf32>
    %30 = arith.addf %29, %28 : vector<8x128xf32>
    %31 = arith.divf %29, %30 : vector<8x128xf32>
    %32 = vector.extract_strided_slice %19 {offsets = [0, 256], sizes = [8, 128], strides = [1, 1]} : vector<8x512xf32> to vector<8x128xf32>
    %33 = math.tanh %32 : vector<8x128xf32>
    %34 = vector.extract_strided_slice %19 {offsets = [0, 384], sizes = [8, 128], strides = [1, 1]} : vector<8x512xf32> to vector<8x128xf32>
    %35 = arith.negf %34 : vector<8x128xf32>
    %36 = math.exp %35 : vector<8x128xf32>
    %cst_22 = arith.constant 1.000000e+00 : f32
    %37 = vector.broadcast %cst_22 : f32 to vector<8x128xf32>
    %38 = arith.addf %37, %36 : vector<8x128xf32>
    %39 = arith.divf %37, %38 : vector<8x128xf32>
    %40 = arith.mulf %31, %14 : vector<8x128xf32>
    %41 = arith.mulf %25, %33 : vector<8x128xf32>
    %42 = arith.addf %40, %41 : vector<8x128xf32>
    %43 = math.tanh %42 : vector<8x128xf32>
    %44 = arith.mulf %39, %43 : vector<8x128xf32>
    %45 = arith.index_cast %c0_i32_16 : i32 to index
    %c0_23 = arith.constant 0 : index
    %c0_24 = arith.constant 0 : index
    %46 = vector.load %arg11[%45, %c0_23, %c0_24] : memref<8x8x128xf32, #tpu.memory_space<vmem>>, vector<1x8x128xf32>
    %47 = vector.shape_cast %46 : vector<1x8x128xf32> to vector<8x128xf32>
    %48 = vector.shape_cast %44 : vector<8x128xf32> to vector<1x8x128xf32>
    tpu.vector_store %arg11[%45, %c0_23, %c0_24], %48 {strides = array<i32>} : memref<8x8x128xf32, #tpu.memory_space<vmem>>, vector<1x8x128xf32>,
    %c1_i32 = arith.constant 1 : i32
    %49 = arith.index_cast %c1_i32 : i32 to index
    %c0_25 = arith.constant 0 : index
    %c0_26 = arith.constant 0 : index
    %50 = vector.load %arg10[%49, %c0_25, %c0_26] : memref<8x8x512xf32, #tpu.memory_space<vmem>>, vector<1x8x512xf32>
    %51 = vector.shape_cast %50 : vector<1x8x512xf32> to vector<8x512xf32>
    %cst_27 = arith.constant dense<0.000000e+00> : vector<8x512xf32>
    %52 = tpu.matmul %44, %12, %cst_27 {dimension_numbers = #tpu.dot_dimension_numbers<[1], [0], [0], [1], [0, 0, 1, 1], [], []>} : vector<8x128xf32>, vector<128x512xf32>, vector<8x512xf32> -> vector<8x512xf32>
    %53 = arith.addf %51, %52 : vector<8x512xf32>
    %54 = vector.extract_strided_slice %53 {offsets = [0, 0], sizes = [8, 128], strides = [1, 1]} : vector<8x512xf32> to vector<8x128xf32>
    %55 = arith.negf %54 : vector<8x128xf32>
    %56 = math.exp %55 : vector<8x128xf32>
    %cst_28 = arith.constant 1.000000e+00 : f32
    %57 = vector.broadcast %cst_28 : f32 to vector<8x128xf32>
    %58 = arith.addf %57, %56 : vector<8x128xf32>
    %59 = arith.divf %57, %58 : vector<8x128xf32>
    %60 = vector.extract_strided_slice %53 {offsets = [0, 128], sizes = [8, 128], strides = [1, 1]} : vector<8x512xf32> to vector<8x128xf32>
    %61 = arith.negf %60 : vector<8x128xf32>
    %62 = math.exp %61 : vector<8x128xf32>
    %cst_29 = arith.constant 1.000000e+00 : f32
    %63 = vector.broadcast %cst_29 : f32 to vector<8x128xf32>
    %64 = arith.addf %63, %62 : vector<8x128xf32>
    %65 = arith.divf %63, %64 : vector<8x128xf32>
    %66 = vector.extract_strided_slice %53 {offsets = [0, 256], sizes = [8, 128], strides = [1, 1]} : vector<8x512xf32> to vector<8x128xf32>
    %67 = math.tanh %66 : vector<8x128xf32>
    %68 = vector.extract_strided_slice %53 {offsets = [0, 384], sizes = [8, 128], strides = [1, 1]} : vector<8x512xf32> to vector<8x128xf32>
    %69 = arith.negf %68 : vector<8x128xf32>
    %70 = math.exp %69 : vector<8x128xf32>
    %cst_30 = arith.constant 1.000000e+00 : f32
    %71 = vector.broadcast %cst_30 : f32 to vector<8x128xf32>
    %72 = arith.addf %71, %70 : vector<8x128xf32>
    %73 = arith.divf %71, %72 : vector<8x128xf32>
    %74 = arith.mulf %65, %42 : vector<8x128xf32>
    %75 = arith.mulf %59, %67 : vector<8x128xf32>
    %76 = arith.addf %74, %75 : vector<8x128xf32>
    %77 = math.tanh %76 : vector<8x128xf32>
    %78 = arith.mulf %73, %77 : vector<8x128xf32>
    %79 = arith.index_cast %c1_i32 : i32 to index
    %c0_31 = arith.constant 0 : index
    %c0_32 = arith.constant 0 : index
    %80 = vector.load %arg11[%79, %c0_31, %c0_32] : memref<8x8x128xf32, #tpu.memory_space<vmem>>, vector<1x8x128xf32>
    %81 = vector.shape_cast %80 : vector<1x8x128xf32> to vector<8x128xf32>
    %82 = vector.shape_cast %78 : vector<8x128xf32> to vector<1x8x128xf32>
    tpu.vector_store %arg11[%79, %c0_31, %c0_32], %82 {strides = array<i32>} : memref<8x8x128xf32, #tpu.memory_space<vmem>>, vector<1x8x128xf32>,
    %c2_i32 = arith.constant 2 : i32
    %83 = arith.index_cast %c2_i32 : i32 to index
    %c0_33 = arith.constant 0 : index
    %c0_34 = arith.constant 0 : index
    %84 = vector.load %arg10[%83, %c0_33, %c0_34] : memref<8x8x512xf32, #tpu.memory_space<vmem>>, vector<1x8x512xf32>
    %85 = vector.shape_cast %84 : vector<1x8x512xf32> to vector<8x512xf32>
    %cst_35 = arith.constant dense<0.000000e+00> : vector<8x512xf32>
    %86 = tpu.matmul %78, %12, %cst_35 {dimension_numbers = #tpu.dot_dimension_numbers<[1], [0], [0], [1], [0, 0, 1, 1], [], []>} : vector<8x128xf32>, vector<128x512xf32>, vector<8x512xf32> -> vector<8x512xf32>
    %87 = arith.addf %85, %86 : vector<8x512xf32>
    %88 = vector.extract_strided_slice %87 {offsets = [0, 0], sizes = [8, 128], strides = [1, 1]} : vector<8x512xf32> to vector<8x128xf32>
    %89 = arith.negf %88 : vector<8x128xf32>
    %90 = math.exp %89 : vector<8x128xf32>
    %cst_36 = arith.constant 1.000000e+00 : f32
    %91 = vector.broadcast %cst_36 : f32 to vector<8x128xf32>
    %92 = arith.addf %91, %90 : vector<8x128xf32>
    %93 = arith.divf %91, %92 : vector<8x128xf32>
    %94 = vector.extract_strided_slice %87 {offsets = [0, 128], sizes = [8, 128], strides = [1, 1]} : vector<8x512xf32> to vector<8x128xf32>
    %95 = arith.negf %94 : vector<8x128xf32>
    %96 = math.exp %95 : vector<8x128xf32>
    %cst_37 = arith.constant 1.000000e+00 : f32
    %97 = vector.broadcast %cst_37 : f32 to vector<8x128xf32>
    %98 = arith.addf %97, %96 : vector<8x128xf32>
    %99 = arith.divf %97, %98 : vector<8x128xf32>
    %100 = vector.extract_strided_slice %87 {offsets = [0, 256], sizes = [8, 128], strides = [1, 1]} : vector<8x512xf32> to vector<8x128xf32>
    %101 = math.tanh %100 : vector<8x128xf32>
    %102 = vector.extract_strided_slice %87 {offsets = [0, 384], sizes = [8, 128], strides = [1, 1]} : vector<8x512xf32> to vector<8x128xf32>
    %103 = arith.negf %102 : vector<8x128xf32>
    %104 = math.exp %103 : vector<8x128xf32>
    %cst_38 = arith.constant 1.000000e+00 : f32
    %105 = vector.broadcast %cst_38 : f32 to vector<8x128xf32>
    %106 = arith.addf %105, %104 : vector<8x128xf32>
    %107 = arith.divf %105, %106 : vector<8x128xf32>
    %108 = arith.mulf %99, %76 : vector<8x128xf32>
    %109 = arith.mulf %93, %101 : vector<8x128xf32>
    %110 = arith.addf %108, %109 : vector<8x128xf32>
    %111 = math.tanh %110 : vector<8x128xf32>
    %112 = arith.mulf %107, %111 : vector<8x128xf32>
    %113 = arith.index_cast %c2_i32 : i32 to index
    %c0_39 = arith.constant 0 : index
    %c0_40 = arith.constant 0 : index
    %114 = vector.load %arg11[%113, %c0_39, %c0_40] : memref<8x8x128xf32, #tpu.memory_space<vmem>>, vector<1x8x128xf32>
    %115 = vector.shape_cast %114 : vector<1x8x128xf32> to vector<8x128xf32>
    %116 = vector.shape_cast %112 : vector<8x128xf32> to vector<1x8x128xf32>
    tpu.vector_store %arg11[%113, %c0_39, %c0_40], %116 {strides = array<i32>} : memref<8x8x128xf32, #tpu.memory_space<vmem>>, vector<1x8x128xf32>,
    %c3_i32 = arith.constant 3 : i32
    %117 = arith.index_cast %c3_i32 : i32 to index
    %c0_41 = arith.constant 0 : index
    %c0_42 = arith.constant 0 : index
    %118 = vector.load %arg10[%117, %c0_41, %c0_42] : memref<8x8x512xf32, #tpu.memory_space<vmem>>, vector<1x8x512xf32>
    %119 = vector.shape_cast %118 : vector<1x8x512xf32> to vector<8x512xf32>
    %cst_43 = arith.constant dense<0.000000e+00> : vector<8x512xf32>
    %120 = tpu.matmul %112, %12, %cst_43 {dimension_numbers = #tpu.dot_dimension_numbers<[1], [0], [0], [1], [0, 0, 1, 1], [], []>} : vector<8x128xf32>, vector<128x512xf32>, vector<8x512xf32> -> vector<8x512xf32>
    %121 = arith.addf %119, %120 : vector<8x512xf32>
    %122 = vector.extract_strided_slice %121 {offsets = [0, 0], sizes = [8, 128], strides = [1, 1]} : vector<8x512xf32> to vector<8x128xf32>
    %123 = arith.negf %122 : vector<8x128xf32>
    %124 = math.exp %123 : vector<8x128xf32>
    %cst_44 = arith.constant 1.000000e+00 : f32
    %125 = vector.broadcast %cst_44 : f32 to vector<8x128xf32>
    %126 = arith.addf %125, %124 : vector<8x128xf32>
    %127 = arith.divf %125, %126 : vector<8x128xf32>
    %128 = vector.extract_strided_slice %121 {offsets = [0, 128], sizes = [8, 128], strides = [1, 1]} : vector<8x512xf32> to vector<8x128xf32>
    %129 = arith.negf %128 : vector<8x128xf32>
    %130 = math.exp %129 : vector<8x128xf32>
    %cst_45 = arith.constant 1.000000e+00 : f32
    %131 = vector.broadcast %cst_45 : f32 to vector<8x128xf32>
    %132 = arith.addf %131, %130 : vector<8x128xf32>
    %133 = arith.divf %131, %132 : vector<8x128xf32>
    %134 = vector.extract_strided_slice %121 {offsets = [0, 256], sizes = [8, 128], strides = [1, 1]} : vector<8x512xf32> to vector<8x128xf32>
    %135 = math.tanh %134 : vector<8x128xf32>
    %136 = vector.extract_strided_slice %121 {offsets = [0, 384], sizes = [8, 128], strides = [1, 1]} : vector<8x512xf32> to vector<8x128xf32>
    %137 = arith.negf %136 : vector<8x128xf32>
    %138 = math.exp %137 : vector<8x128xf32>
    %cst_46 = arith.constant 1.000000e+00 : f32
    %139 = vector.broadcast %cst_46 : f32 to vector<8x128xf32>
    %140 = arith.addf %139, %138 : vector<8x128xf32>
    %141 = arith.divf %139, %140 : vector<8x128xf32>
    %142 = arith.mulf %133, %110 : vector<8x128xf32>
    %143 = arith.mulf %127, %135 : vector<8x128xf32>
    %144 = arith.addf %142, %143 : vector<8x128xf32>
    %145 = math.tanh %144 : vector<8x128xf32>
    %146 = arith.mulf %141, %145 : vector<8x128xf32>
    %147 = arith.index_cast %c3_i32 : i32 to index
    %c0_47 = arith.constant 0 : index
    %c0_48 = arith.constant 0 : index
    %148 = vector.load %arg11[%147, %c0_47, %c0_48] : memref<8x8x128xf32, #tpu.memory_space<vmem>>, vector<1x8x128xf32>
    %149 = vector.shape_cast %148 : vector<1x8x128xf32> to vector<8x128xf32>
    %150 = vector.shape_cast %146 : vector<8x128xf32> to vector<1x8x128xf32>
    tpu.vector_store %arg11[%147, %c0_47, %c0_48], %150 {strides = array<i32>} : memref<8x8x128xf32, #tpu.memory_space<vmem>>, vector<1x8x128xf32>,
    %c4_i32 = arith.constant 4 : i32
    %151 = arith.index_cast %c4_i32 : i32 to index
    %c0_49 = arith.constant 0 : index
    %c0_50 = arith.constant 0 : index
    %152 = vector.load %arg10[%151, %c0_49, %c0_50] : memref<8x8x512xf32, #tpu.memory_space<vmem>>, vector<1x8x512xf32>
    %153 = vector.shape_cast %152 : vector<1x8x512xf32> to vector<8x512xf32>
    %cst_51 = arith.constant dense<0.000000e+00> : vector<8x512xf32>
    %154 = tpu.matmul %146, %12, %cst_51 {dimension_numbers = #tpu.dot_dimension_numbers<[1], [0], [0], [1], [0, 0, 1, 1], [], []>} : vector<8x128xf32>, vector<128x512xf32>, vector<8x512xf32> -> vector<8x512xf32>
    %155 = arith.addf %153, %154 : vector<8x512xf32>
    %156 = vector.extract_strided_slice %155 {offsets = [0, 0], sizes = [8, 128], strides = [1, 1]} : vector<8x512xf32> to vector<8x128xf32>
    %157 = arith.negf %156 : vector<8x128xf32>
    %158 = math.exp %157 : vector<8x128xf32>
    %cst_52 = arith.constant 1.000000e+00 : f32
    %159 = vector.broadcast %cst_52 : f32 to vector<8x128xf32>
    %160 = arith.addf %159, %158 : vector<8x128xf32>
    %161 = arith.divf %159, %160 : vector<8x128xf32>
    %162 = vector.extract_strided_slice %155 {offsets = [0, 128], sizes = [8, 128], strides = [1, 1]} : vector<8x512xf32> to vector<8x128xf32>
    %163 = arith.negf %162 : vector<8x128xf32>
    %164 = math.exp %163 : vector<8x128xf32>
    %cst_53 = arith.constant 1.000000e+00 : f32
    %165 = vector.broadcast %cst_53 : f32 to vector<8x128xf32>
    %166 = arith.addf %165, %164 : vector<8x128xf32>
    %167 = arith.divf %165, %166 : vector<8x128xf32>
    %168 = vector.extract_strided_slice %155 {offsets = [0, 256], sizes = [8, 128], strides = [1, 1]} : vector<8x512xf32> to vector<8x128xf32>
    %169 = math.tanh %168 : vector<8x128xf32>
    %170 = vector.extract_strided_slice %155 {offsets = [0, 384], sizes = [8, 128], strides = [1, 1]} : vector<8x512xf32> to vector<8x128xf32>
    %171 = arith.negf %170 : vector<8x128xf32>
    %172 = math.exp %171 : vector<8x128xf32>
    %cst_54 = arith.constant 1.000000e+00 : f32
    %173 = vector.broadcast %cst_54 : f32 to vector<8x128xf32>
    %174 = arith.addf %173, %172 : vector<8x128xf32>
    %175 = arith.divf %173, %174 : vector<8x128xf32>
    %176 = arith.mulf %167, %144 : vector<8x128xf32>
    %177 = arith.mulf %161, %169 : vector<8x128xf32>
    %178 = arith.addf %176, %177 : vector<8x128xf32>
    %179 = math.tanh %178 : vector<8x128xf32>
    %180 = arith.mulf %175, %179 : vector<8x128xf32>
    %181 = arith.index_cast %c4_i32 : i32 to index
    %c0_55 = arith.constant 0 : index
    %c0_56 = arith.constant 0 : index
    %182 = vector.load %arg11[%181, %c0_55, %c0_56] : memref<8x8x128xf32, #tpu.memory_space<vmem>>, vector<1x8x128xf32>
    %183 = vector.shape_cast %182 : vector<1x8x128xf32> to vector<8x128xf32>
    %184 = vector.shape_cast %180 : vector<8x128xf32> to vector<1x8x128xf32>
    tpu.vector_store %arg11[%181, %c0_55, %c0_56], %184 {strides = array<i32>} : memref<8x8x128xf32, #tpu.memory_space<vmem>>, vector<1x8x128xf32>,
    %c5_i32 = arith.constant 5 : i32
    %185 = arith.index_cast %c5_i32 : i32 to index
    %c0_57 = arith.constant 0 : index
    %c0_58 = arith.constant 0 : index
    %186 = vector.load %arg10[%185, %c0_57, %c0_58] : memref<8x8x512xf32, #tpu.memory_space<vmem>>, vector<1x8x512xf32>
    %187 = vector.shape_cast %186 : vector<1x8x512xf32> to vector<8x512xf32>
    %cst_59 = arith.constant dense<0.000000e+00> : vector<8x512xf32>
    %188 = tpu.matmul %180, %12, %cst_59 {dimension_numbers = #tpu.dot_dimension_numbers<[1], [0], [0], [1], [0, 0, 1, 1], [], []>} : vector<8x128xf32>, vector<128x512xf32>, vector<8x512xf32> -> vector<8x512xf32>
    %189 = arith.addf %187, %188 : vector<8x512xf32>
    %190 = vector.extract_strided_slice %189 {offsets = [0, 0], sizes = [8, 128], strides = [1, 1]} : vector<8x512xf32> to vector<8x128xf32>
    %191 = arith.negf %190 : vector<8x128xf32>
    %192 = math.exp %191 : vector<8x128xf32>
    %cst_60 = arith.constant 1.000000e+00 : f32
    %193 = vector.broadcast %cst_60 : f32 to vector<8x128xf32>
    %194 = arith.addf %193, %192 : vector<8x128xf32>
    %195 = arith.divf %193, %194 : vector<8x128xf32>
    %196 = vector.extract_strided_slice %189 {offsets = [0, 128], sizes = [8, 128], strides = [1, 1]} : vector<8x512xf32> to vector<8x128xf32>
    %197 = arith.negf %196 : vector<8x128xf32>
    %198 = math.exp %197 : vector<8x128xf32>
    %cst_61 = arith.constant 1.000000e+00 : f32
    %199 = vector.broadcast %cst_61 : f32 to vector<8x128xf32>
    %200 = arith.addf %199, %198 : vector<8x128xf32>
    %201 = arith.divf %199, %200 : vector<8x128xf32>
    %202 = vector.extract_strided_slice %189 {offsets = [0, 256], sizes = [8, 128], strides = [1, 1]} : vector<8x512xf32> to vector<8x128xf32>
    %203 = math.tanh %202 : vector<8x128xf32>
    %204 = vector.extract_strided_slice %189 {offsets = [0, 384], sizes = [8, 128], strides = [1, 1]} : vector<8x512xf32> to vector<8x128xf32>
    %205 = arith.negf %204 : vector<8x128xf32>
    %206 = math.exp %205 : vector<8x128xf32>
    %cst_62 = arith.constant 1.000000e+00 : f32
    %207 = vector.broadcast %cst_62 : f32 to vector<8x128xf32>
    %208 = arith.addf %207, %206 : vector<8x128xf32>
    %209 = arith.divf %207, %208 : vector<8x128xf32>
    %210 = arith.mulf %201, %178 : vector<8x128xf32>
    %211 = arith.mulf %195, %203 : vector<8x128xf32>
    %212 = arith.addf %210, %211 : vector<8x128xf32>
    %213 = math.tanh %212 : vector<8x128xf32>
    %214 = arith.mulf %209, %213 : vector<8x128xf32>
    %215 = arith.index_cast %c5_i32 : i32 to index
    %c0_63 = arith.constant 0 : index
    %c0_64 = arith.constant 0 : index
    %216 = vector.load %arg11[%215, %c0_63, %c0_64] : memref<8x8x128xf32, #tpu.memory_space<vmem>>, vector<1x8x128xf32>
    %217 = vector.shape_cast %216 : vector<1x8x128xf32> to vector<8x128xf32>
    %218 = vector.shape_cast %214 : vector<8x128xf32> to vector<1x8x128xf32>
    tpu.vector_store %arg11[%215, %c0_63, %c0_64], %218 {strides = array<i32>} : memref<8x8x128xf32, #tpu.memory_space<vmem>>, vector<1x8x128xf32>,
    %c6_i32 = arith.constant 6 : i32
    %219 = arith.index_cast %c6_i32 : i32 to index
    %c0_65 = arith.constant 0 : index
    %c0_66 = arith.constant 0 : index
    %220 = vector.load %arg10[%219, %c0_65, %c0_66] : memref<8x8x512xf32, #tpu.memory_space<vmem>>, vector<1x8x512xf32>
    %221 = vector.shape_cast %220 : vector<1x8x512xf32> to vector<8x512xf32>
    %cst_67 = arith.constant dense<0.000000e+00> : vector<8x512xf32>
    %222 = tpu.matmul %214, %12, %cst_67 {dimension_numbers = #tpu.dot_dimension_numbers<[1], [0], [0], [1], [0, 0, 1, 1], [], []>} : vector<8x128xf32>, vector<128x512xf32>, vector<8x512xf32> -> vector<8x512xf32>
    %223 = arith.addf %221, %222 : vector<8x512xf32>
    %224 = vector.extract_strided_slice %223 {offsets = [0, 0], sizes = [8, 128], strides = [1, 1]} : vector<8x512xf32> to vector<8x128xf32>
    %225 = arith.negf %224 : vector<8x128xf32>
    %226 = math.exp %225 : vector<8x128xf32>
    %cst_68 = arith.constant 1.000000e+00 : f32
    %227 = vector.broadcast %cst_68 : f32 to vector<8x128xf32>
    %228 = arith.addf %227, %226 : vector<8x128xf32>
    %229 = arith.divf %227, %228 : vector<8x128xf32>
    %230 = vector.extract_strided_slice %223 {offsets = [0, 128], sizes = [8, 128], strides = [1, 1]} : vector<8x512xf32> to vector<8x128xf32>
    %231 = arith.negf %230 : vector<8x128xf32>
    %232 = math.exp %231 : vector<8x128xf32>
    %cst_69 = arith.constant 1.000000e+00 : f32
    %233 = vector.broadcast %cst_69 : f32 to vector<8x128xf32>
    %234 = arith.addf %233, %232 : vector<8x128xf32>
    %235 = arith.divf %233, %234 : vector<8x128xf32>
    %236 = vector.extract_strided_slice %223 {offsets = [0, 256], sizes = [8, 128], strides = [1, 1]} : vector<8x512xf32> to vector<8x128xf32>
    %237 = math.tanh %236 : vector<8x128xf32>
    %238 = vector.extract_strided_slice %223 {offsets = [0, 384], sizes = [8, 128], strides = [1, 1]} : vector<8x512xf32> to vector<8x128xf32>
    %239 = arith.negf %238 : vector<8x128xf32>
    %240 = math.exp %239 : vector<8x128xf32>
    %cst_70 = arith.constant 1.000000e+00 : f32
    %241 = vector.broadcast %cst_70 : f32 to vector<8x128xf32>
    %242 = arith.addf %241, %240 : vector<8x128xf32>
    %243 = arith.divf %241, %242 : vector<8x128xf32>
    %244 = arith.mulf %235, %212 : vector<8x128xf32>
    %245 = arith.mulf %229, %237 : vector<8x128xf32>
    %246 = arith.addf %244, %245 : vector<8x128xf32>
    %247 = math.tanh %246 : vector<8x128xf32>
    %248 = arith.mulf %243, %247 : vector<8x128xf32>
    %249 = arith.index_cast %c6_i32 : i32 to index
    %c0_71 = arith.constant 0 : index
    %c0_72 = arith.constant 0 : index
    %250 = vector.load %arg11[%249, %c0_71, %c0_72] : memref<8x8x128xf32, #tpu.memory_space<vmem>>, vector<1x8x128xf32>
    %251 = vector.shape_cast %250 : vector<1x8x128xf32> to vector<8x128xf32>
    %252 = vector.shape_cast %248 : vector<8x128xf32> to vector<1x8x128xf32>
    tpu.vector_store %arg11[%249, %c0_71, %c0_72], %252 {strides = array<i32>} : memref<8x8x128xf32, #tpu.memory_space<vmem>>, vector<1x8x128xf32>,
    %c7_i32 = arith.constant 7 : i32
    %253 = arith.index_cast %c7_i32 : i32 to index
    %c0_73 = arith.constant 0 : index
    %c0_74 = arith.constant 0 : index
    %254 = vector.load %arg10[%253, %c0_73, %c0_74] : memref<8x8x512xf32, #tpu.memory_space<vmem>>, vector<1x8x512xf32>
    %255 = vector.shape_cast %254 : vector<1x8x512xf32> to vector<8x512xf32>
    %cst_75 = arith.constant dense<0.000000e+00> : vector<8x512xf32>
    %256 = tpu.matmul %248, %12, %cst_75 {dimension_numbers = #tpu.dot_dimension_numbers<[1], [0], [0], [1], [0, 0, 1, 1], [], []>} : vector<8x128xf32>, vector<128x512xf32>, vector<8x512xf32> -> vector<8x512xf32>
    %257 = arith.addf %255, %256 : vector<8x512xf32>
    %258 = vector.extract_strided_slice %257 {offsets = [0, 0], sizes = [8, 128], strides = [1, 1]} : vector<8x512xf32> to vector<8x128xf32>
    %259 = arith.negf %258 : vector<8x128xf32>
    %260 = math.exp %259 : vector<8x128xf32>
    %cst_76 = arith.constant 1.000000e+00 : f32
    %261 = vector.broadcast %cst_76 : f32 to vector<8x128xf32>
    %262 = arith.addf %261, %260 : vector<8x128xf32>
    %263 = arith.divf %261, %262 : vector<8x128xf32>
    %264 = vector.extract_strided_slice %257 {offsets = [0, 128], sizes = [8, 128], strides = [1, 1]} : vector<8x512xf32> to vector<8x128xf32>
    %265 = arith.negf %264 : vector<8x128xf32>
    %266 = math.exp %265 : vector<8x128xf32>
    %cst_77 = arith.constant 1.000000e+00 : f32
    %267 = vector.broadcast %cst_77 : f32 to vector<8x128xf32>
    %268 = arith.addf %267, %266 : vector<8x128xf32>
    %269 = arith.divf %267, %268 : vector<8x128xf32>
    %270 = vector.extract_strided_slice %257 {offsets = [0, 256], sizes = [8, 128], strides = [1, 1]} : vector<8x512xf32> to vector<8x128xf32>
    %271 = math.tanh %270 : vector<8x128xf32>
    %272 = vector.extract_strided_slice %257 {offsets = [0, 384], sizes = [8, 128], strides = [1, 1]} : vector<8x512xf32> to vector<8x128xf32>
    %273 = arith.negf %272 : vector<8x128xf32>
    %274 = math.exp %273 : vector<8x128xf32>
    %cst_78 = arith.constant 1.000000e+00 : f32
    %275 = vector.broadcast %cst_78 : f32 to vector<8x128xf32>
    %276 = arith.addf %275, %274 : vector<8x128xf32>
    %277 = arith.divf %275, %276 : vector<8x128xf32>
    %278 = arith.mulf %269, %246 : vector<8x128xf32>
    %279 = arith.mulf %263, %271 : vector<8x128xf32>
    %280 = arith.addf %278, %279 : vector<8x128xf32>
    %281 = math.tanh %280 : vector<8x128xf32>
    %282 = arith.mulf %277, %281 : vector<8x128xf32>
    %283 = arith.index_cast %c7_i32 : i32 to index
    %c0_79 = arith.constant 0 : index
    %c0_80 = arith.constant 0 : index
    %284 = vector.load %arg11[%283, %c0_79, %c0_80] : memref<8x8x128xf32, #tpu.memory_space<vmem>>, vector<1x8x128xf32>
    %285 = vector.shape_cast %284 : vector<1x8x128xf32> to vector<8x128xf32>
    %286 = vector.shape_cast %282 : vector<8x128xf32> to vector<1x8x128xf32>
    tpu.vector_store %arg11[%283, %c0_79, %c0_80], %286 {strides = array<i32>} : memref<8x8x128xf32, #tpu.memory_space<vmem>>, vector<1x8x128xf32>,
    %c8_i32 = arith.constant 8 : i32
    %c0_81 = arith.constant 0 : index
    %c0_82 = arith.constant 0 : index
    %287 = vector.load %arg12[%c0_81, %c0_82] : memref<8x128xf32, #tpu.memory_space<vmem>>, vector<8x128xf32>
    tpu.vector_store %arg12[%c0_81, %c0_82], %282 {strides = array<i32>} : memref<8x128xf32, #tpu.memory_space<vmem>>, vector<8x128xf32>,
    %c0_83 = arith.constant 0 : index
    %c0_84 = arith.constant 0 : index
    %288 = vector.load %arg13[%c0_83, %c0_84] : memref<8x128xf32, #tpu.memory_space<vmem>>, vector<8x128xf32>
    tpu.vector_store %arg13[%c0_83, %c0_84], %280 {strides = array<i32>} : memref<8x128xf32, #tpu.memory_space<vmem>>, vector<8x128xf32>,
    %c0_85 = arith.constant 0 : index
    %c0_86 = arith.constant 0 : index
    %c0_87 = arith.constant 0 : index
    %289 = vector.load %arg11[%c0_85, %c0_86, %c0_87] : memref<8x8x128xf32, #tpu.memory_space<vmem>>, vector<8x8x128xf32>
    %290 = vector.shape_cast %289 : vector<8x8x128xf32> to vector<64x128xf32>
    %c0_88 = arith.constant 0 : index
    %c0_89 = arith.constant 0 : index
    %291 = vector.load %arg6[%c0_88, %c0_89] : memref<128x512xf32, #tpu.memory_space<vmem>>, vector<128x512xf32>
    %cst_90 = arith.constant dense<0.000000e+00> : vector<64x512xf32>
    %292 = tpu.matmul %290, %291, %cst_90 {dimension_numbers = #tpu.dot_dimension_numbers<[1], [0], [0], [1], [0, 0, 1, 1], [], []>} : vector<64x128xf32>, vector<128x512xf32>, vector<64x512xf32> -> vector<64x512xf32>
    %c0_91 = arith.constant 0 : index
    %c0_92 = arith.constant 0 : index
    %293 = vector.load %arg8[%c0_91, %c0_92] : memref<1x512xf32, #tpu.memory_space<vmem>>, vector<1x512xf32>
    %294 = vector.broadcast %293 : vector<1x512xf32> to vector<64x512xf32>
    %295 = arith.addf %292, %294 : vector<64x512xf32>
    %296 = vector.shape_cast %295 : vector<64x512xf32> to vector<8x8x512xf32>
    %c0_93 = arith.constant 0 : index
    %c0_94 = arith.constant 0 : index
    %c0_95 = arith.constant 0 : index
    %297 = vector.load %arg10[%c0_93, %c0_94, %c0_95] : memref<8x8x512xf32, #tpu.memory_space<vmem>>, vector<8x8x512xf32>
    tpu.vector_store %arg10[%c0_93, %c0_94, %c0_95], %296 {strides = array<i32>} : memref<8x8x512xf32, #tpu.memory_space<vmem>>, vector<8x8x512xf32>,
    %c0_96 = arith.constant 0 : index
    %c0_97 = arith.constant 0 : index
    %298 = vector.load %arg7[%c0_96, %c0_97] : memref<128x512xf32, #tpu.memory_space<vmem>>, vector<128x512xf32>
    %c0_98 = arith.constant 0 : index
    %c0_99 = arith.constant 0 : index
    %299 = vector.load %arg14[%c0_98, %c0_99] : memref<8x128xf32, #tpu.memory_space<vmem>>, vector<8x128xf32>
    %c0_100 = arith.constant 0 : index
    %c0_101 = arith.constant 0 : index
    %300 = vector.load %arg15[%c0_100, %c0_101] : memref<8x128xf32, #tpu.memory_space<vmem>>, vector<8x128xf32>
    %c0_i32_102 = arith.constant 0 : i32
    %301 = arith.index_cast %c0_i32_102 : i32 to index
    %c0_103 = arith.constant 0 : index
    %c0_104 = arith.constant 0 : index
    %302 = vector.load %arg10[%301, %c0_103, %c0_104] : memref<8x8x512xf32, #tpu.memory_space<vmem>>, vector<1x8x512xf32>
    %303 = vector.shape_cast %302 : vector<1x8x512xf32> to vector<8x512xf32>
    %cst_105 = arith.constant dense<0.000000e+00> : vector<8x512xf32>
    %304 = tpu.matmul %299, %298, %cst_105 {dimension_numbers = #tpu.dot_dimension_numbers<[1], [0], [0], [1], [0, 0, 1, 1], [], []>} : vector<8x128xf32>, vector<128x512xf32>, vector<8x512xf32> -> vector<8x512xf32>
    %305 = arith.addf %303, %304 : vector<8x512xf32>
    %306 = vector.extract_strided_slice %305 {offsets = [0, 0], sizes = [8, 128], strides = [1, 1]} : vector<8x512xf32> to vector<8x128xf32>
    %307 = arith.negf %306 : vector<8x128xf32>
    %308 = math.exp %307 : vector<8x128xf32>
    %cst_106 = arith.constant 1.000000e+00 : f32
    %309 = vector.broadcast %cst_106 : f32 to vector<8x128xf32>
    %310 = arith.addf %309, %308 : vector<8x128xf32>
    %311 = arith.divf %309, %310 : vector<8x128xf32>
    %312 = vector.extract_strided_slice %305 {offsets = [0, 128], sizes = [8, 128], strides = [1, 1]} : vector<8x512xf32> to vector<8x128xf32>
    %313 = arith.negf %312 : vector<8x128xf32>
    %314 = math.exp %313 : vector<8x128xf32>
    %cst_107 = arith.constant 1.000000e+00 : f32
    %315 = vector.broadcast %cst_107 : f32 to vector<8x128xf32>
    %316 = arith.addf %315, %314 : vector<8x128xf32>
    %317 = arith.divf %315, %316 : vector<8x128xf32>
    %318 = vector.extract_strided_slice %305 {offsets = [0, 256], sizes = [8, 128], strides = [1, 1]} : vector<8x512xf32> to vector<8x128xf32>
    %319 = math.tanh %318 : vector<8x128xf32>
    %320 = vector.extract_strided_slice %305 {offsets = [0, 384], sizes = [8, 128], strides = [1, 1]} : vector<8x512xf32> to vector<8x128xf32>
    %321 = arith.negf %320 : vector<8x128xf32>
    %322 = math.exp %321 : vector<8x128xf32>
    %cst_108 = arith.constant 1.000000e+00 : f32
    %323 = vector.broadcast %cst_108 : f32 to vector<8x128xf32>
    %324 = arith.addf %323, %322 : vector<8x128xf32>
    %325 = arith.divf %323, %324 : vector<8x128xf32>
    %326 = arith.mulf %317, %300 : vector<8x128xf32>
    %327 = arith.mulf %311, %319 : vector<8x128xf32>
    %328 = arith.addf %326, %327 : vector<8x128xf32>
    %329 = math.tanh %328 : vector<8x128xf32>
    %330 = arith.mulf %325, %329 : vector<8x128xf32>
    %331 = arith.index_cast %c0_i32_102 : i32 to index
    %c0_109 = arith.constant 0 : index
    %c0_110 = arith.constant 0 : index
    %332 = vector.load %arg9[%331, %c0_109, %c0_110] : memref<8x8x128xf32, #tpu.memory_space<vmem>>, vector<1x8x128xf32>
    %333 = vector.shape_cast %332 : vector<1x8x128xf32> to vector<8x128xf32>
    %334 = vector.shape_cast %330 : vector<8x128xf32> to vector<1x8x128xf32>
    tpu.vector_store %arg9[%331, %c0_109, %c0_110], %334 {strides = array<i32>} : memref<8x8x128xf32, #tpu.memory_space<vmem>>, vector<1x8x128xf32>,
    %c1_i32_111 = arith.constant 1 : i32
    %335 = arith.index_cast %c1_i32_111 : i32 to index
    %c0_112 = arith.constant 0 : index
    %c0_113 = arith.constant 0 : index
    %336 = vector.load %arg10[%335, %c0_112, %c0_113] : memref<8x8x512xf32, #tpu.memory_space<vmem>>, vector<1x8x512xf32>
    %337 = vector.shape_cast %336 : vector<1x8x512xf32> to vector<8x512xf32>
    %cst_114 = arith.constant dense<0.000000e+00> : vector<8x512xf32>
    %338 = tpu.matmul %330, %298, %cst_114 {dimension_numbers = #tpu.dot_dimension_numbers<[1], [0], [0], [1], [0, 0, 1, 1], [], []>} : vector<8x128xf32>, vector<128x512xf32>, vector<8x512xf32> -> vector<8x512xf32>
    %339 = arith.addf %337, %338 : vector<8x512xf32>
    %340 = vector.extract_strided_slice %339 {offsets = [0, 0], sizes = [8, 128], strides = [1, 1]} : vector<8x512xf32> to vector<8x128xf32>
    %341 = arith.negf %340 : vector<8x128xf32>
    %342 = math.exp %341 : vector<8x128xf32>
    %cst_115 = arith.constant 1.000000e+00 : f32
    %343 = vector.broadcast %cst_115 : f32 to vector<8x128xf32>
    %344 = arith.addf %343, %342 : vector<8x128xf32>
    %345 = arith.divf %343, %344 : vector<8x128xf32>
    %346 = vector.extract_strided_slice %339 {offsets = [0, 128], sizes = [8, 128], strides = [1, 1]} : vector<8x512xf32> to vector<8x128xf32>
    %347 = arith.negf %346 : vector<8x128xf32>
    %348 = math.exp %347 : vector<8x128xf32>
    %cst_116 = arith.constant 1.000000e+00 : f32
    %349 = vector.broadcast %cst_116 : f32 to vector<8x128xf32>
    %350 = arith.addf %349, %348 : vector<8x128xf32>
    %351 = arith.divf %349, %350 : vector<8x128xf32>
    %352 = vector.extract_strided_slice %339 {offsets = [0, 256], sizes = [8, 128], strides = [1, 1]} : vector<8x512xf32> to vector<8x128xf32>
    %353 = math.tanh %352 : vector<8x128xf32>
    %354 = vector.extract_strided_slice %339 {offsets = [0, 384], sizes = [8, 128], strides = [1, 1]} : vector<8x512xf32> to vector<8x128xf32>
    %355 = arith.negf %354 : vector<8x128xf32>
    %356 = math.exp %355 : vector<8x128xf32>
    %cst_117 = arith.constant 1.000000e+00 : f32
    %357 = vector.broadcast %cst_117 : f32 to vector<8x128xf32>
    %358 = arith.addf %357, %356 : vector<8x128xf32>
    %359 = arith.divf %357, %358 : vector<8x128xf32>
    %360 = arith.mulf %351, %328 : vector<8x128xf32>
    %361 = arith.mulf %345, %353 : vector<8x128xf32>
    %362 = arith.addf %360, %361 : vector<8x128xf32>
    %363 = math.tanh %362 : vector<8x128xf32>
    %364 = arith.mulf %359, %363 : vector<8x128xf32>
    %365 = arith.index_cast %c1_i32_111 : i32 to index
    %c0_118 = arith.constant 0 : index
    %c0_119 = arith.constant 0 : index
    %366 = vector.load %arg9[%365, %c0_118, %c0_119] : memref<8x8x128xf32, #tpu.memory_space<vmem>>, vector<1x8x128xf32>
    %367 = vector.shape_cast %366 : vector<1x8x128xf32> to vector<8x128xf32>
    %368 = vector.shape_cast %364 : vector<8x128xf32> to vector<1x8x128xf32>
    tpu.vector_store %arg9[%365, %c0_118, %c0_119], %368 {strides = array<i32>} : memref<8x8x128xf32, #tpu.memory_space<vmem>>, vector<1x8x128xf32>,
    %c2_i32_120 = arith.constant 2 : i32
    %369 = arith.index_cast %c2_i32_120 : i32 to index
    %c0_121 = arith.constant 0 : index
    %c0_122 = arith.constant 0 : index
    %370 = vector.load %arg10[%369, %c0_121, %c0_122] : memref<8x8x512xf32, #tpu.memory_space<vmem>>, vector<1x8x512xf32>
    %371 = vector.shape_cast %370 : vector<1x8x512xf32> to vector<8x512xf32>
    %cst_123 = arith.constant dense<0.000000e+00> : vector<8x512xf32>
    %372 = tpu.matmul %364, %298, %cst_123 {dimension_numbers = #tpu.dot_dimension_numbers<[1], [0], [0], [1], [0, 0, 1, 1], [], []>} : vector<8x128xf32>, vector<128x512xf32>, vector<8x512xf32> -> vector<8x512xf32>
    %373 = arith.addf %371, %372 : vector<8x512xf32>
    %374 = vector.extract_strided_slice %373 {offsets = [0, 0], sizes = [8, 128], strides = [1, 1]} : vector<8x512xf32> to vector<8x128xf32>
    %375 = arith.negf %374 : vector<8x128xf32>
    %376 = math.exp %375 : vector<8x128xf32>
    %cst_124 = arith.constant 1.000000e+00 : f32
    %377 = vector.broadcast %cst_124 : f32 to vector<8x128xf32>
    %378 = arith.addf %377, %376 : vector<8x128xf32>
    %379 = arith.divf %377, %378 : vector<8x128xf32>
    %380 = vector.extract_strided_slice %373 {offsets = [0, 128], sizes = [8, 128], strides = [1, 1]} : vector<8x512xf32> to vector<8x128xf32>
    %381 = arith.negf %380 : vector<8x128xf32>
    %382 = math.exp %381 : vector<8x128xf32>
    %cst_125 = arith.constant 1.000000e+00 : f32
    %383 = vector.broadcast %cst_125 : f32 to vector<8x128xf32>
    %384 = arith.addf %383, %382 : vector<8x128xf32>
    %385 = arith.divf %383, %384 : vector<8x128xf32>
    %386 = vector.extract_strided_slice %373 {offsets = [0, 256], sizes = [8, 128], strides = [1, 1]} : vector<8x512xf32> to vector<8x128xf32>
    %387 = math.tanh %386 : vector<8x128xf32>
    %388 = vector.extract_strided_slice %373 {offsets = [0, 384], sizes = [8, 128], strides = [1, 1]} : vector<8x512xf32> to vector<8x128xf32>
    %389 = arith.negf %388 : vector<8x128xf32>
    %390 = math.exp %389 : vector<8x128xf32>
    %cst_126 = arith.constant 1.000000e+00 : f32
    %391 = vector.broadcast %cst_126 : f32 to vector<8x128xf32>
    %392 = arith.addf %391, %390 : vector<8x128xf32>
    %393 = arith.divf %391, %392 : vector<8x128xf32>
    %394 = arith.mulf %385, %362 : vector<8x128xf32>
    %395 = arith.mulf %379, %387 : vector<8x128xf32>
    %396 = arith.addf %394, %395 : vector<8x128xf32>
    %397 = math.tanh %396 : vector<8x128xf32>
    %398 = arith.mulf %393, %397 : vector<8x128xf32>
    %399 = arith.index_cast %c2_i32_120 : i32 to index
    %c0_127 = arith.constant 0 : index
    %c0_128 = arith.constant 0 : index
    %400 = vector.load %arg9[%399, %c0_127, %c0_128] : memref<8x8x128xf32, #tpu.memory_space<vmem>>, vector<1x8x128xf32>
    %401 = vector.shape_cast %400 : vector<1x8x128xf32> to vector<8x128xf32>
    %402 = vector.shape_cast %398 : vector<8x128xf32> to vector<1x8x128xf32>
    tpu.vector_store %arg9[%399, %c0_127, %c0_128], %402 {strides = array<i32>} : memref<8x8x128xf32, #tpu.memory_space<vmem>>, vector<1x8x128xf32>,
    %c3_i32_129 = arith.constant 3 : i32
    %403 = arith.index_cast %c3_i32_129 : i32 to index
    %c0_130 = arith.constant 0 : index
    %c0_131 = arith.constant 0 : index
    %404 = vector.load %arg10[%403, %c0_130, %c0_131] : memref<8x8x512xf32, #tpu.memory_space<vmem>>, vector<1x8x512xf32>
    %405 = vector.shape_cast %404 : vector<1x8x512xf32> to vector<8x512xf32>
    %cst_132 = arith.constant dense<0.000000e+00> : vector<8x512xf32>
    %406 = tpu.matmul %398, %298, %cst_132 {dimension_numbers = #tpu.dot_dimension_numbers<[1], [0], [0], [1], [0, 0, 1, 1], [], []>} : vector<8x128xf32>, vector<128x512xf32>, vector<8x512xf32> -> vector<8x512xf32>
    %407 = arith.addf %405, %406 : vector<8x512xf32>
    %408 = vector.extract_strided_slice %407 {offsets = [0, 0], sizes = [8, 128], strides = [1, 1]} : vector<8x512xf32> to vector<8x128xf32>
    %409 = arith.negf %408 : vector<8x128xf32>
    %410 = math.exp %409 : vector<8x128xf32>
    %cst_133 = arith.constant 1.000000e+00 : f32
    %411 = vector.broadcast %cst_133 : f32 to vector<8x128xf32>
    %412 = arith.addf %411, %410 : vector<8x128xf32>
    %413 = arith.divf %411, %412 : vector<8x128xf32>
    %414 = vector.extract_strided_slice %407 {offsets = [0, 128], sizes = [8, 128], strides = [1, 1]} : vector<8x512xf32> to vector<8x128xf32>
    %415 = arith.negf %414 : vector<8x128xf32>
    %416 = math.exp %415 : vector<8x128xf32>
    %cst_134 = arith.constant 1.000000e+00 : f32
    %417 = vector.broadcast %cst_134 : f32 to vector<8x128xf32>
    %418 = arith.addf %417, %416 : vector<8x128xf32>
    %419 = arith.divf %417, %418 : vector<8x128xf32>
    %420 = vector.extract_strided_slice %407 {offsets = [0, 256], sizes = [8, 128], strides = [1, 1]} : vector<8x512xf32> to vector<8x128xf32>
    %421 = math.tanh %420 : vector<8x128xf32>
    %422 = vector.extract_strided_slice %407 {offsets = [0, 384], sizes = [8, 128], strides = [1, 1]} : vector<8x512xf32> to vector<8x128xf32>
    %423 = arith.negf %422 : vector<8x128xf32>
    %424 = math.exp %423 : vector<8x128xf32>
    %cst_135 = arith.constant 1.000000e+00 : f32
    %425 = vector.broadcast %cst_135 : f32 to vector<8x128xf32>
    %426 = arith.addf %425, %424 : vector<8x128xf32>
    %427 = arith.divf %425, %426 : vector<8x128xf32>
    %428 = arith.mulf %419, %396 : vector<8x128xf32>
    %429 = arith.mulf %413, %421 : vector<8x128xf32>
    %430 = arith.addf %428, %429 : vector<8x128xf32>
    %431 = math.tanh %430 : vector<8x128xf32>
    %432 = arith.mulf %427, %431 : vector<8x128xf32>
    %433 = arith.index_cast %c3_i32_129 : i32 to index
    %c0_136 = arith.constant 0 : index
    %c0_137 = arith.constant 0 : index
    %434 = vector.load %arg9[%433, %c0_136, %c0_137] : memref<8x8x128xf32, #tpu.memory_space<vmem>>, vector<1x8x128xf32>
    %435 = vector.shape_cast %434 : vector<1x8x128xf32> to vector<8x128xf32>
    %436 = vector.shape_cast %432 : vector<8x128xf32> to vector<1x8x128xf32>
    tpu.vector_store %arg9[%433, %c0_136, %c0_137], %436 {strides = array<i32>} : memref<8x8x128xf32, #tpu.memory_space<vmem>>, vector<1x8x128xf32>,
    %c4_i32_138 = arith.constant 4 : i32
    %437 = arith.index_cast %c4_i32_138 : i32 to index
    %c0_139 = arith.constant 0 : index
    %c0_140 = arith.constant 0 : index
    %438 = vector.load %arg10[%437, %c0_139, %c0_140] : memref<8x8x512xf32, #tpu.memory_space<vmem>>, vector<1x8x512xf32>
    %439 = vector.shape_cast %438 : vector<1x8x512xf32> to vector<8x512xf32>
    %cst_141 = arith.constant dense<0.000000e+00> : vector<8x512xf32>
    %440 = tpu.matmul %432, %298, %cst_141 {dimension_numbers = #tpu.dot_dimension_numbers<[1], [0], [0], [1], [0, 0, 1, 1], [], []>} : vector<8x128xf32>, vector<128x512xf32>, vector<8x512xf32> -> vector<8x512xf32>
    %441 = arith.addf %439, %440 : vector<8x512xf32>
    %442 = vector.extract_strided_slice %441 {offsets = [0, 0], sizes = [8, 128], strides = [1, 1]} : vector<8x512xf32> to vector<8x128xf32>
    %443 = arith.negf %442 : vector<8x128xf32>
    %444 = math.exp %443 : vector<8x128xf32>
    %cst_142 = arith.constant 1.000000e+00 : f32
    %445 = vector.broadcast %cst_142 : f32 to vector<8x128xf32>
    %446 = arith.addf %445, %444 : vector<8x128xf32>
    %447 = arith.divf %445, %446 : vector<8x128xf32>
    %448 = vector.extract_strided_slice %441 {offsets = [0, 128], sizes = [8, 128], strides = [1, 1]} : vector<8x512xf32> to vector<8x128xf32>
    %449 = arith.negf %448 : vector<8x128xf32>
    %450 = math.exp %449 : vector<8x128xf32>
    %cst_143 = arith.constant 1.000000e+00 : f32
    %451 = vector.broadcast %cst_143 : f32 to vector<8x128xf32>
    %452 = arith.addf %451, %450 : vector<8x128xf32>
    %453 = arith.divf %451, %452 : vector<8x128xf32>
    %454 = vector.extract_strided_slice %441 {offsets = [0, 256], sizes = [8, 128], strides = [1, 1]} : vector<8x512xf32> to vector<8x128xf32>
    %455 = math.tanh %454 : vector<8x128xf32>
    %456 = vector.extract_strided_slice %441 {offsets = [0, 384], sizes = [8, 128], strides = [1, 1]} : vector<8x512xf32> to vector<8x128xf32>
    %457 = arith.negf %456 : vector<8x128xf32>
    %458 = math.exp %457 : vector<8x128xf32>
    %cst_144 = arith.constant 1.000000e+00 : f32
    %459 = vector.broadcast %cst_144 : f32 to vector<8x128xf32>
    %460 = arith.addf %459, %458 : vector<8x128xf32>
    %461 = arith.divf %459, %460 : vector<8x128xf32>
    %462 = arith.mulf %453, %430 : vector<8x128xf32>
    %463 = arith.mulf %447, %455 : vector<8x128xf32>
    %464 = arith.addf %462, %463 : vector<8x128xf32>
    %465 = math.tanh %464 : vector<8x128xf32>
    %466 = arith.mulf %461, %465 : vector<8x128xf32>
    %467 = arith.index_cast %c4_i32_138 : i32 to index
    %c0_145 = arith.constant 0 : index
    %c0_146 = arith.constant 0 : index
    %468 = vector.load %arg9[%467, %c0_145, %c0_146] : memref<8x8x128xf32, #tpu.memory_space<vmem>>, vector<1x8x128xf32>
    %469 = vector.shape_cast %468 : vector<1x8x128xf32> to vector<8x128xf32>
    %470 = vector.shape_cast %466 : vector<8x128xf32> to vector<1x8x128xf32>
    tpu.vector_store %arg9[%467, %c0_145, %c0_146], %470 {strides = array<i32>} : memref<8x8x128xf32, #tpu.memory_space<vmem>>, vector<1x8x128xf32>,
    %c5_i32_147 = arith.constant 5 : i32
    %471 = arith.index_cast %c5_i32_147 : i32 to index
    %c0_148 = arith.constant 0 : index
    %c0_149 = arith.constant 0 : index
    %472 = vector.load %arg10[%471, %c0_148, %c0_149] : memref<8x8x512xf32, #tpu.memory_space<vmem>>, vector<1x8x512xf32>
    %473 = vector.shape_cast %472 : vector<1x8x512xf32> to vector<8x512xf32>
    %cst_150 = arith.constant dense<0.000000e+00> : vector<8x512xf32>
    %474 = tpu.matmul %466, %298, %cst_150 {dimension_numbers = #tpu.dot_dimension_numbers<[1], [0], [0], [1], [0, 0, 1, 1], [], []>} : vector<8x128xf32>, vector<128x512xf32>, vector<8x512xf32> -> vector<8x512xf32>
    %475 = arith.addf %473, %474 : vector<8x512xf32>
    %476 = vector.extract_strided_slice %475 {offsets = [0, 0], sizes = [8, 128], strides = [1, 1]} : vector<8x512xf32> to vector<8x128xf32>
    %477 = arith.negf %476 : vector<8x128xf32>
    %478 = math.exp %477 : vector<8x128xf32>
    %cst_151 = arith.constant 1.000000e+00 : f32
    %479 = vector.broadcast %cst_151 : f32 to vector<8x128xf32>
    %480 = arith.addf %479, %478 : vector<8x128xf32>
    %481 = arith.divf %479, %480 : vector<8x128xf32>
    %482 = vector.extract_strided_slice %475 {offsets = [0, 128], sizes = [8, 128], strides = [1, 1]} : vector<8x512xf32> to vector<8x128xf32>
    %483 = arith.negf %482 : vector<8x128xf32>
    %484 = math.exp %483 : vector<8x128xf32>
    %cst_152 = arith.constant 1.000000e+00 : f32
    %485 = vector.broadcast %cst_152 : f32 to vector<8x128xf32>
    %486 = arith.addf %485, %484 : vector<8x128xf32>
    %487 = arith.divf %485, %486 : vector<8x128xf32>
    %488 = vector.extract_strided_slice %475 {offsets = [0, 256], sizes = [8, 128], strides = [1, 1]} : vector<8x512xf32> to vector<8x128xf32>
    %489 = math.tanh %488 : vector<8x128xf32>
    %490 = vector.extract_strided_slice %475 {offsets = [0, 384], sizes = [8, 128], strides = [1, 1]} : vector<8x512xf32> to vector<8x128xf32>
    %491 = arith.negf %490 : vector<8x128xf32>
    %492 = math.exp %491 : vector<8x128xf32>
    %cst_153 = arith.constant 1.000000e+00 : f32
    %493 = vector.broadcast %cst_153 : f32 to vector<8x128xf32>
    %494 = arith.addf %493, %492 : vector<8x128xf32>
    %495 = arith.divf %493, %494 : vector<8x128xf32>
    %496 = arith.mulf %487, %464 : vector<8x128xf32>
    %497 = arith.mulf %481, %489 : vector<8x128xf32>
    %498 = arith.addf %496, %497 : vector<8x128xf32>
    %499 = math.tanh %498 : vector<8x128xf32>
    %500 = arith.mulf %495, %499 : vector<8x128xf32>
    %501 = arith.index_cast %c5_i32_147 : i32 to index
    %c0_154 = arith.constant 0 : index
    %c0_155 = arith.constant 0 : index
    %502 = vector.load %arg9[%501, %c0_154, %c0_155] : memref<8x8x128xf32, #tpu.memory_space<vmem>>, vector<1x8x128xf32>
    %503 = vector.shape_cast %502 : vector<1x8x128xf32> to vector<8x128xf32>
    %504 = vector.shape_cast %500 : vector<8x128xf32> to vector<1x8x128xf32>
    tpu.vector_store %arg9[%501, %c0_154, %c0_155], %504 {strides = array<i32>} : memref<8x8x128xf32, #tpu.memory_space<vmem>>, vector<1x8x128xf32>,
    %c6_i32_156 = arith.constant 6 : i32
    %505 = arith.index_cast %c6_i32_156 : i32 to index
    %c0_157 = arith.constant 0 : index
    %c0_158 = arith.constant 0 : index
    %506 = vector.load %arg10[%505, %c0_157, %c0_158] : memref<8x8x512xf32, #tpu.memory_space<vmem>>, vector<1x8x512xf32>
    %507 = vector.shape_cast %506 : vector<1x8x512xf32> to vector<8x512xf32>
    %cst_159 = arith.constant dense<0.000000e+00> : vector<8x512xf32>
    %508 = tpu.matmul %500, %298, %cst_159 {dimension_numbers = #tpu.dot_dimension_numbers<[1], [0], [0], [1], [0, 0, 1, 1], [], []>} : vector<8x128xf32>, vector<128x512xf32>, vector<8x512xf32> -> vector<8x512xf32>
    %509 = arith.addf %507, %508 : vector<8x512xf32>
    %510 = vector.extract_strided_slice %509 {offsets = [0, 0], sizes = [8, 128], strides = [1, 1]} : vector<8x512xf32> to vector<8x128xf32>
    %511 = arith.negf %510 : vector<8x128xf32>
    %512 = math.exp %511 : vector<8x128xf32>
    %cst_160 = arith.constant 1.000000e+00 : f32
    %513 = vector.broadcast %cst_160 : f32 to vector<8x128xf32>
    %514 = arith.addf %513, %512 : vector<8x128xf32>
    %515 = arith.divf %513, %514 : vector<8x128xf32>
    %516 = vector.extract_strided_slice %509 {offsets = [0, 128], sizes = [8, 128], strides = [1, 1]} : vector<8x512xf32> to vector<8x128xf32>
    %517 = arith.negf %516 : vector<8x128xf32>
    %518 = math.exp %517 : vector<8x128xf32>
    %cst_161 = arith.constant 1.000000e+00 : f32
    %519 = vector.broadcast %cst_161 : f32 to vector<8x128xf32>
    %520 = arith.addf %519, %518 : vector<8x128xf32>
    %521 = arith.divf %519, %520 : vector<8x128xf32>
    %522 = vector.extract_strided_slice %509 {offsets = [0, 256], sizes = [8, 128], strides = [1, 1]} : vector<8x512xf32> to vector<8x128xf32>
    %523 = math.tanh %522 : vector<8x128xf32>
    %524 = vector.extract_strided_slice %509 {offsets = [0, 384], sizes = [8, 128], strides = [1, 1]} : vector<8x512xf32> to vector<8x128xf32>
    %525 = arith.negf %524 : vector<8x128xf32>
    %526 = math.exp %525 : vector<8x128xf32>
    %cst_162 = arith.constant 1.000000e+00 : f32
    %527 = vector.broadcast %cst_162 : f32 to vector<8x128xf32>
    %528 = arith.addf %527, %526 : vector<8x128xf32>
    %529 = arith.divf %527, %528 : vector<8x128xf32>
    %530 = arith.mulf %521, %498 : vector<8x128xf32>
    %531 = arith.mulf %515, %523 : vector<8x128xf32>
    %532 = arith.addf %530, %531 : vector<8x128xf32>
    %533 = math.tanh %532 : vector<8x128xf32>
    %534 = arith.mulf %529, %533 : vector<8x128xf32>
    %535 = arith.index_cast %c6_i32_156 : i32 to index
    %c0_163 = arith.constant 0 : index
    %c0_164 = arith.constant 0 : index
    %536 = vector.load %arg9[%535, %c0_163, %c0_164] : memref<8x8x128xf32, #tpu.memory_space<vmem>>, vector<1x8x128xf32>
    %537 = vector.shape_cast %536 : vector<1x8x128xf32> to vector<8x128xf32>
    %538 = vector.shape_cast %534 : vector<8x128xf32> to vector<1x8x128xf32>
    tpu.vector_store %arg9[%535, %c0_163, %c0_164], %538 {strides = array<i32>} : memref<8x8x128xf32, #tpu.memory_space<vmem>>, vector<1x8x128xf32>,
    %c7_i32_165 = arith.constant 7 : i32
    %539 = arith.index_cast %c7_i32_165 : i32 to index
    %c0_166 = arith.constant 0 : index
    %c0_167 = arith.constant 0 : index
    %540 = vector.load %arg10[%539, %c0_166, %c0_167] : memref<8x8x512xf32, #tpu.memory_space<vmem>>, vector<1x8x512xf32>
    %541 = vector.shape_cast %540 : vector<1x8x512xf32> to vector<8x512xf32>
    %cst_168 = arith.constant dense<0.000000e+00> : vector<8x512xf32>
    %542 = tpu.matmul %534, %298, %cst_168 {dimension_numbers = #tpu.dot_dimension_numbers<[1], [0], [0], [1], [0, 0, 1, 1], [], []>} : vector<8x128xf32>, vector<128x512xf32>, vector<8x512xf32> -> vector<8x512xf32>
    %543 = arith.addf %541, %542 : vector<8x512xf32>
    %544 = vector.extract_strided_slice %543 {offsets = [0, 0], sizes = [8, 128], strides = [1, 1]} : vector<8x512xf32> to vector<8x128xf32>
    %545 = arith.negf %544 : vector<8x128xf32>
    %546 = math.exp %545 : vector<8x128xf32>
    %cst_169 = arith.constant 1.000000e+00 : f32
    %547 = vector.broadcast %cst_169 : f32 to vector<8x128xf32>
    %548 = arith.addf %547, %546 : vector<8x128xf32>
    %549 = arith.divf %547, %548 : vector<8x128xf32>
    %550 = vector.extract_strided_slice %543 {offsets = [0, 128], sizes = [8, 128], strides = [1, 1]} : vector<8x512xf32> to vector<8x128xf32>
    %551 = arith.negf %550 : vector<8x128xf32>
    %552 = math.exp %551 : vector<8x128xf32>
    %cst_170 = arith.constant 1.000000e+00 : f32
    %553 = vector.broadcast %cst_170 : f32 to vector<8x128xf32>
    %554 = arith.addf %553, %552 : vector<8x128xf32>
    %555 = arith.divf %553, %554 : vector<8x128xf32>
    %556 = vector.extract_strided_slice %543 {offsets = [0, 256], sizes = [8, 128], strides = [1, 1]} : vector<8x512xf32> to vector<8x128xf32>
    %557 = math.tanh %556 : vector<8x128xf32>
    %558 = vector.extract_strided_slice %543 {offsets = [0, 384], sizes = [8, 128], strides = [1, 1]} : vector<8x512xf32> to vector<8x128xf32>
    %559 = arith.negf %558 : vector<8x128xf32>
    %560 = math.exp %559 : vector<8x128xf32>
    %cst_171 = arith.constant 1.000000e+00 : f32
    %561 = vector.broadcast %cst_171 : f32 to vector<8x128xf32>
    %562 = arith.addf %561, %560 : vector<8x128xf32>
    %563 = arith.divf %561, %562 : vector<8x128xf32>
    %564 = arith.mulf %555, %532 : vector<8x128xf32>
    %565 = arith.mulf %549, %557 : vector<8x128xf32>
    %566 = arith.addf %564, %565 : vector<8x128xf32>
    %567 = math.tanh %566 : vector<8x128xf32>
    %568 = arith.mulf %563, %567 : vector<8x128xf32>
    %569 = arith.index_cast %c7_i32_165 : i32 to index
    %c0_172 = arith.constant 0 : index
    %c0_173 = arith.constant 0 : index
    %570 = vector.load %arg9[%569, %c0_172, %c0_173] : memref<8x8x128xf32, #tpu.memory_space<vmem>>, vector<1x8x128xf32>
    %571 = vector.shape_cast %570 : vector<1x8x128xf32> to vector<8x128xf32>
    %572 = vector.shape_cast %568 : vector<8x128xf32> to vector<1x8x128xf32>
    tpu.vector_store %arg9[%569, %c0_172, %c0_173], %572 {strides = array<i32>} : memref<8x8x128xf32, #tpu.memory_space<vmem>>, vector<1x8x128xf32>,
    %c8_i32_174 = arith.constant 8 : i32
    %c0_175 = arith.constant 0 : index
    %c0_176 = arith.constant 0 : index
    %573 = vector.load %arg14[%c0_175, %c0_176] : memref<8x128xf32, #tpu.memory_space<vmem>>, vector<8x128xf32>
    tpu.vector_store %arg14[%c0_175, %c0_176], %568 {strides = array<i32>} : memref<8x128xf32, #tpu.memory_space<vmem>>, vector<8x128xf32>,
    %c0_177 = arith.constant 0 : index
    %c0_178 = arith.constant 0 : index
    %574 = vector.load %arg15[%c0_177, %c0_178] : memref<8x128xf32, #tpu.memory_space<vmem>>, vector<8x128xf32>
    tpu.vector_store %arg15[%c0_177, %c0_178], %566 {strides = array<i32>} : memref<8x128xf32, #tpu.memory_space<vmem>>, vector<8x128xf32>,
    return
  }
  func.func @transform_0(%arg0: i32, %arg1: i32) -> (i32, i32, i32) {
    %c0_i32 = arith.constant 0 : i32
    %c0_i32_0 = arith.constant 0 : i32
    return %arg1, %arg0, %c0_i32 : i32, i32, i32
  }
  func.func @transform_1(%arg0: i32, %arg1: i32) -> (i32, i32) {
    %c0_i32 = arith.constant 0 : i32
    %c0_i32_0 = arith.constant 0 : i32
    %c0_i32_1 = arith.constant 0 : i32
    return %c0_i32, %c0_i32_0 : i32, i32
  }
  func.func @transform_2(%arg0: i32, %arg1: i32) -> (i32, i32) {
    %c0_i32 = arith.constant 0 : i32
    %c0_i32_0 = arith.constant 0 : i32
    %c0_i32_1 = arith.constant 0 : i32
    return %c0_i32, %c0_i32_0 : i32, i32
  }
  func.func @transform_3(%arg0: i32, %arg1: i32) -> (i32, i32) {
    %c0_i32 = arith.constant 0 : i32
    %c0_i32_0 = arith.constant 0 : i32
    %c0_i32_1 = arith.constant 0 : i32
    return %c0_i32, %c0_i32_0 : i32, i32
  }
  func.func @transform_4(%arg0: i32, %arg1: i32) -> (i32, i32) {
    %c0_i32 = arith.constant 0 : i32
    %c0_i32_0 = arith.constant 0 : i32
    %c0_i32_1 = arith.constant 0 : i32
    return %c0_i32, %c0_i32_0 : i32, i32
  }
  func.func @transform_5(%arg0: i32, %arg1: i32) -> (i32, i32) {
    %c0_i32 = arith.constant 0 : i32
    %c0_i32_0 = arith.constant 0 : i32
    %c0_i32_1 = arith.constant 0 : i32
    return %c0_i32, %c0_i32_0 : i32, i32
  }
  func.func @transform_6(%arg0: i32, %arg1: i32) -> (i32, i32) {
    %c0_i32 = arith.constant 0 : i32
    %c0_i32_0 = arith.constant 0 : i32
    %c0_i32_1 = arith.constant 0 : i32
    return %c0_i32, %c0_i32_0 : i32, i32
  }
  func.func @transform_7(%arg0: i32, %arg1: i32) -> (i32, i32, i32) {
    %c0_i32 = arith.constant 0 : i32
    %c0_i32_0 = arith.constant 0 : i32
    return %arg1, %arg0, %c0_i32 : i32, i32, i32
  }
}

</mosaic_0001>

<bundles_post_ra>
// kernel: trajectory_lstm_forward.1
= control target key start
LH: loop header
LB: loop body
LE: loop exit
PB: predicated region body
PF: predicated region fallthrough
CT: control target
= control target key end

     0   :  { %12 = vsyncpa [#allocation9], 0  ;;  %s4191_s24 = smov 0   ;;  %s4193_s25 = smov 0   ;;  %s6906_s0 = inlined_call_operand.vmem [shape: f32[16,8,64], index: 0, kind: input, shape index: {}]   ;;  %s6907_s1 = inlined_call_operand.vmem [shape: f32[64,512], index: 1, kind: input, shape index: {}]   ;;  %s6908_s2 = inlined_call_operand.vmem [shape: f32[128,512], index: 2, kind: input, shape index: {}]   ;;  %s6909_s3 = inlined_call_operand.vmem [shape: f32[1,512], index: 3, kind: input, shape index: {}]   ;;  %s6910_s4 = inlined_call_operand.vmem [shape: f32[128,512], index: 4, kind: input, shape index: {}]   ;;  %s6911_s5 = inlined_call_operand.hbm [shape: f32[128,512], index: 5, kind: input, shape index: {}]   ;;  %s6912_s6 = inlined_call_operand.vmem [shape: f32[1,512], index: 6, kind: input, shape index: {}]   ;;  %s6913_s7 = inlined_call_operand.vmem [shape: f32[16,8,128], index: 7, kind: output, shape index: {}]  }
   0x1   :  { %s4195_s26 = smov 0  }
   0x2 LB: > { %s3566_s27 = sadd.s32 4294967295, %s4145_s26   ;;  %s27_s28 = sadd.s32 1, %s4141_s25  ;;  %s4145_s26 = sphi %s4195_s26, %s18_s26   ;;  %s4141_s25 = sphi %s4193_s25, %s7659_s25   ;;  %s4137_s24 = sphi %s4191_s24, %s7658_s24  }
   0x3   : > { %p28_p0 = scmp.ge.s32.totalorder %s27_s28, 2  ;;  %p3568_p1 = scmp.ge.s32.totalorder %s4145_s26, 1 }
   0x4   : > { %p217_p2 = scmp.lt.s32.totalorder %s4145_s26, 3  ;;  %p3675_p4 = scmp.eq.s32.totalorder %s3566_s27, 0 }
   0x5   : > { %s7661_s28 = smov (%p28_p0, %s27_s28), 0  ;;  %s240_s8 = sshll.u32 %s6911_s5, 4  ;;  %s241_s8 = int_to_ptr.hbm [resolvable:$true] %s240_s8 }
   0x6   : > { %p218_p3 = pnand %p3568_p1, %p217_p2  ;;  %s4147_s9 = smov [#allocation8]  }
   0x7   : > { %s242_s10 = sshll.u32 %s4147_s9, 4  ;;  %s4148_s11 = smov 512   ;;  %s243_s10 = int_to_ptr.vmem [resolvable:$true] %s242_s10 }
   0x8   : > { %p3671_p5 = pneg %p218_p3  ;;  %s4149_s12 = smov 32  }
   0x9   : > { %273 = sbr.rel (%p218_p3) target bundleno = 2838 (0xb16), region = 48 }
   0xa   : > { %p3672_p6 = pnand %p3675_p4, %p3671_p5 }
   0xc   : > { %3674 = dma.hbm_to_vmem [thread:$0]  (!%p3672_p6), %s241_s8, 8192, %s243_s10, [#allocation9], %s4148_s11, %s4148_s11, %s4149_s12  }
   0xe   : > { %4132 = dma.done.wait (%p3675_p4), [#allocation9], 8192  }
   0xf   : > { %4134 = vsyncadd (%p3675_p4), [#allocation9], 4294959104  ;;  %s3573_s13 = sshll.u32 %s4137_s24, 3  ;;  %p3577_p8 = scmp.ne.s32.totalorder %s4137_s24, 0 }
  0x10   : > { %p313_p7 = scmp.lt.s32.totalorder %s3573_s13, 15 }
  0x11   : > { %333 = sbr.rel (%p3577_p8) target bundleno = 27 (0x1b), region = 56 }
  0x12   : > { %s7663_s13 = smov (!%p313_p7, %s3573_s13), 15 }
  0x13   : > { %s3574_s14 = sshll.u32 %s7663_s13, 3 }
  0x14   : > { %s4219_s17 = scalar_lea.vmem %s6906_s0, %s3574_s14  ;;  %s4224_s20 = scalar_lea.vmem %s6913_s7, %s3574_s14 }
  0x16   : > { %v4150_v0 = vmov 0.0  }
  0x17   : > { %334 = vst [vmem:[#allocation4] sm:$0xff] %v4150_v0 }
  0x18   : > { %335 = vst [vmem:[#allocation5] sm:$0xff] %v4150_v0 }
  0x19   : > { %336 = vst [vmem:[#allocation6] sm:$0xff] %v4150_v0 }
  0x1a   : > { %337 = vst [vmem:[#allocation7] sm:$0xff] %v4150_v0 }
  0x1b PF: > { %v374_v1 = vld [vmem:[%s6907_s1 + $0xe0] sm:$0xff]  ;;  %v375_v2 = vld [vmem:[%s6907_s1 + $0xe8] sm:$0xff]  ;;  %v376_v3 = vld [vmem:[%s6907_s1 + $0xf0] sm:$0xff]  ;;  %vm388_vm0 = vcmask 523264  }
  0x1c   : > { %421 = vmatpush.msra.mxu0 %v374_v1  ;;  %462 = vmatpush.msra.mxu1 %v375_v2  ;;  %v377_v4 = vld [vmem:[%s6907_s1 + $0xf8] sm:$0xff]  ;;  %v370_v5 = vld [vmem:[%s6907_s1 + $0xc0] sm:$0xff]  ;;  %v371_v6 = vld [vmem:[%s6907_s1 + $0xc8] sm:$0xff] }
  0x1d   : > { %503 = vmatpush.msra.mxu2 %v376_v3  ;;  %544 = vmatpush.msra.mxu3 %v377_v4  ;;  %v372_v7 = vld [vmem:[%s6907_s1 + $0xd0] sm:$0xff]  ;;  %v373_v8 = vld [vmem:[%s6907_s1 + $0xd8] sm:$0xff]  ;;  %v366_v9 = vld [vmem:[%s6907_s1 + $0xa0] sm:$0xff] }
  0x1e   : > { %422 = vmatpush.msra.mxu0 %v370_v5  ;;  %463 = vmatpush.msra.mxu1 %v371_v6  ;;  %v367_v10 = vld [vmem:[%s6907_s1 + $0xa8] sm:$0xff]  ;;  %v368_v11 = vld [vmem:[%s6907_s1 + $0xb0] sm:$0xff]  ;;  %v369_v12 = vld [vmem:[%s6907_s1 + $0xb8] sm:$0xff] }
  0x1f   : > { %504 = vmatpush.msra.mxu2 %v372_v7  ;;  %545 = vmatpush.msra.mxu3 %v373_v8  ;;  %v362_v13 = vld [vmem:[%s6907_s1 + $0x80] sm:$0xff]  ;;  %v363_v14 = vld [vmem:[%s6907_s1 + $0x88] sm:$0xff]  ;;  %v364_v15 = vld [vmem:[%s6907_s1 + $0x90] sm:$0xff] }
  0x20   : > { %423 = vmatpush.msra.mxu0 %v366_v9  ;;  %464 = vmatpush.msra.mxu1 %v367_v10  ;;  %v365_v16 = vld [vmem:[%s6907_s1 + $0x98] sm:$0xff]  ;;  %v358_v17 = vld [vmem:[%s6907_s1 + $0x60] sm:$0xff]  ;;  %v359_v18 = vld [vmem:[%s6907_s1 + $0x68] sm:$0xff] }
  0x21   : > { %505 = vmatpush.msra.mxu2 %v368_v11  ;;  %546 = vmatpush.msra.mxu3 %v369_v12  ;;  %v360_v19 = vld [vmem:[%s6907_s1 + $0x70] sm:$0xff]  ;;  %v361_v20 = vld [vmem:[%s6907_s1 + $0x78] sm:$0xff]  ;;  %v354_v21 = vld [vmem:[%s6907_s1 + $0x40] sm:$0xff] }
  0x22   : > { %424 = vmatpush.msra.mxu0 %v362_v13  ;;  %465 = vmatpush.msra.mxu1 %v363_v14  ;;  %v355_v22 = vld [vmem:[%s6907_s1 + $0x48] sm:$0xff]  ;;  %v356_v23 = vld [vmem:[%s6907_s1 + $0x50] sm:$0xff]  ;;  %v357_v24 = vld [vmem:[%s6907_s1 + $0x58] sm:$0xff] }
  0x23   : > { %506 = vmatpush.msra.mxu2 %v364_v15  ;;  %547 = vmatpush.msra.mxu3 %v365_v16  ;;  %v350_v25 = vld [vmem:[%s6907_s1 + $0x20] sm:$0xff]  ;;  %v351_v26 = vld [vmem:[%s6907_s1 + $0x28] sm:$0xff]  ;;  %v352_v27 = vld [vmem:[%s6907_s1 + $0x30] sm:$0xff] }
  0x24   : > { %425 = vmatpush.msra.mxu0 %v358_v17  ;;  %466 = vmatpush.msra.mxu1 %v359_v18  ;;  %v353_v28 = vld [vmem:[%s6907_s1 + $0x38] sm:$0xff]  ;;  %v346_v29 = vld [vmem:[%s6907_s1] sm:$0xff]  ;;  %v347_v30 = vld [vmem:[%s6907_s1 + $0x8] sm:$0xff] }
  0x25   : > { %507 = vmatpush.msra.mxu2 %v360_v19  ;;  %548 = vmatpush.msra.mxu3 %v361_v20  ;;  %v348_v31 = vld [vmem:[%s6907_s1 + $0x10] sm:$0xff]  ;;  %v349_v32 = vld [vmem:[%s6907_s1 + $0x18] sm:$0xff]  ;;  %v338_v33 = vld [vmem:[%s4219_s17] sm:$0xff] }
  0x26   : > { %426 = vmatpush.msra.mxu0 %v354_v21  ;;  %467 = vmatpush.msra.mxu1 %v355_v22  ;;  %v4327_v34 = vld [vmem:[%s6908_s2 + $0x1e0] sm:$0xff]  ;;  %v4332_v35 = vld [vmem:[%s6908_s2 + $0x1e8] sm:$0xff]  ;;  %v4339_v36 = vld [vmem:[%s6908_s2 + $0x1f8] sm:$0xff] }
  0x27   : > { %508 = vmatpush.msra.mxu2 %v356_v23  ;;  %549 = vmatpush.msra.mxu3 %v357_v24  ;;  %v4344_v37 = vld [vmem:[%s6908_s2 + $0x1f0] sm:$0xff]  ;;  %v4351_v38 = vld [vmem:[%s6908_s2 + $0x1c0] sm:$0xff]  ;;  %v4356_v39 = vld [vmem:[%s6908_s2 + $0x1c8] sm:$0xff] }
  0x28   : > { %427 = vmatpush.msra.mxu0 %v350_v25  ;;  %468 = vmatpush.msra.mxu1 %v351_v26  ;;  %v4363_v40 = vld [vmem:[%s6908_s2 + $0x1d8] sm:$0xff]  ;;  %v4368_v41 = vld [vmem:[%s6908_s2 + $0x1d0] sm:$0xff]  ;;  %v4374_v42 = vld [vmem:[%s6908_s2 + $0x1a0] sm:$0xff] }
  0x29   : > { %509 = vmatpush.msra.mxu2 %v352_v27  ;;  %550 = vmatpush.msra.mxu3 %v353_v28  ;;  %v4379_v43 = vld [vmem:[%s6908_s2 + $0x1a8] sm:$0xff]  ;;  %v4387_v44 = vld [vmem:[%s6908_s2 + $0x1b8] sm:$0xff]  ;;  %v4392_v45 = vld [vmem:[%s6908_s2 + $0x1b0] sm:$0xff] }
  0x2a   : > { %428 = vmatpush.msra.mxu0 %v346_v29  ;;  %469 = vmatpush.msra.mxu1 %v347_v30  ;;  %v339_v46 = vld [vmem:[%s4219_s17 + $0x8] sm:$0xff]  ;;  %v4402_v47 = vld [vmem:[%s6908_s2 + $0x180] sm:$0xff]  ;;  %v4416_v49 = vld [vmem:[%s6908_s2 + $0x198] sm:$0xff] }
  0x2b   : > { %510 = vmatpush.msra.mxu2 %v348_v31  ;;  %551 = vmatpush.msra.mxu3 %v349_v32  ;;  %v4407_v48 = vld [vmem:[%s6908_s2 + $0x188] sm:$0xff]  ;;  %v4421_v50 = vld [vmem:[%s6908_s2 + $0x190] sm:$0xff]  ;;  %v4428_v51 = vld [vmem:[%s6908_s2 + $0x160] sm:$0xff] }
  0x2c   : > { %3578 = vmatmul.msk.f32.vlgmr.msra.gmra.mxu0 %vm388_vm0, %v338_v33  ;;  %3586 = vmatmul.msk.f32.vlgmr.msra.gmra.mxu1 %vm388_vm0, %v338_v33  ;;  %v4433_v52 = vld [vmem:[%s6908_s2 + $0x168] sm:$0xff]  ;;  %v4440_v53 = vld [vmem:[%s6908_s2 + $0x178] sm:$0xff]  ;;  %v4445_v54 = vld [vmem:[%s6908_s2 + $0x170] sm:$0xff] }
  0x2d   : > { %3594 = vmatmul.msk.f32.vlgmr.msra.gmra.mxu2 %vm388_vm0, %v338_v33  ;;  %3602 = vmatmul.msk.f32.vlgmr.msra.gmra.mxu3 %vm388_vm0, %v338_v33  ;;  %v4451_v55 = vld [vmem:[%s6908_s2 + $0x140] sm:$0xff]  ;;  %v4456_v56 = vld [vmem:[%s6908_s2 + $0x148] sm:$0xff]  ;;  %v4464_v57 = vld [vmem:[%s6908_s2 + $0x158] sm:$0xff] }
  0x2e   : > { %679 = vmatpush.msrb.mxu0 %v4327_v34  ;;  %699 = vmatpush.msrb.mxu1 %v4332_v35  ;;  %v4469_v58 = vld [vmem:[%s6908_s2 + $0x150] sm:$0xff]  ;;  %v4479_v60 = vld [vmem:[%s6908_s2 + $0x120] sm:$0xff]  ;;  %v4484_v61 = vld [vmem:[%s6908_s2 + $0x128] sm:$0xff] }
  0x2f   : > { %739 = vmatpush.msrb.mxu3 %v4339_v36  ;;  %719 = vmatpush.msrb.mxu2 %v4344_v37  ;;  %v340_v59 = vld [vmem:[%s4219_s17 + $0x10] sm:$0xff]  ;;  %v4493_v62 = vld [vmem:[%s6908_s2 + $0x138] sm:$0xff]  ;;  %v4505_v0 = vld [vmem:[%s6908_s2 + $0x100] sm:$0xff] }
  0x30   : > { %680 = vmatpush.msrb.mxu0 %v4351_v38  ;;  %700 = vmatpush.msrb.mxu1 %v4356_v39  ;;  %v4498_v63 = vld [vmem:[%s6908_s2 + $0x130] sm:$0xff]  ;;  %v4510_v1 = vld [vmem:[%s6908_s2 + $0x108] sm:$0xff]  ;;  %v4517_v2 = vld [vmem:[%s6908_s2 + $0x118] sm:$0xff] }
  0x31   : > { %740 = vmatpush.msrb.mxu3 %v4363_v40  ;;  %720 = vmatpush.msrb.mxu2 %v4368_v41  ;;  %v4522_v3 = vld [vmem:[%s6908_s2 + $0x110] sm:$0xff]  ;;  %v4528_v4 = vld [vmem:[%s6908_s2 + $0xe0] sm:$0xff]  ;;  %v4533_v5 = vld [vmem:[%s6908_s2 + $0xe8] sm:$0xff] }
  0x32   : > { %681 = vmatpush.msrb.mxu0 %v4374_v42  ;;  %701 = vmatpush.msrb.mxu1 %v4379_v43  ;;  %v4541_v6 = vld [vmem:[%s6908_s2 + $0xf8] sm:$0xff]  ;;  %v4546_v7 = vld [vmem:[%s6908_s2 + $0xf0] sm:$0xff]  ;;  %v4556_v9 = vld [vmem:[%s6908_s2 + $0xc0] sm:$0xff] }
  0x33   : > { %741 = vmatpush.msrb.mxu3 %v4387_v44  ;;  %721 = vmatpush.msrb.mxu2 %v4392_v45  ;;  %v341_v8 = vld [vmem:[%s4219_s17 + $0x18] sm:$0xff]  ;;  %v4561_v10 = vld [vmem:[%s6908_s2 + $0xc8] sm:$0xff]  ;;  %v4575_v12 = vld [vmem:[%s6908_s2 + $0xd0] sm:$0xff] }
  0x34   : > { %3579 = vmatmul.msk.f32.gmra.mxu0 %vm388_vm0, %v339_v46  ;;  %3587 = vmatmul.msk.f32.gmra.mxu1 %vm388_vm0, %v339_v46  ;;  %v4570_v11 = vld [vmem:[%s6908_s2 + $0xd8] sm:$0xff]  ;;  %7180 = vst [vmem:[#allocation12_spill] sm:$0xff] %v4575_v12  ;;  %v4582_v13 = vld [vmem:[%s6908_s2 + $0xa0] sm:$0xff]  ;;  %v4587_v14 = vld [vmem:[%s6908_s2 + $0xa8] sm:$0xff] }
  0x35   : > { %3595 = vmatmul.msk.f32.gmra.mxu2 %vm388_vm0, %v339_v46  ;;  %3603 = vmatmul.msk.f32.gmra.mxu3 %vm388_vm0, %v339_v46  ;;  %7179 = vst [vmem:[#allocation11_spill] sm:$0xff] %v4570_v11  ;;  %v4594_v15 = vld [vmem:[%s6908_s2 + $0xb8] sm:$0xff]  ;;  %v4599_v16 = vld [vmem:[%s6908_s2 + $0xb0] sm:$0xff]  ;;  %v4605_v17 = vld [vmem:[%s6908_s2 + $0x80] sm:$0xff] }
  0x36   : > { %682 = vmatpush.msrb.mxu0 %v4402_v47  ;;  %702 = vmatpush.msrb.mxu1 %v4407_v48  ;;  %7181 = vst [vmem:[#allocation13_spill] sm:$0xff] %v4582_v13  ;;  %v4610_v18 = vld [vmem:[%s6908_s2 + $0x88] sm:$0xff]  ;;  %v4618_v19 = vld [vmem:[%s6908_s2 + $0x98] sm:$0xff]  ;;  %v4623_v20 = vld [vmem:[%s6908_s2 + $0x90] sm:$0xff] }
  0x37   : > { %742 = vmatpush.msrb.mxu3 %v4416_v49  ;;  %722 = vmatpush.msrb.mxu2 %v4421_v50  ;;  %7182 = vst [vmem:[#allocation14_spill] sm:$0xff] %v4587_v14  ;;  %v342_v21 = vld [vmem:[%s4219_s17 + $0x20] sm:$0xff]  ;;  %v4638_v23 = vld [vmem:[%s6908_s2 + $0x68] sm:$0xff]  ;;  %v4647_v24 = vld [vmem:[%s6908_s2 + $0x78] sm:$0xff] }
  0x38   : > { %683 = vmatpush.msrb.mxu0 %v4428_v51  ;;  %703 = vmatpush.msrb.mxu1 %v4433_v52  ;;  %7183 = vst [vmem:[#allocation15_spill] sm:$0xff] %v4594_v15  ;;  %v4633_v22 = vld [vmem:[%s6908_s2 + $0x60] sm:$0xff]  ;;  %v4652_v25 = vld [vmem:[%s6908_s2 + $0x70] sm:$0xff]  ;;  %v4664_v27 = vld [vmem:[%s6908_s2 + $0x48] sm:$0xff] }
  0x39   : > { %743 = vmatpush.msrb.mxu3 %v4440_v53  ;;  %723 = vmatpush.msrb.mxu2 %v4445_v54  ;;  %7184 = vst [vmem:[#allocation16_spill] sm:$0xff] %v4599_v16  ;;  %v4659_v26 = vld [vmem:[%s6908_s2 + $0x40] sm:$0xff]  ;;  %v4671_v28 = vld [vmem:[%s6908_s2 + $0x58] sm:$0xff]  ;;  %v4676_v29 = vld [vmem:[%s6908_s2 + $0x50] sm:$0xff] }
  0x3a   : > { %684 = vmatpush.msrb.mxu0 %v4451_v55  ;;  %704 = vmatpush.msrb.mxu1 %v4456_v56  ;;  %7185 = vst [vmem:[#allocation17_spill] sm:$0xff] %v4605_v17  ;;  %v4682_v30 = vld [vmem:[%s6908_s2 + $0x20] sm:$0xff]  ;;  %v4687_v31 = vld [vmem:[%s6908_s2 + $0x28] sm:$0xff]  ;;  %v4695_v32 = vld [vmem:[%s6908_s2 + $0x30] sm:$0xff] }
  0x3b   : > { %744 = vmatpush.msrb.mxu3 %v4464_v57  ;;  %724 = vmatpush.msrb.mxu2 %v4469_v58  ;;  %7186 = vst [vmem:[#allocation18_spill] sm:$0xff] %v4610_v18  ;;  %v4700_v33 = vld [vmem:[%s6908_s2 + $0x38] sm:$0xff]  ;;  %v343_v46 = vld [vmem:[%s4219_s17 + $0x28] sm:$0xff] }
  0x3c   : > { %3580 = vmatmul.msk.f32.gmra.mxu0 %vm388_vm0, %v340_v59  ;;  %3588 = vmatmul.msk.f32.gmra.mxu1 %vm388_vm0, %v340_v59  ;;  %7187 = vst [vmem:[#allocation19_spill] sm:$0xff] %v4618_v19 }
  0x3d   : > { %3596 = vmatmul.msk.f32.gmra.mxu2 %vm388_vm0, %v340_v59  ;;  %3604 = vmatmul.msk.f32.gmra.mxu3 %vm388_vm0, %v340_v59  ;;  %7188 = vst [vmem:[#allocation20_spill] sm:$0xff] %v4623_v20  ;;  %v4710_v59 = vld [vmem:[%s6908_s2] sm:$0xff] }
  0x3e   : > { %685 = vmatpush.msrb.mxu0 %v4479_v60  ;;  %705 = vmatpush.msrb.mxu1 %v4484_v61  ;;  %7189 = vst [vmem:[#allocation21_spill] sm:$0xff] %v4633_v22 }
  0x3f   : > { %745 = vmatpush.msrb.mxu3 %v4493_v62  ;;  %725 = vmatpush.msrb.mxu2 %v4498_v63  ;;  %7190 = vst [vmem:[#allocation22_spill] sm:$0xff] %v4638_v23 }
  0x40   : > { %686 = vmatpush.msrb.mxu0 %v4505_v0  ;;  %706 = vmatpush.msrb.mxu1 %v4510_v1  ;;  %7191 = vst [vmem:[#allocation23_spill] sm:$0xff] %v4647_v24 }
  0x41   : > { %746 = vmatpush.msrb.mxu3 %v4517_v2  ;;  %726 = vmatpush.msrb.mxu2 %v4522_v3  ;;  %7192 = vst [vmem:[#allocation24_spill] sm:$0xff] %v4652_v25 }
  0x42   : > { %687 = vmatpush.msrb.mxu0 %v4528_v4  ;;  %707 = vmatpush.msrb.mxu1 %v4533_v5  ;;  %7193 = vst [vmem:[#allocation25_spill] sm:$0xff] %v4659_v26 }
  0x43   : > { %747 = vmatpush.msrb.mxu3 %v4541_v6  ;;  %727 = vmatpush.msrb.mxu2 %v4546_v7  ;;  %7194 = vst [vmem:[#allocation26_spill] sm:$0xff] %v4664_v27 }
  0x44   : > { %3581 = vmatmul.msk.f32.gmra.mxu0 %vm388_vm0, %v341_v8  ;;  %3589 = vmatmul.msk.f32.gmra.mxu1 %vm388_vm0, %v341_v8  ;;  %7195 = vst [vmem:[#allocation27_spill] sm:$0xff] %v4671_v28 }
  0x45   : > { %3597 = vmatmul.msk.f32.gmra.mxu2 %vm388_vm0, %v341_v8  ;;  %3605 = vmatmul.msk.f32.gmra.mxu3 %vm388_vm0, %v341_v8  ;;  %7196 = vst [vmem:[#allocation28_spill] sm:$0xff] %v4676_v29  ;;  %v4715_v8 = vld [vmem:[%s6908_s2 + $0x8] sm:$0xff] }
  0x46   : > { %688 = vmatpush.msrb.mxu0 %v4556_v9  ;;  %708 = vmatpush.msrb.mxu1 %v4561_v10  ;;  %7197 = vst [vmem:[#allocation29_spill] sm:$0xff] %v4682_v30 }
  0x47   : > { %748 = vmatpush.msrb.mxu3 %v4570_v11  ;;  %728 = vmatpush.msrb.mxu2 %v4575_v12  ;;  %7198 = vst [vmem:[#allocation30_spill] sm:$0xff] %v4687_v31 }
  0x48   : > { %689 = vmatpush.msrb.mxu0 %v4582_v13  ;;  %709 = vmatpush.msrb.mxu1 %v4587_v14  ;;  %7199 = vst [vmem:[#allocation31_spill] sm:$0xff] %v4695_v32 }
  0x49   : > { %749 = vmatpush.msrb.mxu3 %v4594_v15  ;;  %729 = vmatpush.msrb.mxu2 %v4599_v16  ;;  %7200 = vst [vmem:[#allocation32_spill] sm:$0xff] %v4700_v33 }
  0x4a   : > { %690 = vmatpush.msrb.mxu0 %v4605_v17  ;;  %710 = vmatpush.msrb.mxu1 %v4610_v18  ;;  %7201 = vst [vmem:[#allocation33_spill] sm:$0xff] %v4710_v59 }
  0x4b   : > { %750 = vmatpush.msrb.mxu3 %v4618_v19  ;;  %730 = vmatpush.msrb.mxu2 %v4623_v20  ;;  %7202 = vst [vmem:[#allocation34_spill] sm:$0xff] %v4715_v8 }
  0x4c   : > { %3582 = vmatmul.msk.f32.gmra.mxu0 %vm388_vm0, %v342_v21  ;;  %3590 = vmatmul.msk.f32.gmra.mxu1 %vm388_vm0, %v342_v21 }
  0x4d   : > { %3598 = vmatmul.msk.f32.gmra.mxu2 %vm388_vm0, %v342_v21  ;;  %3606 = vmatmul.msk.f32.gmra.mxu3 %vm388_vm0, %v342_v21  ;;  %v4724_v21 = vld [vmem:[%s6908_s2 + $0x10] sm:$0xff] }
  0x4e   : > { %691 = vmatpush.msrb.mxu0 %v4633_v22  ;;  %711 = vmatpush.msrb.mxu1 %v4638_v23  ;;  %7203 = vst [vmem:[#allocation35_spill] sm:$0xff] %v4724_v21 }
  0x4f   : > { %751 = vmatpush.msrb.mxu3 %v4647_v24  ;;  %731 = vmatpush.msrb.mxu2 %v4652_v25 }
  0x50   : > { %692 = vmatpush.msrb.mxu0 %v4659_v26  ;;  %712 = vmatpush.msrb.mxu1 %v4664_v27 }
  0x51   : > { %752 = vmatpush.msrb.mxu3 %v4671_v28  ;;  %732 = vmatpush.msrb.mxu2 %v4676_v29 }
  0x52   : > { %693 = vmatpush.msrb.mxu0 %v4682_v30  ;;  %713 = vmatpush.msrb.mxu1 %v4687_v31  ;;  %v4729_v31 = vld [vmem:[%s6908_s2 + $0x18] sm:$0xff] }
  0x53   : > { %733 = vmatpush.msrb.mxu2 %v4695_v32  ;;  %753 = vmatpush.msrb.mxu3 %v4700_v33  ;;  %7204 = vst [vmem:[#allocation36_spill] sm:$0xff] %v4729_v31  ;;  %v344_v33 = vld [vmem:[%s4219_s17 + $0x30] sm:$0xff] }
  0x54   : > { %3583 = vmatmul.msk.f32.gmra.mxu0 %vm388_vm0, %v343_v46  ;;  %3591 = vmatmul.msk.f32.gmra.mxu1 %vm388_vm0, %v343_v46 }
  0x55   : > { %3599 = vmatmul.msk.f32.gmra.mxu2 %vm388_vm0, %v343_v46  ;;  %3607 = vmatmul.msk.f32.gmra.mxu3 %vm388_vm0, %v343_v46  ;;  %v345_v46 = vld [vmem:[%s4219_s17 + $0x38] sm:$0xff] }
  0x56   : > { %694 = vmatpush.msrb.mxu0 %v4710_v59  ;;  %714 = vmatpush.msrb.mxu1 %v4715_v8 }
  0x57   : > { %734 = vmatpush.msrb.mxu2 %v4724_v21  ;;  %754 = vmatpush.msrb.mxu3 %v4729_v31 }
  0x58   : > { %832 = vmatpush.msra.mxu0 %v4327_v34  ;;  %852 = vmatpush.msra.mxu1 %v4332_v35 }
  0x59   : > { %872 = vmatpush.msra.mxu2 %v4344_v37  ;;  %892 = vmatpush.msra.mxu3 %v4339_v36 }
  0x5a   : > { %833 = vmatpush.msra.mxu0 %v4351_v38  ;;  %853 = vmatpush.msra.mxu1 %v4356_v39 }
  0x5b   : > { %873 = vmatpush.msra.mxu2 %v4368_v41  ;;  %893 = vmatpush.msra.mxu3 %v4363_v40 }
  0x5c   : > { %3584 = vmatmul.msk.f32.gmra.mxu0 %vm388_vm0, %v344_v33  ;;  %3592 = vmatmul.msk.f32.gmra.mxu1 %vm388_vm0, %v344_v33 }
  0x5d   : > { %3600 = vmatmul.msk.f32.gmra.mxu2 %vm388_vm0, %v344_v33  ;;  %3608 = vmatmul.msk.f32.gmra.mxu3 %vm388_vm0, %v344_v33  ;;  %v673_v33 = vld [vmem:[#allocation4] sm:$0xff] }
  0x5e   : > { %834 = vmatpush.msra.mxu0 %v4374_v42  ;;  %854 = vmatpush.msra.mxu1 %v4379_v43 }
  0x5f   : > { %874 = vmatpush.msra.mxu2 %v4392_v45  ;;  %894 = vmatpush.msra.mxu3 %v4387_v44 }
  0x60   : > { %835 = vmatpush.msra.mxu0 %v4402_v47  ;;  %855 = vmatpush.msra.mxu1 %v4407_v48 }
  0x61   : > { %875 = vmatpush.msra.mxu2 %v4421_v50  ;;  %895 = vmatpush.msra.mxu3 %v4416_v49 }
  0x62   : > { %836 = vmatpush.msra.mxu0 %v4428_v51  ;;  %856 = vmatpush.msra.mxu1 %v4433_v52 }
  0x63   : > { %876 = vmatpush.msra.mxu2 %v4445_v54  ;;  %896 = vmatpush.msra.mxu3 %v4440_v53 }
  0x64   : > { %3585 = vmatmul.msk.f32.gmra.mxu0 %vm388_vm0, %v345_v46  ;;  %3593 = vmatmul.msk.f32.gmra.mxu1 %vm388_vm0, %v345_v46 }
  0x65   : > { %3601 = vmatmul.msk.f32.gmra.mxu2 %vm388_vm0, %v345_v46  ;;  %3609 = vmatmul.msk.f32.gmra.mxu3 %vm388_vm0, %v345_v46  ;;  %v7205_v46 = vld [vmem:[#allocation30_spill] sm:$0xff] }
  0x66   : > { %837 = vmatpush.msra.mxu0 %v4451_v55  ;;  %857 = vmatpush.msra.mxu1 %v4456_v56 }
  0x67   : > { %877 = vmatpush.msra.mxu2 %v4469_v58  ;;  %897 = vmatpush.msra.mxu3 %v4464_v57 }
  0x68   : > { %838 = vmatpush.msra.mxu0 %v4479_v60  ;;  %858 = vmatpush.msra.mxu1 %v4484_v61 }
  0x69   : > { %878 = vmatpush.msra.mxu2 %v4498_v63  ;;  %898 = vmatpush.msra.mxu3 %v4493_v62 }
  0x6a   : > { %839 = vmatpush.msra.mxu0 %v4505_v0  ;;  %859 = vmatpush.msra.mxu1 %v4510_v1 }
  0x6b   : > { %879 = vmatpush.msra.mxu2 %v4522_v3  ;;  %899 = vmatpush.msra.mxu3 %v4517_v2 }
  0x6c   : > { %695 = vmatmul.f32.vlgmr.msrb.gmra.mxu0 %v673_v33  ;;  %715 = vmatmul.f32.vlgmr.msrb.gmra.mxu1 %v673_v33 }
  0x6d   : > { %735 = vmatmul.f32.vlgmr.msrb.gmra.mxu2 %v673_v33  ;;  %755 = vmatmul.f32.vlgmr.msrb.gmra.mxu3 %v673_v33  ;;  %v7206_v33 = vld [vmem:[#allocation32_spill] sm:$0xff] }
  0x6e   : > { %840 = vmatpush.msra.mxu0 %v4528_v4  ;;  %860 = vmatpush.msra.mxu1 %v4533_v5 }
  0x6f   : > { %880 = vmatpush.msra.mxu2 %v4546_v7  ;;  %900 = vmatpush.msra.mxu3 %v4541_v6 }
  0x70   : > { %841 = vmatpush.msra.mxu0 %v4556_v9  ;;  %861 = vmatpush.msra.mxu1 %v4561_v10 }
  0x71   : > { %881 = vmatpush.msra.mxu2 %v4575_v12  ;;  %901 = vmatpush.msra.mxu3 %v4570_v11 }
  0x72   : > { %842 = vmatpush.msra.mxu0 %v4582_v13  ;;  %862 = vmatpush.msra.mxu1 %v4587_v14 }
  0x73   : > { %882 = vmatpush.msra.mxu2 %v4599_v16  ;;  %902 = vmatpush.msra.mxu3 %v4594_v15 }
  0x74   : > { %843 = vmatpush.msra.mxu0 %v4605_v17  ;;  %863 = vmatpush.msra.mxu1 %v4610_v18 }
  0x75   : > { %883 = vmatpush.msra.mxu2 %v4623_v20  ;;  %903 = vmatpush.msra.mxu3 %v4618_v19 }
  0x76   : > { %844 = vmatpush.msra.mxu0 %v4633_v22  ;;  %864 = vmatpush.msra.mxu1 %v4638_v23 }
  0x77   : > { %884 = vmatpush.msra.mxu2 %v4652_v25  ;;  %904 = vmatpush.msra.mxu3 %v4647_v24 }
  0x78   : > { %845 = vmatpush.msra.mxu0 %v4659_v26  ;;  %865 = vmatpush.msra.mxu1 %v4664_v27 }
  0x79   : > { %885 = vmatpush.msra.mxu2 %v4676_v29  ;;  %905 = vmatpush.msra.mxu3 %v4671_v28 }
  0x7a   : > { %846 = vmatpush.msra.mxu0 %v4682_v30  ;;  %866 = vmatpush.msra.mxu1 %v7205_v46 }
  0x7b   : > { %886 = vmatpush.msra.mxu2 %v4695_v32  ;;  %906 = vmatpush.msra.mxu3 %v7206_v33 }
  0x7c   : > { %847 = vmatpush.msra.mxu0 %v4710_v59  ;;  %867 = vmatpush.msra.mxu1 %v4715_v8 }
  0x7d   : > { %887 = vmatpush.msra.mxu2 %v4724_v21  ;;  %907 = vmatpush.msra.mxu3 %v4729_v31 }
  0x7e   : > { %986 = vmatpush.msrb.mxu0 %v4327_v34  ;;  %1006 = vmatpush.msrb.mxu1 %v4332_v35 }
  0x7f   : > { %1026 = vmatpush.msrb.mxu2 %v4344_v37  ;;  %1046 = vmatpush.msrb.mxu3 %v4339_v36 }
  0x80   : > { %987 = vmatpush.msrb.mxu0 %v4351_v38  ;;  %1007 = vmatpush.msrb.mxu1 %v4356_v39 }
  0x81   : > { %1027 = vmatpush.msrb.mxu2 %v4368_v41  ;;  %1047 = vmatpush.msrb.mxu3 %v4363_v40 }
  0x82   : > { %988 = vmatpush.msrb.mxu0 %v4374_v42  ;;  %1008 = vmatpush.msrb.mxu1 %v4379_v43 }
  0x83   : > { %1028 = vmatpush.msrb.mxu2 %v4392_v45  ;;  %1048 = vmatpush.msrb.mxu3 %v4387_v44 }
  0x84   : > { %989 = vmatpush.msrb.mxu0 %v4402_v47  ;;  %1009 = vmatpush.msrb.mxu1 %v4407_v48 }
  0x85   : > { %1029 = vmatpush.msrb.mxu2 %v4421_v50  ;;  %1049 = vmatpush.msrb.mxu3 %v4416_v49 }
  0x86   : > { %990 = vmatpush.msrb.mxu0 %v4428_v51  ;;  %1010 = vmatpush.msrb.mxu1 %v4433_v52 }
  0x87   : > { %1030 = vmatpush.msrb.mxu2 %v4445_v54  ;;  %1050 = vmatpush.msrb.mxu3 %v4440_v53 }
  0x88   : > { %991 = vmatpush.msrb.mxu0 %v4451_v55  ;;  %1011 = vmatpush.msrb.mxu1 %v4456_v56 }
  0x89   : > { %1031 = vmatpush.msrb.mxu2 %v4469_v58  ;;  %1051 = vmatpush.msrb.mxu3 %v4464_v57 }
  0x8a   : > { %992 = vmatpush.msrb.mxu0 %v4479_v60  ;;  %1012 = vmatpush.msrb.mxu1 %v4484_v61 }
  0x8b   : > { %1032 = vmatpush.msrb.mxu2 %v4498_v63  ;;  %1052 = vmatpush.msrb.mxu3 %v4493_v62 }
  0x8c   : > { %993 = vmatpush.msrb.mxu0 %v4505_v0  ;;  %1013 = vmatpush.msrb.mxu1 %v4510_v1 }
  0x8d   : > { %1033 = vmatpush.msrb.mxu2 %v4522_v3  ;;  %1053 = vmatpush.msrb.mxu3 %v4517_v2 }
  0x8e   : > { %994 = vmatpush.msrb.mxu0 %v4528_v4  ;;  %1014 = vmatpush.msrb.mxu1 %v4533_v5 }
  0x8f   : > { %1034 = vmatpush.msrb.mxu2 %v4546_v7  ;;  %1054 = vmatpush.msrb.mxu3 %v4541_v6 }
  0x90   : > { %995 = vmatpush.msrb.mxu0 %v4556_v9  ;;  %1015 = vmatpush.msrb.mxu1 %v4561_v10 }
  0x91   : > { %1035 = vmatpush.msrb.mxu2 %v4575_v12  ;;  %1055 = vmatpush.msrb.mxu3 %v4570_v11 }
  0x92   : > { %996 = vmatpush.msrb.mxu0 %v4582_v13  ;;  %1016 = vmatpush.msrb.mxu1 %v4587_v14 }
  0x93   : > { %1036 = vmatpush.msrb.mxu2 %v4599_v16  ;;  %1056 = vmatpush.msrb.mxu3 %v4594_v15 }
  0x94   : > { %997 = vmatpush.msrb.mxu0 %v4605_v17  ;;  %1017 = vmatpush.msrb.mxu1 %v4610_v18 }
  0x95   : > { %1037 = vmatpush.msrb.mxu2 %v4623_v20  ;;  %1057 = vmatpush.msrb.mxu3 %v4618_v19 }
  0x96   : > { %998 = vmatpush.msrb.mxu0 %v4633_v22  ;;  %1018 = vmatpush.msrb.mxu1 %v4638_v23 }
  0x97   : > { %1038 = vmatpush.msrb.mxu2 %v4652_v25  ;;  %1058 = vmatpush.msrb.mxu3 %v4647_v24 }
  0x98   : > { %999 = vmatpush.msrb.mxu0 %v4659_v26  ;;  %1019 = vmatpush.msrb.mxu1 %v4664_v27 }
  0x99   : > { %1039 = vmatpush.msrb.mxu2 %v4676_v29  ;;  %1059 = vmatpush.msrb.mxu3 %v4671_v28 }
  0x9a   : > { %1000 = vmatpush.msrb.mxu0 %v4682_v30  ;;  %1020 = vmatpush.msrb.mxu1 %v7205_v46 }
  0x9b   : > { %1040 = vmatpush.msrb.mxu2 %v4695_v32  ;;  %1060 = vmatpush.msrb.mxu3 %v7206_v33 }
  0x9c   : > { %1001 = vmatpush.msrb.mxu0 %v4710_v59  ;;  %1021 = vmatpush.msrb.mxu1 %v4715_v8 }
  0x9d   : > { %1041 = vmatpush.msrb.mxu2 %v4724_v21  ;;  %1061 = vmatpush.msrb.mxu3 %v4729_v31 }
  0xa9   : > { %v430_v27 = vpop.f32.mrf.mxu0  ;;  %v471_v29 = vpop.f32.mrf.mxu1 }
  0xb0   : > { %v512_v26 = vpop.f32.mrf.mxu2  ;;  %v553_v28 = vpop.f32.mrf.mxu3 }
  0xb1   : > { %v4875_v24 = vpop.f32.mrf.mxu0  ;;  %v4877_v30 = vpop.f32.mrf.mxu1 }
  0xb2   : > { %7207 = vst [vmem:[#allocation37_spill] sm:$0xff] %v4875_v24 }
  0xb3   : > { %7208 = vst [vmem:[#allocation38_spill] sm:$0xff] %v4877_v30 }
  0xb8   : > { %v4879_v46 = vpop.f32.mrf.mxu2  ;;  %v4881_v32 = vpop.f32.mrf.mxu3 }
  0xb9   : > { %7209 = vst [vmem:[#allocation39_spill] sm:$0xff] %v4879_v46  ;;  %v4883_v33 = vpop.f32.mrf.mxu0  ;;  %v4885_v59 = vpop.f32.mrf.mxu1 }
  0xba   : > { %7210 = vst [vmem:[#allocation40_spill] sm:$0xff] %v4881_v32 }
  0xbb   : > { %7211 = vst [vmem:[#allocation41_spill] sm:$0xff] %v4883_v33 }
  0xbc   : > { %7212 = vst [vmem:[#allocation42_spill] sm:$0xff] %v4885_v59 }
  0xc0   : > { %v4887_v8 = vpop.f32.mrf.mxu2  ;;  %v4889_v21 = vpop.f32.mrf.mxu3 }
  0xc1   : > { %7213 = vst [vmem:[#allocation43_spill] sm:$0xff] %v4887_v8  ;;  %v4891_v31 = vpop.f32.mrf.mxu0  ;;  %v4893_v25 = vpop.f32.mrf.mxu1 }
  0xc2   : > { %7214 = vst [vmem:[#allocation44_spill] sm:$0xff] %v4889_v21 }
  0xc3   : > { %7215 = vst [vmem:[#allocation45_spill] sm:$0xff] %v4891_v31 }
  0xc4   : > { %7216 = vst [vmem:[#allocation46_spill] sm:$0xff] %v4893_v25 }
  0xc8   : > { %v4895_v23 = vpop.f32.mrf.mxu2  ;;  %v4897_v24 = vpop.f32.mrf.mxu3 }
  0xc9   : > { %7217 = vst [vmem:[#allocation47_spill] sm:$0xff] %v4895_v23  ;;  %v4899_v30 = vpop.f32.mrf.mxu0  ;;  %v4901_v46 = vpop.f32.mrf.mxu1 }
  0xca   : > { %7218 = vst [vmem:[#allocation48_spill] sm:$0xff] %v4897_v24 }
  0xcb   : > { %7219 = vst [vmem:[#allocation49_spill] sm:$0xff] %v4899_v30 }
  0xcc   : > { %7220 = vst [vmem:[#allocation50_spill] sm:$0xff] %v4901_v46 }
  0xd0   : > { %v4903_v32 = vpop.f32.mrf.mxu3  ;;  %v4909_v8 = vpop.f32.mrf.mxu2 }
  0xd1   : > { %7221 = vst [vmem:[#allocation51_spill] sm:$0xff] %v4903_v32  ;;  %v4905_v33 = vpop.f32.mrf.mxu0  ;;  %v4907_v59 = vpop.f32.mrf.mxu1  ;;  %v378_v32 = vld [vmem:[%s6909_s3] sm:$0xf] }
  0xd2   : > { %7222 = vst [vmem:[#allocation52_spill] sm:$0xff] %v4905_v33  ;;  %v4938_v20 = vperm.slane %v378_v32, 3 }
  0xd3   : > { %7223 = vst [vmem:[#allocation53_spill] sm:$0xff] %v4907_v59  ;;  %v4928_v59 = vperm.slane %v378_v32, 0 }
  0xd4   : > { %7224 = vst [vmem:[#allocation54_spill] sm:$0xff] %v4909_v8  ;;  %v4930_v8 = vperm.slane %v378_v32, 1  ;;  %v554_v18 = vadd.f32 %v553_v28, %v4938_v20 }
  0xd5   : > { %7232 = vst [vmem:[#allocation62_spill] sm:$0xff] %v4928_v59 }
  0xd6   : > { %7233 = vst [vmem:[#allocation63_spill] sm:$0xff] %v4930_v8 }
  0xd7   : > { %7236 = vst [vmem:[#allocation66_spill] sm:$0xff] %v4938_v20 }
  0xd8   : > { %v4911_v21 = vpop.f32.mrf.mxu3  ;;  %v4917_v23 = vpop.f32.mrf.mxu2 }
  0xd9   : > { %7225 = vst [vmem:[#allocation55_spill] sm:$0xff] %v4911_v21  ;;  %v4913_v31 = vpop.f32.mrf.mxu0  ;;  %v4915_v25 = vpop.f32.mrf.mxu1 }
  0xda   : > { %7226 = vst [vmem:[#allocation56_spill] sm:$0xff] %v4913_v31  ;;  %v472_v31 = vadd.f32 %v471_v29, %v4930_v8 }
  0xdb   : > { %7227 = vst [vmem:[#allocation57_spill] sm:$0xff] %v4915_v25  ;;  %v431_v25 = vadd.f32 %v430_v27, %v4928_v59 }
  0xdc   : > { %7228 = vst [vmem:[#allocation58_spill] sm:$0xff] %v4917_v23 }
  0xe0   : > { %v4919_v24 = vpop.f32.mrf.mxu3  ;;  %v4932_v21 = vpop.f32.mrf.mxu2 }
  0xe1   : > { %7229 = vst [vmem:[#allocation59_spill] sm:$0xff] %v4919_v24  ;;  %v4924_v46 = vpop.f32.mrf.mxu0  ;;  %v4926_v33 = vpop.f32.mrf.mxu1 }
  0xe2   : > { %7230 = vst [vmem:[#allocation60_spill] sm:$0xff] %v4924_v46 }
  0xe3   : > { %7231 = vst [vmem:[#allocation61_spill] sm:$0xff] %v4926_v33 }
  0xe4   : > { %7234 = vst [vmem:[#allocation64_spill] sm:$0xff] %v4932_v21 }
  0xe8   : > { %v4936_v23 = vpop.f32.mrf.mxu3  ;;  %v4941_v17 = vpop.f32.mrf.mxu2 }
  0xe9   : > { %7235 = vst [vmem:[#allocation65_spill] sm:$0xff] %v4936_v23  ;;  %v696_v24 = vpop.f32.mrf.mxu0  ;;  %v716_v30 = vpop.f32.mrf.mxu1 }
  0xea   : > { %v759_v22 = vadd.f32 %v696_v24, %v431_v25  ;;  %v760_v19 = vadd.f32 %v716_v30, %v472_v31  ;;  %7237 = vst [vmem:[#allocation67_spill] sm:$0xff] %v4941_v17  ;;  %v4943_v24 = vperm.slane %v378_v32, 2 }
  0xec   : > { %v3610_v46 = vmul.f32 -1.442695, %v759_v22  ;;  %v3611_v33 = vmul.f32 -1.442695, %v760_v19  ;;  %7238 = vst [vmem:[#allocation68_spill] sm:$0xff] %v4943_v24  ;;  %v513_v25 = vadd.f32 %v512_v26, %v4943_v24 }
  0xee   : > { %3705 = vpow2.f32 %v3610_v46 }
  0xef   : > { %3707 = vpow2.f32 %v3611_v33 }
  0xf0   : > { %v756_v21 = vpop.f32.mrf.mxu3  ;;  %v736_v22 = vpop.f32.mrf.mxu2 }
  0xf1   : > { %v762_v27 = vadd.f32 %v756_v21, %v554_v18  ;;  %v761_v31 = vadd.f32 %v736_v22, %v513_v25 }
  0xf3   : > { %v3612_v59 = vmul.f32 -1.442695, %v762_v27 }
  0xf4   : > { %v3706_v29 = vpop.eup %3705 }
  0xf5   : > { %v3708_v8 = vpop.eup %3707  ;;  %v766_v23 = vadd.f32 1.0, %v3706_v29  ;;  %3709 = vpow2.f32 %v3612_v59 }
  0xf6   : > { %v785_v15 = vadd.f32 1.0, %v3708_v8 }
  0xf7   : > { %3711 = vrcp.f32 %v766_v23  ;;  %v778_v29 = vand.u32 2147483648, %v766_v23  ;;  %v776_v8 = vand.u32 2147483647, %v766_v23  ;;  %vm772_vm3 = vweird.f32 %v766_v23 }
  0xf8   : > { %3713 = vrcp.f32 %v785_v15  ;;  %v797_v59 = vand.u32 2147483648, %v785_v15  ;;  %v795_v20 = vand.u32 2147483647, %v785_v15  ;;  %vm791_vm4 = vweird.f32 %v785_v15 }
  0xf9   : > { %v779_v22 = vor.u32 1.1754944e-38, %v778_v29  ;;  %vm777_vm7 = vcmp.eq.f32.partialorder %v776_v8, 8.507059e+37 }
  0xfa   : > { %vm796_vm8 = vcmp.eq.f32.partialorder %v795_v20, 8.507059e+37 }
  0xfb   : > { %v3710_v19 = vpop.eup %3709 }
  0xfc   : > { %v805_v28 = vadd.f32 1.0, %v3710_v19 }
  0xfd   : > { %v3712_v30 = vpop.eup %3711 }
  0xfe   : > { %v3714_v46 = vpop.eup %3713  ;;  %v768_v33 = vmul.f32 %v3712_v30, %v766_v23  ;;  %3715 = vrcp.f32 %v805_v28  ;;  %vm773_vm1 = vweird.f32 %v3712_v30  ;;  %vm811_vm10 = vweird.f32 %v805_v28 }
  0xff   : > { %v787_v18 = vmul.f32 %v3714_v46, %v785_v15  ;;  %3717 = vtanh.f32 %v761_v31  ;;  %vm792_vm2 = vweird.f32 %v3714_v46  ;;  %vm774_vm5 = vmor %vm772_vm3, %vm773_vm1  ;;  %v815_v29 = vand.u32 2147483647, %v805_v28 }
 0x100   : > { %v769_v21 = vsub.f32 1.0, %v768_v33  ;;  %vm793_vm6 = vmor %vm791_vm4, %vm792_vm2  ;;  %v798_v33 = vor.u32 1.1754944e-38, %v797_v59 }
 0x101   : > { %v788_v27 = vsub.f32 1.0, %v787_v18  ;;  %v674_v18 = vld [vmem:[#allocation5] sm:$0xff]  ;;  %vm816_vm12 = vcmp.eq.f32.partialorder %v815_v29, 8.507059e+37 }
 0x102   : > { %v770_v32 = vmul.f32 %v3712_v30, %v769_v21 }
 0x103   : > { %v789_v17 = vmul.f32 %v3714_v46, %v788_v27 }
 0x104   : > { %v3716_v16 = vpop.eup %3715  ;;  %v771_v26 = vadd.f32 %v3712_v30, %v770_v32 }
 0x105   : > { %v790_v19 = vadd.f32 %v3714_v46, %v789_v17  ;;  %v807_v25 = vmul.f32 %v3716_v16, %v805_v28  ;;  %v3718_v31 = vpop.eup %3717  ;;  %vm812_vm9 = vweird.f32 %v3716_v16  ;;  %v817_v17 = vand.u32 2147483648, %v805_v28 }
 0x106   : > { %v775_v24 = vsel %vm774_vm5, %v3712_v30, %v771_v26  ;;  %vm813_vm11 = vmor %vm811_vm10, %vm812_vm9 }
 0x107   : > { %v780_v21 = vsel %vm777_vm7, %v779_v22, %v775_v24  ;;  %v794_v14 = vsel %vm793_vm6, %v3714_v46, %v790_v19  ;;  %v808_v27 = vsub.f32 1.0, %v807_v25  ;;  %v818_v59 = vor.u32 1.1754944e-38, %v817_v17 }
 0x108   : > { %v799_v13 = vsel %vm796_vm8, %v798_v33, %v794_v14  ;;  %v822_v11 = vmul.f32 %v3718_v31, %v780_v21  ;;  %v7273_v31 = vld [vmem:[#allocation39_spill] sm:$0xff] }
 0x109   : > { %v821_v12 = vmul.f32 %v799_v13, %v674_v18  ;;  %v809_v32 = vmul.f32 %v3716_v16, %v808_v27  ;;  %v7272_v18 = vld [vmem:[#allocation68_spill] sm:$0xff] }
 0x10a   : > { %v516_v21 = vadd.f32 %v7273_v31, %v7272_v18 }
 0x10b   : > { %v4946_v23 = vadd.f32 %v822_v11, %v821_v12  ;;  %v810_v15 = vadd.f32 %v3716_v16, %v809_v32  ;;  %v7270_v11 = vld [vmem:[#allocation66_spill] sm:$0xff]  ;;  %v7271_v12 = vld [vmem:[#allocation40_spill] sm:$0xff] }
 0x10c   : > { %v557_v13 = vadd.f32 %v7271_v12, %v7270_v11 }
 0x10d   : > { %3719 = vtanh.f32 %v4946_v23  ;;  %v814_v30 = vsel %vm813_vm11, %v3716_v16, %v810_v15 }
 0x10e   : > { %v819_v20 = vsel %vm816_vm12, %v818_v59, %v814_v30 }
 0x113   : > { %v3720_v24 = vpop.eup %3719 }
 0x114   : > { %v4949_v46 = vmul.f32 %v3720_v24, %v819_v20 }
 0x116   : > { %7239 = vst [vmem:[#allocation69_spill] sm:$0xff] %v4949_v46  ;;  %848 = vmatmul.f32.vlgmr.msra.gmra.mxu0 %v4949_v46  ;;  %868 = vmatmul.f32.vlgmr.msra.gmra.mxu1 %v4949_v46 }
 0x117   : > { %888 = vmatmul.f32.vlgmr.msra.gmra.mxu2 %v4949_v46  ;;  %908 = vmatmul.f32.vlgmr.msra.gmra.mxu3 %v4949_v46  ;;  %v5238_v46 = vld [vmem:[%s6908_s2 + $0xe8] sm:$0xff] }
 0x118   : > { %1140 = vmatpush.msra.mxu0 %v4327_v34  ;;  %1160 = vmatpush.msra.mxu1 %v4332_v35  ;;  %v7240_v34 = vld [vmem:[#allocation12_spill] sm:$0xff]  ;;  %v7241_v35 = vld [vmem:[#allocation11_spill] sm:$0xff] }
 0x119   : > { %1180 = vmatpush.msra.mxu2 %v4344_v37  ;;  %1200 = vmatpush.msra.mxu3 %v4339_v36  ;;  %v7242_v36 = vld [vmem:[#allocation13_spill] sm:$0xff]  ;;  %v7243_v37 = vld [vmem:[#allocation14_spill] sm:$0xff] }
 0x11a   : > { %1141 = vmatpush.msra.mxu0 %v4351_v38  ;;  %1161 = vmatpush.msra.mxu1 %v4356_v39  ;;  %v7244_v38 = vld [vmem:[#allocation16_spill] sm:$0xff]  ;;  %v7245_v39 = vld [vmem:[#allocation15_spill] sm:$0xff] }
 0x11b   : > { %1181 = vmatpush.msra.mxu2 %v4368_v41  ;;  %1201 = vmatpush.msra.mxu3 %v4363_v40  ;;  %v7246_v40 = vld [vmem:[#allocation17_spill] sm:$0xff]  ;;  %v7247_v41 = vld [vmem:[#allocation18_spill] sm:$0xff]  ;;  %7278 = vst [vmem:[#allocation16_spill] sm:$0xff] %v5238_v46 }
 0x11c   : > { %1142 = vmatpush.msra.mxu0 %v4374_v42  ;;  %1162 = vmatpush.msra.mxu1 %v4379_v43  ;;  %v7248_v42 = vld [vmem:[#allocation20_spill] sm:$0xff]  ;;  %v7249_v43 = vld [vmem:[#allocation19_spill] sm:$0xff] }
 0x11d   : > { %1182 = vmatpush.msra.mxu2 %v4392_v45  ;;  %1202 = vmatpush.msra.mxu3 %v4387_v44  ;;  %v7250_v44 = vld [vmem:[#allocation21_spill] sm:$0xff]  ;;  %v7251_v45 = vld [vmem:[#allocation22_spill] sm:$0xff] }
 0x11e   : > { %1143 = vmatpush.msra.mxu0 %v4402_v47  ;;  %1163 = vmatpush.msra.mxu1 %v4407_v48  ;;  %v7252_v47 = vld [vmem:[#allocation24_spill] sm:$0xff]  ;;  %v7253_v48 = vld [vmem:[#allocation23_spill] sm:$0xff] }
 0x11f   : > { %1183 = vmatpush.msra.mxu2 %v4421_v50  ;;  %1203 = vmatpush.msra.mxu3 %v4416_v49  ;;  %v7254_v49 = vld [vmem:[#allocation25_spill] sm:$0xff]  ;;  %v7255_v50 = vld [vmem:[#allocation26_spill] sm:$0xff] }
 0x120   : > { %1144 = vmatpush.msra.mxu0 %v4428_v51  ;;  %1164 = vmatpush.msra.mxu1 %v4433_v52  ;;  %v7256_v51 = vld [vmem:[#allocation28_spill] sm:$0xff]  ;;  %v7257_v52 = vld [vmem:[#allocation27_spill] sm:$0xff] }
 0x121   : > { %1184 = vmatpush.msra.mxu2 %v4445_v54  ;;  %1204 = vmatpush.msra.mxu3 %v4440_v53  ;;  %v7258_v53 = vld [vmem:[#allocation29_spill] sm:$0xff]  ;;  %v7259_v54 = vld [vmem:[#allocation30_spill] sm:$0xff] }
 0x122   : > { %1145 = vmatpush.msra.mxu0 %v4451_v55  ;;  %1165 = vmatpush.msra.mxu1 %v4456_v56  ;;  %v7260_v55 = vld [vmem:[#allocation31_spill] sm:$0xff]  ;;  %v7261_v56 = vld [vmem:[#allocation32_spill] sm:$0xff] }
 0x123   : > { %1185 = vmatpush.msra.mxu2 %v4469_v58  ;;  %1205 = vmatpush.msra.mxu3 %v4464_v57  ;;  %v7262_v57 = vld [vmem:[#allocation33_spill] sm:$0xff]  ;;  %v7263_v58 = vld [vmem:[#allocation34_spill] sm:$0xff] }
 0x124   : > { %1146 = vmatpush.msra.mxu0 %v4479_v60  ;;  %1166 = vmatpush.msra.mxu1 %v4484_v61  ;;  %v7264_v60 = vld [vmem:[#allocation35_spill] sm:$0xff]  ;;  %v7265_v61 = vld [vmem:[#allocation36_spill] sm:$0xff] }
 0x125   : > { %1186 = vmatpush.msra.mxu2 %v4498_v63  ;;  %1206 = vmatpush.msra.mxu3 %v4493_v62  ;;  %v7266_v62 = vld [vmem:[#allocation62_spill] sm:$0xff]  ;;  %v7267_v63 = vld [vmem:[#allocation37_spill] sm:$0xff] }
 0x126   : > { %1147 = vmatpush.msra.mxu0 %v4505_v0  ;;  %1167 = vmatpush.msra.mxu1 %v4510_v1  ;;  %v434_v0 = vadd.f32 %v7267_v63, %v7266_v62  ;;  %v7268_v1 = vld [vmem:[#allocation63_spill] sm:$0xff] }
 0x127   : > { %1187 = vmatpush.msra.mxu2 %v4522_v3  ;;  %1207 = vmatpush.msra.mxu3 %v4517_v2  ;;  %v7269_v2 = vld [vmem:[#allocation38_spill] sm:$0xff] }
 0x128   : > { %1148 = vmatpush.msra.mxu0 %v4528_v4  ;;  %1168 = vmatpush.msra.mxu1 %v4533_v5  ;;  %v475_v3 = vadd.f32 %v7269_v2, %v7268_v1 }
 0x129   : > { %1188 = vmatpush.msra.mxu2 %v4546_v7  ;;  %1208 = vmatpush.msra.mxu3 %v4541_v6 }
 0x12a   : > { %1149 = vmatpush.msra.mxu0 %v4556_v9  ;;  %1169 = vmatpush.msra.mxu1 %v4561_v10 }
 0x12b   : > { %1189 = vmatpush.msra.mxu2 %v7240_v34  ;;  %1209 = vmatpush.msra.mxu3 %v7241_v35 }
 0x12c   : > { %1150 = vmatpush.msra.mxu0 %v7242_v36  ;;  %1170 = vmatpush.msra.mxu1 %v7243_v37 }
 0x12d   : > { %1190 = vmatpush.msra.mxu2 %v7244_v38  ;;  %1210 = vmatpush.msra.mxu3 %v7245_v39 }
 0x12e   : > { %1151 = vmatpush.msra.mxu0 %v7246_v40  ;;  %1171 = vmatpush.msra.mxu1 %v7247_v41 }
 0x12f   : > { %1191 = vmatpush.msra.mxu2 %v7248_v42  ;;  %1211 = vmatpush.msra.mxu3 %v7249_v43 }
 0x130   : > { %1152 = vmatpush.msra.mxu0 %v7250_v44  ;;  %1172 = vmatpush.msra.mxu1 %v7251_v45 }
 0x131   : > { %1192 = vmatpush.msra.mxu2 %v7252_v47  ;;  %1212 = vmatpush.msra.mxu3 %v7253_v48 }
 0x132   : > { %1153 = vmatpush.msra.mxu0 %v7254_v49  ;;  %1173 = vmatpush.msra.mxu1 %v7255_v50 }
 0x133   : > { %1193 = vmatpush.msra.mxu2 %v7256_v51  ;;  %1213 = vmatpush.msra.mxu3 %v7257_v52 }
 0x134   : > { %1154 = vmatpush.msra.mxu0 %v7258_v53  ;;  %1174 = vmatpush.msra.mxu1 %v7259_v54 }
 0x135   : > { %1194 = vmatpush.msra.mxu2 %v7260_v55  ;;  %1214 = vmatpush.msra.mxu3 %v7261_v56 }
 0x136   : > { %1155 = vmatpush.msra.mxu0 %v7262_v57  ;;  %1175 = vmatpush.msra.mxu1 %v7263_v58 }
 0x137   : > { %1195 = vmatpush.msra.mxu2 %v7264_v60  ;;  %1215 = vmatpush.msra.mxu3 %v7265_v61 }
 0x193   : > { %v849_v4 = vpop.f32.mrf.mxu0  ;;  %v869_v5 = vpop.f32.mrf.mxu1 }
 0x194   : > { %v912_v6 = vadd.f32 %v849_v4, %v434_v0  ;;  %v913_v7 = vadd.f32 %v869_v5, %v475_v3 }
 0x196   : > { %v3613_v9 = vmul.f32 -1.442695, %v912_v6  ;;  %v3614_v10 = vmul.f32 -1.442695, %v913_v7 }
 0x198   : > { %3721 = vpow2.f32 %v3613_v9 }
 0x199   : > { %3723 = vpow2.f32 %v3614_v10 }
 0x19a   : > { %v909_v14 = vpop.f32.mrf.mxu3  ;;  %v889_v25 = vpop.f32.mrf.mxu2 }
 0x19b   : > { %v915_v16 = vadd.f32 %v909_v14, %v557_v13  ;;  %v914_v15 = vadd.f32 %v889_v25, %v516_v21 }
 0x19d   : > { %v3615_v28 = vmul.f32 -1.442695, %v915_v16 }
 0x19e   : > { %v3722_v8 = vpop.eup %3721 }
 0x19f   : > { %v3724_v26 = vpop.eup %3723  ;;  %v919_v22 = vadd.f32 1.0, %v3722_v8  ;;  %3725 = vpow2.f32 %v3615_v28 }
 0x1a0   : > { %v938_v19 = vadd.f32 1.0, %v3724_v26 }
 0x1a1   : > { %3727 = vrcp.f32 %v919_v22  ;;  %v931_v20 = vand.u32 2147483648, %v919_v22  ;;  %v929_v0 = vand.u32 2147483647, %v919_v22  ;;  %vm925_vm15 = vweird.f32 %v919_v22 }
 0x1a2   : > { %3729 = vrcp.f32 %v938_v19  ;;  %v950_v35 = vand.u32 2147483648, %v938_v19  ;;  %v948_v3 = vand.u32 2147483647, %v938_v19  ;;  %vm944_vm0 = vweird.f32 %v938_v19 }
 0x1a3   : > { %v932_v6 = vor.u32 1.1754944e-38, %v931_v20  ;;  %vm930_vm3 = vcmp.eq.f32.partialorder %v929_v0, 8.507059e+37  ;;  %v5064_v20 = vld [vmem:[%s6908_s2 + $0x1c0] sm:$0xff]  ;;  %v5082_v0 = vld [vmem:[%s6908_s2 + $0x1d8] sm:$0xff] }
 0x1a4   : > { %v951_v10 = vor.u32 1.1754944e-38, %v950_v35  ;;  %vm949_vm4 = vcmp.eq.f32.partialorder %v948_v3, 8.507059e+37  ;;  %v5070_v35 = vld [vmem:[%s6908_s2 + $0x1c8] sm:$0xff] }
 0x1a5   : > { %v3726_v33 = vpop.eup %3725  ;;  %v5094_v3 = vld [vmem:[%s6908_s2 + $0x1a8] sm:$0xff] }
 0x1a6   : > { %v958_v27 = vadd.f32 1.0, %v3726_v33 }
 0x1a7   : > { %v3728_v32 = vpop.eup %3727 }
 0x1a8   : > { %v3730_v17 = vpop.eup %3729  ;;  %v921_v29 = vmul.f32 %v3728_v32, %v919_v22  ;;  %3731 = vrcp.f32 %v958_v27  ;;  %vm926_vm13 = vweird.f32 %v3728_v32  ;;  %v970_v31 = vand.u32 2147483648, %v958_v27 }
 0x1a9   : > { %v940_v30 = vmul.f32 %v3730_v17, %v938_v19  ;;  %3733 = vtanh.f32 %v914_v15  ;;  %vm945_vm14 = vweird.f32 %v3730_v17  ;;  %vm927_vm1 = vmor %vm925_vm15, %vm926_vm13  ;;  %vm964_vm6 = vweird.f32 %v958_v27 }
 0x1aa   : > { %v922_v59 = vsub.f32 1.0, %v921_v29  ;;  %vm946_vm2 = vmor %vm944_vm0, %vm945_vm14  ;;  %v968_v21 = vand.u32 2147483647, %v958_v27  ;;  %v971_v15 = vor.u32 1.1754944e-38, %v970_v31  ;;  %v5196_v31 = vld [vmem:[%s6908_s2 + $0x130] sm:$0xff] }
 0x1ab   : > { %v941_v24 = vsub.f32 1.0, %v940_v30 }
 0x1ac   : > { %v923_v63 = vmul.f32 %v3728_v32, %v922_v59  ;;  %vm969_vm8 = vcmp.eq.f32.partialorder %v968_v21, 8.507059e+37  ;;  %v5052_v59 = vld [vmem:[%s6908_s2 + $0x1f0] sm:$0xff]  ;;  %v5202_v21 = vld [vmem:[%s6908_s2 + $0x138] sm:$0xff] }
 0x1ad   : > { %v942_v2 = vmul.f32 %v3730_v17, %v941_v24  ;;  %v5058_v24 = vld [vmem:[%s6908_s2 + $0x1f8] sm:$0xff] }
 0x1ae   : > { %v3732_v4 = vpop.eup %3731  ;;  %v924_v5 = vadd.f32 %v3728_v32, %v923_v63  ;;  %v5076_v63 = vld [vmem:[%s6908_s2 + $0x1d0] sm:$0xff] }
 0x1af   : > { %v943_v7 = vadd.f32 %v3730_v17, %v942_v2  ;;  %v960_v9 = vmul.f32 %v3732_v4, %v958_v27  ;;  %v3734_v13 = vpop.eup %3733  ;;  %vm965_vm5 = vweird.f32 %v3732_v4  ;;  %v5046_v27 = vld [vmem:[%s6908_s2 + $0x1e8] sm:$0xff]  ;;  %v5088_v2 = vld [vmem:[%s6908_s2 + $0x1a0] sm:$0xff] }
 0x1b0   : > { %v928_v12 = vsel %vm927_vm1, %v3728_v32, %v924_v5  ;;  %vm966_vm7 = vmor %vm964_vm6, %vm965_vm5  ;;  %v5106_v5 = vld [vmem:[%s6908_s2 + $0x1b8] sm:$0xff] }
 0x1b1   : > { %v933_v14 = vsel %vm930_vm3, %v932_v6, %v928_v12  ;;  %v947_v16 = vsel %vm946_vm2, %v3730_v17, %v943_v7  ;;  %v961_v28 = vsub.f32 1.0, %v960_v9  ;;  %v5112_v6 = vld [vmem:[%s6908_s2 + $0x180] sm:$0xff]  ;;  %v5118_v7 = vld [vmem:[%s6908_s2 + $0x188] sm:$0xff]  ;;  %v5124_v9 = vld [vmem:[%s6908_s2 + $0x190] sm:$0xff] }
 0x1b2   : > { %v952_v8 = vsel %vm949_vm4, %v951_v10, %v947_v16  ;;  %v975_v26 = vmul.f32 %v3734_v13, %v933_v14  ;;  %v5130_v10 = vld [vmem:[%s6908_s2 + $0x198] sm:$0xff]  ;;  %v5136_v12 = vld [vmem:[%s6908_s2 + $0x160] sm:$0xff]  ;;  %v5142_v13 = vld [vmem:[%s6908_s2 + $0x168] sm:$0xff] }
 0x1b3   : > { %v974_v25 = vmul.f32 %v952_v8, %v4946_v23  ;;  %v962_v33 = vmul.f32 %v3732_v4, %v961_v28  ;;  %v5040_v23 = vld [vmem:[%s6908_s2 + $0x1e0] sm:$0xff]  ;;  %v5148_v14 = vld [vmem:[%s6908_s2 + $0x170] sm:$0xff]  ;;  %v5154_v16 = vld [vmem:[%s6908_s2 + $0x178] sm:$0xff] }
 0x1b4   : > { %v5160_v28 = vld [vmem:[%s6908_s2 + $0x140] sm:$0xff]  ;;  %v5166_v8 = vld [vmem:[%s6908_s2 + $0x148] sm:$0xff] }
 0x1b5   : > { %v5028_v22 = vadd.f32 %v975_v26, %v974_v25  ;;  %v963_v19 = vadd.f32 %v3732_v4, %v962_v33  ;;  %v5172_v26 = vld [vmem:[%s6908_s2 + $0x150] sm:$0xff]  ;;  %v5178_v25 = vld [vmem:[%s6908_s2 + $0x158] sm:$0xff]  ;;  %v5184_v33 = vld [vmem:[%s6908_s2 + $0x120] sm:$0xff] }
 0x1b7   : > { %3735 = vtanh.f32 %v5028_v22  ;;  %v967_v32 = vsel %vm966_vm7, %v3732_v4, %v963_v19  ;;  %v5100_v4 = vld [vmem:[%s6908_s2 + $0x1b0] sm:$0xff]  ;;  %v5190_v19 = vld [vmem:[%s6908_s2 + $0x128] sm:$0xff] }
 0x1b8   : > { %v972_v29 = vsel %vm969_vm8, %v971_v15, %v967_v32  ;;  %v5208_v32 = vld [vmem:[%s6908_s2 + $0x100] sm:$0xff]  ;;  %v5214_v15 = vld [vmem:[%s6908_s2 + $0x108] sm:$0xff] }
 0x1bd   : > { %v3736_v17 = vpop.eup %3735 }
 0x1be   : > { %v5031_v30 = vmul.f32 %v3736_v17, %v972_v29  ;;  %v5220_v17 = vld [vmem:[%s6908_s2 + $0x110] sm:$0xff]  ;;  %v5226_v29 = vld [vmem:[%s6908_s2 + $0x118] sm:$0xff] }
 0x1bf   : > { %7275 = vst [vmem:[#allocation11_spill] sm:$0xff] %v5220_v17 }
 0x1c0   : > { %7274 = vst [vmem:[#allocation12_spill] sm:$0xff] %v5031_v30  ;;  %1002 = vmatmul.f32.vlgmr.msrb.gmra.mxu0 %v5031_v30  ;;  %1022 = vmatmul.f32.vlgmr.msrb.gmra.mxu1 %v5031_v30 }
 0x1c1   : > { %1042 = vmatmul.f32.vlgmr.msrb.gmra.mxu2 %v5031_v30  ;;  %1062 = vmatmul.f32.vlgmr.msrb.gmra.mxu3 %v5031_v30  ;;  %7276 = vst [vmem:[#allocation13_spill] sm:$0xff] %v5226_v29  ;;  %v5232_v30 = vld [vmem:[%s6908_s2 + $0xe0] sm:$0xff] }
 0x1c2   : > { %1294 = vmatpush.msrb.mxu0 %v5040_v23  ;;  %1314 = vmatpush.msrb.mxu1 %v5046_v27  ;;  %7277 = vst [vmem:[#allocation14_spill] sm:$0xff] %v5232_v30 }
 0x1c3   : > { %1334 = vmatpush.msrb.mxu2 %v5052_v59  ;;  %1354 = vmatpush.msrb.mxu3 %v5058_v24 }
 0x1c4   : > { %1295 = vmatpush.msrb.mxu0 %v5064_v20  ;;  %1315 = vmatpush.msrb.mxu1 %v5070_v35 }
 0x1c5   : > { %1335 = vmatpush.msrb.mxu2 %v5076_v63  ;;  %1355 = vmatpush.msrb.mxu3 %v5082_v0 }
 0x1c6   : > { %1296 = vmatpush.msrb.mxu0 %v5088_v2  ;;  %1316 = vmatpush.msrb.mxu1 %v5094_v3 }
 0x1c7   : > { %1336 = vmatpush.msrb.mxu2 %v5100_v4  ;;  %1356 = vmatpush.msrb.mxu3 %v5106_v5 }
 0x1c8   : > { %1297 = vmatpush.msrb.mxu0 %v5112_v6  ;;  %1317 = vmatpush.msrb.mxu1 %v5118_v7 }
 0x1c9   : > { %1337 = vmatpush.msrb.mxu2 %v5124_v9  ;;  %1357 = vmatpush.msrb.mxu3 %v5130_v10 }
 0x1ca   : > { %1298 = vmatpush.msrb.mxu0 %v5136_v12  ;;  %1318 = vmatpush.msrb.mxu1 %v5142_v13 }
 0x1cb   : > { %1338 = vmatpush.msrb.mxu2 %v5148_v14  ;;  %1358 = vmatpush.msrb.mxu3 %v5154_v16 }
 0x1cc   : > { %1299 = vmatpush.msrb.mxu0 %v5160_v28  ;;  %1319 = vmatpush.msrb.mxu1 %v5166_v8 }
 0x1cd   : > { %1339 = vmatpush.msrb.mxu2 %v5172_v26  ;;  %1359 = vmatpush.msrb.mxu3 %v5178_v25 }
 0x1ce   : > { %1300 = vmatpush.msrb.mxu0 %v5184_v33  ;;  %1320 = vmatpush.msrb.mxu1 %v5190_v19 }
 0x1cf   : > { %1340 = vmatpush.msrb.mxu2 %v5196_v31  ;;  %1360 = vmatpush.msrb.mxu3 %v5202_v21 }
 0x1d0   : > { %1301 = vmatpush.msrb.mxu0 %v5208_v32  ;;  %1321 = vmatpush.msrb.mxu1 %v5214_v15 }
 0x1d1   : > { %1341 = vmatpush.msrb.mxu2 %v5220_v17  ;;  %1361 = vmatpush.msrb.mxu3 %v5226_v29  ;;  %v5244_v17 = vld [vmem:[%s6908_s2 + $0xf0] sm:$0xff]  ;;  %v5250_v29 = vld [vmem:[%s6908_s2 + $0xf8] sm:$0xff] }
 0x1d2   : > { %1302 = vmatpush.msrb.mxu0 %v5232_v30  ;;  %1322 = vmatpush.msrb.mxu1 %v5238_v46  ;;  %7279 = vst [vmem:[#allocation15_spill] sm:$0xff] %v5250_v29  ;;  %v5256_v30 = vld [vmem:[%s6908_s2 + $0xc0] sm:$0xff]  ;;  %v5262_v46 = vld [vmem:[%s6908_s2 + $0xc8] sm:$0xff] }
 0x1d3   : > { %1342 = vmatpush.msrb.mxu2 %v5244_v17  ;;  %1362 = vmatpush.msrb.mxu3 %v5250_v29  ;;  %v5269_v29 = vld [vmem:[%s6908_s2 + $0xd8] sm:$0xff] }
 0x1d4   : > { %1303 = vmatpush.msrb.mxu0 %v5256_v30  ;;  %1323 = vmatpush.msrb.mxu1 %v5262_v46  ;;  %7280 = vst [vmem:[#allocation17_spill] sm:$0xff] %v5269_v29 }
 0x1d5   : > { %1343 = vmatpush.msrb.mxu2 %v7240_v34  ;;  %1363 = vmatpush.msrb.mxu3 %v5269_v29  ;;  %v7281_v34 = vld [vmem:[#allocation41_spill] sm:$0xff] }
 0x1d6   : > { %1304 = vmatpush.msrb.mxu0 %v7242_v36  ;;  %1324 = vmatpush.msrb.mxu1 %v7243_v37  ;;  %v437_v36 = vadd.f32 %v7281_v34, %v7266_v62  ;;  %v7282_v37 = vld [vmem:[#allocation42_spill] sm:$0xff] }
 0x1d7   : > { %1344 = vmatpush.msrb.mxu2 %v7244_v38  ;;  %1364 = vmatpush.msrb.mxu3 %v7245_v39  ;;  %v478_v38 = vadd.f32 %v7282_v37, %v7268_v1 }
 0x1d8   : > { %1305 = vmatpush.msrb.mxu0 %v7246_v40  ;;  %1325 = vmatpush.msrb.mxu1 %v7247_v41 }
 0x1d9   : > { %1345 = vmatpush.msrb.mxu2 %v7248_v42  ;;  %1365 = vmatpush.msrb.mxu3 %v7249_v43 }
 0x1da   : > { %1306 = vmatpush.msrb.mxu0 %v7250_v44  ;;  %1326 = vmatpush.msrb.mxu1 %v7251_v45  ;;  %v7283_v45 = vld [vmem:[#allocation44_spill] sm:$0xff] }
 0x1db   : > { %1346 = vmatpush.msrb.mxu2 %v7252_v47  ;;  %1366 = vmatpush.msrb.mxu3 %v7253_v48  ;;  %v560_v47 = vadd.f32 %v7283_v45, %v7270_v11 }
 0x1dc   : > { %1307 = vmatpush.msrb.mxu0 %v7254_v49  ;;  %1327 = vmatpush.msrb.mxu1 %v7255_v50 }
 0x1dd   : > { %1347 = vmatpush.msrb.mxu2 %v7256_v51  ;;  %1367 = vmatpush.msrb.mxu3 %v7257_v52 }
 0x1de   : > { %1308 = vmatpush.msrb.mxu0 %v7258_v53  ;;  %1328 = vmatpush.msrb.mxu1 %v7259_v54 }
 0x1df   : > { %1348 = vmatpush.msrb.mxu2 %v7260_v55  ;;  %1368 = vmatpush.msrb.mxu3 %v7261_v56 }
 0x1e0   : > { %1309 = vmatpush.msrb.mxu0 %v7262_v57  ;;  %1329 = vmatpush.msrb.mxu1 %v7263_v58  ;;  %v7284_v57 = vld [vmem:[#allocation43_spill] sm:$0xff] }
 0x1e1   : > { %1349 = vmatpush.msrb.mxu2 %v7264_v60  ;;  %1369 = vmatpush.msrb.mxu3 %v7265_v61  ;;  %v519_v58 = vadd.f32 %v7284_v57, %v7272_v18 }
 0x23d   : > { %v1003_v39 = vpop.f32.mrf.mxu0  ;;  %v1023_v40 = vpop.f32.mrf.mxu1 }
 0x23e   : > { %v1066_v41 = vadd.f32 %v1003_v39, %v437_v36  ;;  %v1067_v42 = vadd.f32 %v1023_v40, %v478_v38 }
 0x240   : > { %v3616_v43 = vmul.f32 -1.442695, %v1066_v41  ;;  %v3617_v44 = vmul.f32 -1.442695, %v1067_v42 }
 0x242   : > { %3737 = vpow2.f32 %v3616_v43 }
 0x243   : > { %3739 = vpow2.f32 %v3617_v44 }
 0x244   : > { %v1063_v48 = vpop.f32.mrf.mxu3  ;;  %v1043_v55 = vpop.f32.mrf.mxu2 }
 0x245   : > { %v1069_v49 = vadd.f32 %v1063_v48, %v560_v47  ;;  %v1068_v34 = vadd.f32 %v1043_v55, %v519_v58 }
 0x247   : > { %v3618_v50 = vmul.f32 -1.442695, %v1069_v49 }
 0x248   : > { %v3738_v51 = vpop.eup %3737 }
 0x249   : > { %v3740_v52 = vpop.eup %3739  ;;  %v1073_v53 = vadd.f32 1.0, %v3738_v51  ;;  %3741 = vpow2.f32 %v3618_v50 }
 0x24a   : > { %v1092_v54 = vadd.f32 1.0, %v3740_v52 }
 0x24b   : > { %3743 = vrcp.f32 %v1073_v53  ;;  %v1085_v41 = vand.u32 2147483648, %v1073_v53  ;;  %v1083_v44 = vand.u32 2147483647, %v1073_v53  ;;  %vm1079_vm11 = vweird.f32 %v1073_v53 }
 0x24c   : > { %3745 = vrcp.f32 %v1092_v54  ;;  %v1104_v42 = vand.u32 2147483648, %v1092_v54  ;;  %v1102_v47 = vand.u32 2147483647, %v1092_v54  ;;  %vm1098_vm12 = vweird.f32 %v1092_v54 }
 0x24d   : > { %v1086_v50 = vor.u32 1.1754944e-38, %v1085_v41  ;;  %vm1084_vm15 = vcmp.eq.f32.partialorder %v1083_v44, 8.507059e+37 }
 0x24e   : > { %v1105_v55 = vor.u32 1.1754944e-38, %v1104_v42  ;;  %vm1103_vm0 = vcmp.eq.f32.partialorder %v1102_v47, 8.507059e+37 }
 0x24f   : > { %v3742_v56 = vpop.eup %3741 }
 0x250   : > { %v1112_v60 = vadd.f32 1.0, %v3742_v56 }
 0x251   : > { %v3744_v61 = vpop.eup %3743 }
 0x252   : > { %v3746_v36 = vpop.eup %3745  ;;  %v1075_v37 = vmul.f32 %v3744_v61, %v1073_v53  ;;  %3747 = vrcp.f32 %v1112_v60  ;;  %vm1080_vm9 = vweird.f32 %v3744_v61  ;;  %v1124_v41 = vand.u32 2147483648, %v1112_v60 }
 0x253   : > { %v1094_v38 = vmul.f32 %v3746_v36, %v1092_v54  ;;  %3749 = vtanh.f32 %v1068_v34  ;;  %vm1099_vm10 = vweird.f32 %v3746_v36  ;;  %vm1081_vm13 = vmor %vm1079_vm11, %vm1080_vm9  ;;  %vm1118_vm2 = vweird.f32 %v1112_v60 }
 0x254   : > { %v1076_v39 = vsub.f32 1.0, %v1075_v37  ;;  %vm1100_vm14 = vmor %vm1098_vm12, %vm1099_vm10  ;;  %v1125_v44 = vor.u32 1.1754944e-38, %v1124_v41  ;;  %v5434_v41 = vld [vmem:[%s6908_s2 + $0x40] sm:$0xff] }
 0x255   : > { %v1095_v40 = vsub.f32 1.0, %v1094_v38  ;;  %7304 = vst [vmem:[#allocation32_spill] sm:$0xff] %v5434_v41 }
 0x256   : > { %v1077_v43 = vmul.f32 %v3744_v61, %v1076_v39 }
 0x257   : > { %v1096_v45 = vmul.f32 %v3746_v36, %v1095_v40 }
 0x258   : > { %v3748_v48 = vpop.eup %3747  ;;  %v1078_v49 = vadd.f32 %v3744_v61, %v1077_v43 }
 0x259   : > { %v1097_v51 = vadd.f32 %v3746_v36, %v1096_v45  ;;  %v1114_v52 = vmul.f32 %v3748_v48, %v1112_v60  ;;  %v3750_v57 = vpop.eup %3749  ;;  %vm1119_vm1 = vweird.f32 %v3748_v48 }
 0x25a   : > { %v1082_v56 = vsel %vm1081_vm13, %v3744_v61, %v1078_v49  ;;  %v1122_v61 = vand.u32 2147483647, %v1112_v60  ;;  %vm1120_vm3 = vmor %vm1118_vm2, %vm1119_vm1  ;;  %v7287_v60 = vld [vmem:[#allocation13_spill] sm:$0xff]  ;;  %v7289_v49 = vld [vmem:[#allocation16_spill] sm:$0xff] }
 0x25b   : > { %v1087_v58 = vsel %vm1084_vm15, %v1086_v50, %v1082_v56  ;;  %v1101_v34 = vsel %vm1100_vm14, %v3746_v36, %v1097_v51  ;;  %v1115_v37 = vsub.f32 1.0, %v1114_v52  ;;  %v7290_v50 = vld [vmem:[#allocation15_spill] sm:$0xff]  ;;  %v5355_v51 = vld [vmem:[%s6908_s2 + $0xd0] sm:$0xff] }
 0x25c   : > { %v1106_v38 = vsel %vm1103_vm0, %v1105_v55, %v1101_v34  ;;  %v1129_v39 = vmul.f32 %v3750_v57, %v1087_v58  ;;  %vm1123_vm4 = vcmp.eq.f32.partialorder %v1122_v61, 8.507059e+37  ;;  %7291 = vst [vmem:[#allocation20_spill] sm:$0xff] %v5355_v51  ;;  %v5362_v52 = vld [vmem:[%s6908_s2 + $0xa0] sm:$0xff]  ;;  %v5368_v55 = vld [vmem:[%s6908_s2 + $0xa8] sm:$0xff]  ;;  %v5374_v56 = vld [vmem:[%s6908_s2 + $0xb0] sm:$0xff] }
 0x25d   : > { %v1128_v40 = vmul.f32 %v1106_v38, %v5028_v22  ;;  %v1116_v43 = vmul.f32 %v3748_v48, %v1115_v37  ;;  %v7286_v22 = vld [vmem:[#allocation11_spill] sm:$0xff]  ;;  %7292 = vst [vmem:[#allocation19_spill] sm:$0xff] %v5362_v52  ;;  %v5380_v57 = vld [vmem:[%s6908_s2 + $0xb8] sm:$0xff]  ;;  %v5392_v34 = vld [vmem:[%s6908_s2 + $0x88] sm:$0xff] }
 0x25e   : > { %7293 = vst [vmem:[#allocation21_spill] sm:$0xff] %v5368_v55  ;;  %v5386_v58 = vld [vmem:[%s6908_s2 + $0x80] sm:$0xff]  ;;  %v5398_v37 = vld [vmem:[%s6908_s2 + $0x90] sm:$0xff]  ;;  %v5404_v38 = vld [vmem:[%s6908_s2 + $0x98] sm:$0xff] }
 0x25f   : > { %v5305_v53 = vadd.f32 %v1129_v39, %v1128_v40  ;;  %v1117_v54 = vadd.f32 %v3748_v48, %v1116_v43  ;;  %7294 = vst [vmem:[#allocation22_spill] sm:$0xff] %v5374_v56  ;;  %v5410_v39 = vld [vmem:[%s6908_s2 + $0x60] sm:$0xff]  ;;  %v5416_v40 = vld [vmem:[%s6908_s2 + $0x68] sm:$0xff]  ;;  %v5422_v43 = vld [vmem:[%s6908_s2 + $0x70] sm:$0xff] }
 0x260   : > { %7295 = vst [vmem:[#allocation24_spill] sm:$0xff] %v5380_v57  ;;  %v5440_v61 = vld [vmem:[%s6908_s2 + $0x48] sm:$0xff] }
 0x261   : > { %3751 = vtanh.f32 %v5305_v53  ;;  %v1121_v42 = vsel %vm1120_vm3, %v3748_v48, %v1117_v54  ;;  %v7288_v48 = vld [vmem:[#allocation14_spill] sm:$0xff]  ;;  %7296 = vst [vmem:[#allocation23_spill] sm:$0xff] %v5386_v58 }
 0x262   : > { %v1126_v45 = vsel %vm1123_vm4, %v1125_v44, %v1121_v42  ;;  %7297 = vst [vmem:[#allocation25_spill] sm:$0xff] %v5392_v34  ;;  %v5428_v54 = vld [vmem:[%s6908_s2 + $0x78] sm:$0xff]  ;;  %v5446_v42 = vld [vmem:[%s6908_s2 + $0x50] sm:$0xff] }
 0x263   : > { %7298 = vst [vmem:[#allocation26_spill] sm:$0xff] %v5398_v37  ;;  %v5452_v44 = vld [vmem:[%s6908_s2 + $0x58] sm:$0xff] }
 0x264   : > { %7299 = vst [vmem:[#allocation28_spill] sm:$0xff] %v5404_v38 }
 0x265   : > { %7300 = vst [vmem:[#allocation27_spill] sm:$0xff] %v5410_v39 }
 0x266   : > { %7301 = vst [vmem:[#allocation29_spill] sm:$0xff] %v5416_v40 }
 0x267   : > { %v3752_v36 = vpop.eup %3751  ;;  %7302 = vst [vmem:[#allocation30_spill] sm:$0xff] %v5422_v43 }
 0x268   : > { %v5308_v47 = vmul.f32 %v3752_v36, %v1126_v45  ;;  %7303 = vst [vmem:[#allocation31_spill] sm:$0xff] %v5428_v54  ;;  %v5458_v36 = vld [vmem:[%s6908_s2 + $0x20] sm:$0xff]  ;;  %v5464_v45 = vld [vmem:[%s6908_s2 + $0x28] sm:$0xff] }
 0x269   : > { %7305 = vst [vmem:[#allocation33_spill] sm:$0xff] %v5440_v61 }
 0x26a   : > { %7285 = vst [vmem:[#allocation18_spill] sm:$0xff] %v5308_v47  ;;  %1156 = vmatmul.f32.vlgmr.msra.gmra.mxu0 %v5308_v47  ;;  %1176 = vmatmul.f32.vlgmr.msra.gmra.mxu1 %v5308_v47 }
 0x26b   : > { %1196 = vmatmul.f32.vlgmr.msra.gmra.mxu2 %v5308_v47  ;;  %1216 = vmatmul.f32.vlgmr.msra.gmra.mxu3 %v5308_v47  ;;  %7306 = vst [vmem:[#allocation34_spill] sm:$0xff] %v5446_v42  ;;  %v5470_v47 = vld [vmem:[%s6908_s2 + $0x30] sm:$0xff] }
 0x26c   : > { %1448 = vmatpush.msra.mxu0 %v5040_v23  ;;  %1468 = vmatpush.msra.mxu1 %v5046_v27  ;;  %7307 = vst [vmem:[#allocation35_spill] sm:$0xff] %v5452_v44 }
 0x26d   : > { %1488 = vmatpush.msra.mxu2 %v5052_v59  ;;  %1508 = vmatpush.msra.mxu3 %v5058_v24  ;;  %7308 = vst [vmem:[#allocation36_spill] sm:$0xff] %v5458_v36 }
 0x26e   : > { %1449 = vmatpush.msra.mxu0 %v5064_v20  ;;  %1469 = vmatpush.msra.mxu1 %v5070_v35  ;;  %7309 = vst [vmem:[#allocation37_spill] sm:$0xff] %v5464_v45 }
 0x26f   : > { %1489 = vmatpush.msra.mxu2 %v5076_v63  ;;  %1509 = vmatpush.msra.mxu3 %v5082_v0  ;;  %7310 = vst [vmem:[#allocation38_spill] sm:$0xff] %v5470_v47 }
 0x270   : > { %1450 = vmatpush.msra.mxu0 %v5088_v2  ;;  %1470 = vmatpush.msra.mxu1 %v5094_v3 }
 0x271   : > { %1490 = vmatpush.msra.mxu2 %v5100_v4  ;;  %1510 = vmatpush.msra.mxu3 %v5106_v5 }
 0x272   : > { %1451 = vmatpush.msra.mxu0 %v5112_v6  ;;  %1471 = vmatpush.msra.mxu1 %v5118_v7 }
 0x273   : > { %1491 = vmatpush.msra.mxu2 %v5124_v9  ;;  %1511 = vmatpush.msra.mxu3 %v5130_v10 }
 0x274   : > { %1452 = vmatpush.msra.mxu0 %v5136_v12  ;;  %1472 = vmatpush.msra.mxu1 %v5142_v13 }
 0x275   : > { %1492 = vmatpush.msra.mxu2 %v5148_v14  ;;  %1512 = vmatpush.msra.mxu3 %v5154_v16 }
 0x276   : > { %1453 = vmatpush.msra.mxu0 %v5160_v28  ;;  %1473 = vmatpush.msra.mxu1 %v5166_v8 }
 0x277   : > { %1493 = vmatpush.msra.mxu2 %v5172_v26  ;;  %1513 = vmatpush.msra.mxu3 %v5178_v25 }
 0x278   : > { %1454 = vmatpush.msra.mxu0 %v5184_v33  ;;  %1474 = vmatpush.msra.mxu1 %v5190_v19 }
 0x279   : > { %1494 = vmatpush.msra.mxu2 %v5196_v31  ;;  %1514 = vmatpush.msra.mxu3 %v5202_v21 }
 0x27a   : > { %1455 = vmatpush.msra.mxu0 %v5208_v32  ;;  %1475 = vmatpush.msra.mxu1 %v5214_v15 }
 0x27b   : > { %1495 = vmatpush.msra.mxu2 %v7286_v22  ;;  %1515 = vmatpush.msra.mxu3 %v7287_v60 }
 0x27c   : > { %1456 = vmatpush.msra.mxu0 %v7288_v48  ;;  %1476 = vmatpush.msra.mxu1 %v7289_v49 }
 0x27d   : > { %1496 = vmatpush.msra.mxu2 %v5244_v17  ;;  %1516 = vmatpush.msra.mxu3 %v7290_v50 }
 0x27e   : > { %1457 = vmatpush.msra.mxu0 %v5256_v30  ;;  %1477 = vmatpush.msra.mxu1 %v5262_v46 }
 0x27f   : > { %1497 = vmatpush.msra.mxu2 %v5355_v51  ;;  %1517 = vmatpush.msra.mxu3 %v5269_v29 }
 0x280   : > { %1458 = vmatpush.msra.mxu0 %v5362_v52  ;;  %1478 = vmatpush.msra.mxu1 %v5368_v55 }
 0x281   : > { %1498 = vmatpush.msra.mxu2 %v5374_v56  ;;  %1518 = vmatpush.msra.mxu3 %v5380_v57 }
 0x282   : > { %1459 = vmatpush.msra.mxu0 %v5386_v58  ;;  %1479 = vmatpush.msra.mxu1 %v5392_v34 }
 0x283   : > { %1499 = vmatpush.msra.mxu2 %v5398_v37  ;;  %1519 = vmatpush.msra.mxu3 %v5404_v38 }
 0x284   : > { %1460 = vmatpush.msra.mxu0 %v5410_v39  ;;  %1480 = vmatpush.msra.mxu1 %v5416_v40 }
 0x285   : > { %1500 = vmatpush.msra.mxu2 %v5422_v43  ;;  %1520 = vmatpush.msra.mxu3 %v5428_v54 }
 0x286   : > { %1461 = vmatpush.msra.mxu0 %v5434_v41  ;;  %1481 = vmatpush.msra.mxu1 %v5440_v61  ;;  %v7317_v61 = vld [vmem:[#allocation46_spill] sm:$0xff] }
 0x287   : > { %1501 = vmatpush.msra.mxu2 %v5446_v42  ;;  %1521 = vmatpush.msra.mxu3 %v5452_v44  ;;  %v5476_v44 = vld [vmem:[%s6908_s2 + $0x38] sm:$0xff] }
 0x288   : > { %1462 = vmatpush.msra.mxu0 %v5458_v36  ;;  %1482 = vmatpush.msra.mxu1 %v5464_v45  ;;  %7311 = vst [vmem:[#allocation40_spill] sm:$0xff] %v5476_v44  ;;  %v5482_v36 = vld [vmem:[%s6908_s2] sm:$0xff]  ;;  %v5488_v45 = vld [vmem:[%s6908_s2 + $0x8] sm:$0xff] }
 0x289   : > { %1502 = vmatpush.msra.mxu2 %v5470_v47  ;;  %1522 = vmatpush.msra.mxu3 %v5476_v44  ;;  %7312 = vst [vmem:[#allocation39_spill] sm:$0xff] %v5482_v36  ;;  %v5494_v47 = vld [vmem:[%s6908_s2 + $0x10] sm:$0xff]  ;;  %v5500_v44 = vld [vmem:[%s6908_s2 + $0x18] sm:$0xff] }
 0x28a   : > { %1463 = vmatpush.msra.mxu0 %v5482_v36  ;;  %7313 = vst [vmem:[#allocation41_spill] sm:$0xff] %v5488_v45  ;;  %1483 = vmatpush.msra.mxu1 %v5488_v45  ;;  %v7316_v36 = vld [vmem:[#allocation45_spill] sm:$0xff]  ;;  %v481_v45 = vadd.f32 %v7317_v61, %v7268_v1 }
 0x28b   : > { %7314 = vst [vmem:[#allocation42_spill] sm:$0xff] %v5494_v47  ;;  %1503 = vmatpush.msra.mxu2 %v5494_v47  ;;  %1523 = vmatpush.msra.mxu3 %v5500_v44  ;;  %v440_v42 = vadd.f32 %v7316_v36, %v7266_v62  ;;  %v7318_v47 = vld [vmem:[#allocation48_spill] sm:$0xff] }
 0x28c   : > { %7315 = vst [vmem:[#allocation44_spill] sm:$0xff] %v5500_v44  ;;  %v563_v37 = vadd.f32 %v7318_v47, %v7270_v11 }
 0x2e7   : > { %v1157_v41 = vpop.f32.mrf.mxu0  ;;  %v1177_v54 = vpop.f32.mrf.mxu1 }
 0x2e8   : > { %v1220_v43 = vadd.f32 %v1157_v41, %v440_v42  ;;  %v1221_v40 = vadd.f32 %v1177_v54, %v481_v45 }
 0x2ea   : > { %v3619_v39 = vmul.f32 -1.442695, %v1220_v43  ;;  %v3620_v38 = vmul.f32 -1.442695, %v1221_v40  ;;  %v7319_v43 = vld [vmem:[#allocation47_spill] sm:$0xff] }
 0x2eb   : > { %v522_v40 = vadd.f32 %v7319_v43, %v7272_v18 }
 0x2ec   : > { %3753 = vpow2.f32 %v3619_v39 }
 0x2ed   : > { %3755 = vpow2.f32 %v3620_v38 }
 0x2ee   : > { %v1217_v34 = vpop.f32.mrf.mxu3  ;;  %v1197_v61 = vpop.f32.mrf.mxu2 }
 0x2ef   : > { %v1223_v58 = vadd.f32 %v1217_v34, %v563_v37  ;;  %v1222_v42 = vadd.f32 %v1197_v61, %v522_v40 }
 0x2f1   : > { %v3621_v44 = vmul.f32 -1.442695, %v1223_v58 }
 0x2f2   : > { %v3754_v57 = vpop.eup %3753 }
 0x2f3   : > { %v3756_v56 = vpop.eup %3755  ;;  %v1227_v36 = vadd.f32 1.0, %v3754_v57  ;;  %3757 = vpow2.f32 %v3621_v44 }
 0x2f4   : > { %v1246_v62 = vadd.f32 1.0, %v3756_v56 }
 0x2f5   : > { %3759 = vrcp.f32 %v1227_v36  ;;  %v1239_v45 = vand.u32 2147483648, %v1227_v36  ;;  %v1237_v44 = vand.u32 2147483647, %v1227_v36  ;;  %vm1233_vm7 = vweird.f32 %v1227_v36 }
 0x2f6   : > { %3761 = vrcp.f32 %v1246_v62  ;;  %v1258_v57 = vand.u32 2147483648, %v1246_v62  ;;  %v1256_v1 = vand.u32 2147483647, %v1246_v62  ;;  %vm1252_vm8 = vweird.f32 %v1246_v62 }
 0x2f7   : > { %v1240_v61 = vor.u32 1.1754944e-38, %v1239_v45  ;;  %vm1238_vm11 = vcmp.eq.f32.partialorder %v1237_v44, 8.507059e+37 }
 0x2f8   : > { %vm1257_vm12 = vcmp.eq.f32.partialorder %v1256_v1, 8.507059e+37 }
 0x2f9   : > { %v3758_v41 = vpop.eup %3757 }
 0x2fa   : > { %v1266_v39 = vadd.f32 1.0, %v3758_v41 }
 0x2fb   : > { %v3760_v54 = vpop.eup %3759 }
 0x2fc   : > { %v3762_v47 = vpop.eup %3761  ;;  %v1229_v38 = vmul.f32 %v3760_v54, %v1227_v36  ;;  %3763 = vrcp.f32 %v1266_v39  ;;  %vm1234_vm5 = vweird.f32 %v3760_v54  ;;  %vm1272_vm14 = vweird.f32 %v1266_v39 }
 0x2fd   : > { %v1248_v34 = vmul.f32 %v3762_v47, %v1246_v62  ;;  %3765 = vtanh.f32 %v1222_v42  ;;  %vm1253_vm6 = vweird.f32 %v3762_v47  ;;  %vm1235_vm9 = vmor %vm1233_vm7, %vm1234_vm5 }
 0x2fe   : > { %v1230_v58 = vsub.f32 1.0, %v1229_v38  ;;  %vm1254_vm10 = vmor %vm1252_vm8, %vm1253_vm6  ;;  %v1259_v38 = vor.u32 1.1754944e-38, %v1258_v57 }
 0x2ff   : > { %v1249_v37 = vsub.f32 1.0, %v1248_v34 }
 0x300   : > { %v1231_v56 = vmul.f32 %v3760_v54, %v1230_v58 }
 0x301   : > { %v1250_v11 = vmul.f32 %v3762_v47, %v1249_v37 }
 0x302   : > { %v3764_v55 = vpop.eup %3763  ;;  %v1232_v43 = vadd.f32 %v3760_v54, %v1231_v56 }
 0x303   : > { %v1251_v41 = vadd.f32 %v3762_v47, %v1250_v11  ;;  %v1268_v40 = vmul.f32 %v3764_v55, %v1266_v39  ;;  %v3766_v42 = vpop.eup %3765  ;;  %vm1273_vm13 = vweird.f32 %v3764_v55  ;;  %v1278_v11 = vand.u32 2147483648, %v1266_v39 }
 0x304   : > { %v1236_v34 = vsel %vm1235_vm9, %v3760_v54, %v1232_v43  ;;  %v1276_v54 = vand.u32 2147483647, %v1266_v39  ;;  %vm1274_vm15 = vmor %vm1272_vm14, %vm1273_vm13  ;;  %v7327_v39 = vld [vmem:[#allocation23_spill] sm:$0xff]  ;;  %v7328_v43 = vld [vmem:[#allocation25_spill] sm:$0xff] }
 0x305   : > { %v1241_v18 = vsel %vm1238_vm11, %v1240_v61, %v1236_v34  ;;  %v1255_v58 = vsel %vm1254_vm10, %v3762_v47, %v1251_v41  ;;  %v1269_v52 = vsub.f32 1.0, %v1268_v40  ;;  %v1279_v57 = vor.u32 1.1754944e-38, %v1278_v11  ;;  %v7329_v61 = vld [vmem:[#allocation26_spill] sm:$0xff]  ;;  %v7330_v41 = vld [vmem:[#allocation28_spill] sm:$0xff]  ;;  %v7331_v40 = vld [vmem:[#allocation27_spill] sm:$0xff] }
 0x306   : > { %v1260_v37 = vsel %vm1257_vm12, %v1259_v38, %v1255_v58  ;;  %v1283_v29 = vmul.f32 %v3766_v42, %v1241_v18  ;;  %vm1277_vm0 = vcmp.eq.f32.partialorder %v1276_v54, 8.507059e+37  ;;  %v7321_v18 = vld [vmem:[#allocation20_spill] sm:$0xff]  ;;  %v7332_v38 = vld [vmem:[#allocation29_spill] sm:$0xff]  ;;  %v7333_v34 = vld [vmem:[#allocation30_spill] sm:$0xff] }
 0x307   : > { %v1282_v51 = vmul.f32 %v1260_v37, %v5305_v53  ;;  %v1270_v56 = vmul.f32 %v3764_v55, %v1269_v52  ;;  %v7323_v53 = vld [vmem:[#allocation19_spill] sm:$0xff]  ;;  %v7325_v52 = vld [vmem:[#allocation22_spill] sm:$0xff]  ;;  %v7335_v58 = vld [vmem:[#allocation32_spill] sm:$0xff] }
 0x308   : > { %v7334_v42 = vld [vmem:[#allocation31_spill] sm:$0xff]  ;;  %v7336_v37 = vld [vmem:[#allocation33_spill] sm:$0xff]  ;;  %v7339_v11 = vld [vmem:[#allocation36_spill] sm:$0xff] }
 0x309   : > { %v5512_v36 = vadd.f32 %v1283_v29, %v1282_v51  ;;  %v1271_v62 = vadd.f32 %v3764_v55, %v1270_v56  ;;  %v7322_v29 = vld [vmem:[#allocation17_spill] sm:$0xff]  ;;  %v7337_v56 = vld [vmem:[#allocation34_spill] sm:$0xff] }
 0x30a   : > { %v7324_v51 = vld [vmem:[#allocation21_spill] sm:$0xff] }
 0x30b   : > { %3767 = vtanh.f32 %v5512_v36  ;;  %v1275_v45 = vsel %vm1274_vm15, %v3764_v55, %v1271_v62  ;;  %v7326_v55 = vld [vmem:[#allocation24_spill] sm:$0xff]  ;;  %v7338_v62 = vld [vmem:[#allocation35_spill] sm:$0xff]  ;;  %v7340_v54 = vld [vmem:[#allocation37_spill] sm:$0xff] }
 0x30c   : > { %v1280_v47 = vsel %vm1277_vm0, %v1279_v57, %v1275_v45  ;;  %v7341_v45 = vld [vmem:[#allocation38_spill] sm:$0xff]  ;;  %v7342_v57 = vld [vmem:[#allocation40_spill] sm:$0xff] }
 0x311   : > { %v3768_v1 = vpop.eup %3767 }
 0x312   : > { %v5515_v44 = vmul.f32 %v3768_v1, %v1280_v47  ;;  %v7343_v1 = vld [vmem:[#allocation39_spill] sm:$0xff]  ;;  %v7344_v47 = vld [vmem:[#allocation41_spill] sm:$0xff] }
 0x314   : > { %7320 = vst [vmem:[#allocation43_spill] sm:$0xff] %v5515_v44  ;;  %1310 = vmatmul.f32.vlgmr.msrb.gmra.mxu0 %v5515_v44  ;;  %1330 = vmatmul.f32.vlgmr.msrb.gmra.mxu1 %v5515_v44 }
 0x315   : > { %1350 = vmatmul.f32.vlgmr.msrb.gmra.mxu2 %v5515_v44  ;;  %1370 = vmatmul.f32.vlgmr.msrb.gmra.mxu3 %v5515_v44  ;;  %v7345_v44 = vld [vmem:[#allocation42_spill] sm:$0xff] }
 0x316   : > { %1602 = vmatpush.msrb.mxu0 %v5040_v23  ;;  %1622 = vmatpush.msrb.mxu1 %v5046_v27 }
 0x317   : > { %1642 = vmatpush.msrb.mxu2 %v5052_v59  ;;  %1662 = vmatpush.msrb.mxu3 %v5058_v24 }
 0x318   : > { %1603 = vmatpush.msrb.mxu0 %v5064_v20  ;;  %1623 = vmatpush.msrb.mxu1 %v5070_v35 }
 0x319   : > { %1643 = vmatpush.msrb.mxu2 %v5076_v63  ;;  %1663 = vmatpush.msrb.mxu3 %v5082_v0 }
 0x31a   : > { %1604 = vmatpush.msrb.mxu0 %v5088_v2  ;;  %1624 = vmatpush.msrb.mxu1 %v5094_v3 }
 0x31b   : > { %1644 = vmatpush.msrb.mxu2 %v5100_v4  ;;  %1664 = vmatpush.msrb.mxu3 %v5106_v5 }
 0x31c   : > { %1605 = vmatpush.msrb.mxu0 %v5112_v6  ;;  %1625 = vmatpush.msrb.mxu1 %v5118_v7 }
 0x31d   : > { %1645 = vmatpush.msrb.mxu2 %v5124_v9  ;;  %1665 = vmatpush.msrb.mxu3 %v5130_v10 }
 0x31e   : > { %1606 = vmatpush.msrb.mxu0 %v5136_v12  ;;  %1626 = vmatpush.msrb.mxu1 %v5142_v13 }
 0x31f   : > { %1646 = vmatpush.msrb.mxu2 %v5148_v14  ;;  %1666 = vmatpush.msrb.mxu3 %v5154_v16 }
 0x320   : > { %1607 = vmatpush.msrb.mxu0 %v5160_v28  ;;  %1627 = vmatpush.msrb.mxu1 %v5166_v8 }
 0x321   : > { %1647 = vmatpush.msrb.mxu2 %v5172_v26  ;;  %1667 = vmatpush.msrb.mxu3 %v5178_v25 }
 0x322   : > { %1608 = vmatpush.msrb.mxu0 %v5184_v33  ;;  %1628 = vmatpush.msrb.mxu1 %v5190_v19 }
 0x323   : > { %1648 = vmatpush.msrb.mxu2 %v5196_v31  ;;  %1668 = vmatpush.msrb.mxu3 %v5202_v21 }
 0x324   : > { %1609 = vmatpush.msrb.mxu0 %v5208_v32  ;;  %1629 = vmatpush.msrb.mxu1 %v5214_v15 }
 0x325   : > { %1649 = vmatpush.msrb.mxu2 %v7286_v22  ;;  %1669 = vmatpush.msrb.mxu3 %v7287_v60 }
 0x326   : > { %1610 = vmatpush.msrb.mxu0 %v7288_v48  ;;  %1630 = vmatpush.msrb.mxu1 %v7289_v49 }
 0x327   : > { %1650 = vmatpush.msrb.mxu2 %v5244_v17  ;;  %1670 = vmatpush.msrb.mxu3 %v7290_v50 }
 0x328   : > { %1611 = vmatpush.msrb.mxu0 %v5256_v30  ;;  %1631 = vmatpush.msrb.mxu1 %v5262_v46 }
 0x329   : > { %1651 = vmatpush.msrb.mxu2 %v7321_v18  ;;  %1671 = vmatpush.msrb.mxu3 %v7322_v29 }
 0x32a   : > { %1612 = vmatpush.msrb.mxu0 %v7323_v53  ;;  %1632 = vmatpush.msrb.mxu1 %v7324_v51 }
 0x32b   : > { %1652 = vmatpush.msrb.mxu2 %v7325_v52  ;;  %1672 = vmatpush.msrb.mxu3 %v7326_v55 }
 0x32c   : > { %1613 = vmatpush.msrb.mxu0 %v7327_v39  ;;  %1633 = vmatpush.msrb.mxu1 %v7328_v43 }
 0x32d   : > { %1653 = vmatpush.msrb.mxu2 %v7329_v61  ;;  %1673 = vmatpush.msrb.mxu3 %v7330_v41  ;;  %v7352_v61 = vld [vmem:[#allocation51_spill] sm:$0xff] }
 0x32e   : > { %1614 = vmatpush.msrb.mxu0 %v7331_v40  ;;  %1634 = vmatpush.msrb.mxu1 %v7332_v38 }
 0x32f   : > { %1654 = vmatpush.msrb.mxu2 %v7333_v34  ;;  %1674 = vmatpush.msrb.mxu3 %v7334_v42  ;;  %v7350_v34 = vld [vmem:[#allocation50_spill] sm:$0xff] }
 0x330   : > { %1615 = vmatpush.msrb.mxu0 %v7335_v58  ;;  %1635 = vmatpush.msrb.mxu1 %v7336_v37  ;;  %v7346_v58 = vld [vmem:[#allocation44_spill] sm:$0xff]  ;;  %v7347_v37 = vld [vmem:[#allocation62_spill] sm:$0xff] }
 0x331   : > { %1655 = vmatpush.msrb.mxu2 %v7337_v56  ;;  %1675 = vmatpush.msrb.mxu3 %v7338_v62  ;;  %v7348_v56 = vld [vmem:[#allocation49_spill] sm:$0xff]  ;;  %v7349_v62 = vld [vmem:[#allocation63_spill] sm:$0xff] }
 0x332   : > { %1616 = vmatpush.msrb.mxu0 %v7339_v11  ;;  %1636 = vmatpush.msrb.mxu1 %v7340_v54  ;;  %v443_v42 = vadd.f32 %v7348_v56, %v7347_v37  ;;  %v484_v11 = vadd.f32 %v7350_v34, %v7349_v62 }
 0x333   : > { %1656 = vmatpush.msrb.mxu2 %v7341_v45  ;;  %1676 = vmatpush.msrb.mxu3 %v7342_v57 }
 0x334   : > { %1617 = vmatpush.msrb.mxu0 %v7343_v1  ;;  %1637 = vmatpush.msrb.mxu1 %v7344_v47  ;;  %v7351_v1 = vld [vmem:[#allocation66_spill] sm:$0xff] }
 0x335   : > { %1657 = vmatpush.msrb.mxu2 %v7345_v44  ;;  %1677 = vmatpush.msrb.mxu3 %v7346_v58  ;;  %v566_v47 = vadd.f32 %v7352_v61, %v7351_v1 }
 0x391   : > { %v1311_v38 = vpop.f32.mrf.mxu0  ;;  %v1331_v54 = vpop.f32.mrf.mxu1 }
 0x392   : > { %v1374_v40 = vadd.f32 %v1311_v38, %v443_v42  ;;  %v1375_v45 = vadd.f32 %v1331_v54, %v484_v11  ;;  %v7353_v42 = vld [vmem:[#allocation68_spill] sm:$0xff] }
 0x394   : > { %v3622_v41 = vmul.f32 -1.442695, %v1374_v40  ;;  %v3623_v57 = vmul.f32 -1.442695, %v1375_v45  ;;  %v7354_v40 = vld [vmem:[#allocation54_spill] sm:$0xff] }
 0x395   : > { %v525_v11 = vadd.f32 %v7354_v40, %v7353_v42 }
 0x396   : > { %3769 = vpow2.f32 %v3622_v41 }
 0x397   : > { %3771 = vpow2.f32 %v3623_v57 }
 0x398   : > { %v1371_v44 = vpop.f32.mrf.mxu3  ;;  %v1351_v34 = vpop.f32.mrf.mxu2 }
 0x399   : > { %v1377_v43 = vadd.f32 %v1371_v44, %v566_v47  ;;  %v1376_v45 = vadd.f32 %v1351_v34, %v525_v11 }
 0x39b   : > { %v3624_v58 = vmul.f32 -1.442695, %v1377_v43 }
 0x39c   : > { %v3770_v39 = vpop.eup %3769 }
 0x39d   : > { %v3772_v55 = vpop.eup %3771  ;;  %v1381_v56 = vadd.f32 1.0, %v3770_v39  ;;  %3773 = vpow2.f32 %v3624_v58 }
 0x39e   : > { %v1400_v37 = vadd.f32 1.0, %v3772_v55 }
 0x39f   : > { %3775 = vrcp.f32 %v1381_v56  ;;  %v1393_v1 = vand.u32 2147483648, %v1381_v56  ;;  %v1391_v58 = vand.u32 2147483647, %v1381_v56  ;;  %vm1387_vm3 = vweird.f32 %v1381_v56 }
 0x3a0   : > { %3777 = vrcp.f32 %v1400_v37  ;;  %v1412_v39 = vand.u32 2147483648, %v1400_v37  ;;  %v1410_v52 = vand.u32 2147483647, %v1400_v37  ;;  %vm1406_vm4 = vweird.f32 %v1400_v37 }
 0x3a1   : > { %v1394_v34 = vor.u32 1.1754944e-38, %v1393_v1  ;;  %vm1392_vm7 = vcmp.eq.f32.partialorder %v1391_v58, 8.507059e+37 }
 0x3a2   : > { %vm1411_vm8 = vcmp.eq.f32.partialorder %v1410_v52, 8.507059e+37 }
 0x3a3   : > { %v3774_v38 = vpop.eup %3773 }
 0x3a4   : > { %v1420_v41 = vadd.f32 1.0, %v3774_v38 }
 0x3a5   : > { %v3776_v54 = vpop.eup %3775 }
 0x3a6   : > { %v3778_v61 = vpop.eup %3777  ;;  %v1383_v57 = vmul.f32 %v3776_v54, %v1381_v56  ;;  %3779 = vrcp.f32 %v1420_v41  ;;  %vm1388_vm1 = vweird.f32 %v3776_v54  ;;  %vm1426_vm10 = vweird.f32 %v1420_v41 }
 0x3a7   : > { %v1402_v44 = vmul.f32 %v3778_v61, %v1400_v37  ;;  %3781 = vtanh.f32 %v1376_v45  ;;  %vm1407_vm2 = vweird.f32 %v3778_v61  ;;  %vm1389_vm5 = vmor %vm1387_vm3, %vm1388_vm1  ;;  %v1430_v1 = vand.u32 2147483647, %v1420_v41 }
 0x3a8   : > { %v1384_v43 = vsub.f32 1.0, %v1383_v57  ;;  %vm1408_vm6 = vmor %vm1406_vm4, %vm1407_vm2  ;;  %v1413_v57 = vor.u32 1.1754944e-38, %v1412_v39 }
 0x3a9   : > { %v1403_v47 = vsub.f32 1.0, %v1402_v44  ;;  %vm1431_vm12 = vcmp.eq.f32.partialorder %v1430_v1, 8.507059e+37 }
 0x3aa   : > { %v1385_v55 = vmul.f32 %v3776_v54, %v1384_v43 }
 0x3ab   : > { %v1404_v62 = vmul.f32 %v3778_v61, %v1403_v47 }
 0x3ac   : > { %v3780_v51 = vpop.eup %3779  ;;  %v1386_v40 = vadd.f32 %v3776_v54, %v1385_v55 }
 0x3ad   : > { %v1405_v38 = vadd.f32 %v3778_v61, %v1404_v62  ;;  %v1422_v11 = vmul.f32 %v3780_v51, %v1420_v41  ;;  %v3782_v45 = vpop.eup %3781  ;;  %vm1427_vm9 = vweird.f32 %v3780_v51  ;;  %v1432_v62 = vand.u32 2147483648, %v1420_v41 }
 0x3ae   : > { %v1390_v44 = vsel %vm1389_vm5, %v3776_v54, %v1386_v40  ;;  %vm1428_vm11 = vmor %vm1426_vm10, %vm1427_vm9 }
 0x3af   : > { %v1395_v42 = vsel %vm1392_vm7, %v1394_v34, %v1390_v44  ;;  %v1409_v43 = vsel %vm1408_vm6, %v3778_v61, %v1405_v38  ;;  %v1423_v53 = vsub.f32 1.0, %v1422_v11  ;;  %v1433_v39 = vor.u32 1.1754944e-38, %v1432_v62  ;;  %v7387_v44 = vld [vmem:[#allocation68_spill] sm:$0xff] }
 0x3b0   : > { %v1414_v47 = vsel %vm1411_vm8, %v1413_v57, %v1409_v43  ;;  %v1437_v29 = vmul.f32 %v3782_v45, %v1395_v42  ;;  %v7388_v45 = vld [vmem:[#allocation58_spill] sm:$0xff] }
 0x3b1   : > { %v1436_v18 = vmul.f32 %v1414_v47, %v5512_v36  ;;  %v1424_v55 = vmul.f32 %v3780_v51, %v1423_v53  ;;  %v7385_v36 = vld [vmem:[#allocation66_spill] sm:$0xff]  ;;  %v528_v43 = vadd.f32 %v7388_v45, %v7387_v44  ;;  %v7389_v45 = vld [vmem:[#allocation56_spill] sm:$0xff] }
 0x3b3   : > { %v5594_v56 = vadd.f32 %v1437_v29, %v1436_v18  ;;  %v1425_v37 = vadd.f32 %v3780_v51, %v1424_v55  ;;  %v7386_v18 = vld [vmem:[#allocation55_spill] sm:$0xff] }
 0x3b4   : > { %v569_v29 = vadd.f32 %v7386_v18, %v7385_v36  ;;  %v1967_v18 = vld [vmem:[%s6910_s4 + $0x1a0] sm:$0xff] }
 0x3b5   : > { %3783 = vtanh.f32 %v5594_v56  ;;  %v1429_v54 = vsel %vm1428_vm11, %v3780_v51, %v1425_v37 }
 0x3b6   : > { %v1434_v61 = vsel %vm1431_vm12, %v1433_v39, %v1429_v54 }
 0x3bb   : > { %v3784_v52 = vpop.eup %3783 }
 0x3bc   : > { %v5597_v58 = vmul.f32 %v3784_v52, %v1434_v61 }
 0x3be   : > { %1464 = vmatmul.f32.vlgmr.msra.gmra.mxu0 %v5597_v58  ;;  %1484 = vmatmul.f32.vlgmr.msra.gmra.mxu1 %v5597_v58 }
 0x3bf   : > { %1504 = vmatmul.f32.vlgmr.msra.gmra.mxu2 %v5597_v58  ;;  %1524 = vmatmul.f32.vlgmr.msra.gmra.mxu3 %v5597_v58 }
 0x3c0   : > { %1756 = vmatpush.msra.mxu0 %v5040_v23  ;;  %1776 = vmatpush.msra.mxu1 %v5046_v27  ;;  %v7355_v23 = vld [vmem:[#allocation20_spill] sm:$0xff]  ;;  %v7356_v27 = vld [vmem:[#allocation17_spill] sm:$0xff] }
 0x3c1   : > { %1796 = vmatpush.msra.mxu2 %v5052_v59  ;;  %1816 = vmatpush.msra.mxu3 %v5058_v24  ;;  %v7357_v59 = vld [vmem:[#allocation19_spill] sm:$0xff]  ;;  %v7358_v24 = vld [vmem:[#allocation21_spill] sm:$0xff] }
 0x3c2   : > { %1757 = vmatpush.msra.mxu0 %v5064_v20  ;;  %1777 = vmatpush.msra.mxu1 %v5070_v35  ;;  %v7359_v20 = vld [vmem:[#allocation22_spill] sm:$0xff]  ;;  %v7360_v35 = vld [vmem:[#allocation24_spill] sm:$0xff] }
 0x3c3   : > { %1797 = vmatpush.msra.mxu2 %v5076_v63  ;;  %1817 = vmatpush.msra.mxu3 %v5082_v0  ;;  %v7361_v63 = vld [vmem:[#allocation23_spill] sm:$0xff]  ;;  %v7362_v0 = vld [vmem:[#allocation25_spill] sm:$0xff] }
 0x3c4   : > { %1758 = vmatpush.msra.mxu0 %v5088_v2  ;;  %1778 = vmatpush.msra.mxu1 %v5094_v3  ;;  %v7363_v2 = vld [vmem:[#allocation26_spill] sm:$0xff]  ;;  %v7366_v3 = vld [vmem:[#allocation29_spill] sm:$0xff] }
 0x3c5   : > { %1798 = vmatpush.msra.mxu2 %v5100_v4  ;;  %1818 = vmatpush.msra.mxu3 %v5106_v5  ;;  %v7367_v4 = vld [vmem:[#allocation30_spill] sm:$0xff]  ;;  %v7368_v5 = vld [vmem:[#allocation31_spill] sm:$0xff] }
 0x3c6   : > { %1759 = vmatpush.msra.mxu0 %v5112_v6  ;;  %1779 = vmatpush.msra.mxu1 %v5118_v7  ;;  %v7369_v6 = vld [vmem:[#allocation32_spill] sm:$0xff]  ;;  %v7370_v7 = vld [vmem:[#allocation33_spill] sm:$0xff] }
 0x3c7   : > { %1799 = vmatpush.msra.mxu2 %v5124_v9  ;;  %1819 = vmatpush.msra.mxu3 %v5130_v10  ;;  %v7371_v9 = vld [vmem:[#allocation34_spill] sm:$0xff]  ;;  %v7372_v10 = vld [vmem:[#allocation35_spill] sm:$0xff] }
 0x3c8   : > { %1760 = vmatpush.msra.mxu0 %v5136_v12  ;;  %1780 = vmatpush.msra.mxu1 %v5142_v13  ;;  %v7373_v12 = vld [vmem:[#allocation36_spill] sm:$0xff]  ;;  %v7374_v13 = vld [vmem:[#allocation37_spill] sm:$0xff] }
 0x3c9   : > { %1800 = vmatpush.msra.mxu2 %v5148_v14  ;;  %1820 = vmatpush.msra.mxu3 %v5154_v16  ;;  %v7375_v14 = vld [vmem:[#allocation38_spill] sm:$0xff]  ;;  %v7376_v16 = vld [vmem:[#allocation40_spill] sm:$0xff] }
 0x3ca   : > { %1761 = vmatpush.msra.mxu0 %v5160_v28  ;;  %1781 = vmatpush.msra.mxu1 %v5166_v8  ;;  %v7377_v28 = vld [vmem:[#allocation39_spill] sm:$0xff]  ;;  %v7378_v8 = vld [vmem:[#allocation41_spill] sm:$0xff] }
 0x3cb   : > { %1801 = vmatpush.msra.mxu2 %v5172_v26  ;;  %1821 = vmatpush.msra.mxu3 %v5178_v25  ;;  %v7379_v26 = vld [vmem:[#allocation42_spill] sm:$0xff]  ;;  %v7380_v25 = vld [vmem:[#allocation44_spill] sm:$0xff] }
 0x3cc   : > { %1762 = vmatpush.msra.mxu0 %v5184_v33  ;;  %1782 = vmatpush.msra.mxu1 %v5190_v19  ;;  %v7381_v33 = vld [vmem:[#allocation62_spill] sm:$0xff]  ;;  %v7382_v19 = vld [vmem:[#allocation52_spill] sm:$0xff] }
 0x3cd   : > { %1802 = vmatpush.msra.mxu2 %v5196_v31  ;;  %1822 = vmatpush.msra.mxu3 %v5202_v21  ;;  %v446_v31 = vadd.f32 %v7382_v19, %v7381_v33  ;;  %v7383_v21 = vld [vmem:[#allocation63_spill] sm:$0xff] }
 0x3ce   : > { %1763 = vmatpush.msra.mxu0 %v5208_v32  ;;  %1783 = vmatpush.msra.mxu1 %v5214_v15  ;;  %v7384_v32 = vld [vmem:[#allocation53_spill] sm:$0xff] }
 0x3cf   : > { %1803 = vmatpush.msra.mxu2 %v7286_v22  ;;  %1823 = vmatpush.msra.mxu3 %v7287_v60  ;;  %v487_v15 = vadd.f32 %v7384_v32, %v7383_v21 }
 0x3d0   : > { %1764 = vmatpush.msra.mxu0 %v7288_v48  ;;  %1784 = vmatpush.msra.mxu1 %v7289_v49 }
 0x3d1   : > { %1804 = vmatpush.msra.mxu2 %v5244_v17  ;;  %1824 = vmatpush.msra.mxu3 %v7290_v50 }
 0x3d2   : > { %1765 = vmatpush.msra.mxu0 %v5256_v30  ;;  %1785 = vmatpush.msra.mxu1 %v5262_v46  ;;  %v7364_v30 = vld [vmem:[#allocation28_spill] sm:$0xff]  ;;  %v7365_v46 = vld [vmem:[#allocation27_spill] sm:$0xff] }
 0x3d3   : > { %1805 = vmatpush.msra.mxu2 %v7355_v23  ;;  %1825 = vmatpush.msra.mxu3 %v7356_v27 }
 0x3d4   : > { %1766 = vmatpush.msra.mxu0 %v7357_v59  ;;  %1786 = vmatpush.msra.mxu1 %v7358_v24 }
 0x3d5   : > { %1806 = vmatpush.msra.mxu2 %v7359_v20  ;;  %1826 = vmatpush.msra.mxu3 %v7360_v35 }
 0x3d6   : > { %1767 = vmatpush.msra.mxu0 %v7361_v63  ;;  %1787 = vmatpush.msra.mxu1 %v7362_v0 }
 0x3d7   : > { %1807 = vmatpush.msra.mxu2 %v7363_v2  ;;  %1827 = vmatpush.msra.mxu3 %v7364_v30 }
 0x3d8   : > { %1768 = vmatpush.msra.mxu0 %v7365_v46  ;;  %1788 = vmatpush.msra.mxu1 %v7366_v3 }
 0x3d9   : > { %1808 = vmatpush.msra.mxu2 %v7367_v4  ;;  %1828 = vmatpush.msra.mxu3 %v7368_v5 }
 0x3da   : > { %1769 = vmatpush.msra.mxu0 %v7369_v6  ;;  %1789 = vmatpush.msra.mxu1 %v7370_v7 }
 0x3db   : > { %1809 = vmatpush.msra.mxu2 %v7371_v9  ;;  %1829 = vmatpush.msra.mxu3 %v7372_v10 }
 0x3dc   : > { %1770 = vmatpush.msra.mxu0 %v7373_v12  ;;  %1790 = vmatpush.msra.mxu1 %v7374_v13 }
 0x3dd   : > { %1810 = vmatpush.msra.mxu2 %v7375_v14  ;;  %1830 = vmatpush.msra.mxu3 %v7376_v16 }
 0x3de   : > { %1771 = vmatpush.msra.mxu0 %v7377_v28  ;;  %1791 = vmatpush.msra.mxu1 %v7378_v8 }
 0x3df   : > { %1811 = vmatpush.msra.mxu2 %v7379_v26  ;;  %1831 = vmatpush.msra.mxu3 %v7380_v25 }
 0x43b   : > { %v1465_v17 = vpop.f32.mrf.mxu0  ;;  %v1485_v22 = vpop.f32.mrf.mxu1 }
 0x43c   : > { %v1528_v60 = vadd.f32 %v1465_v17, %v446_v31  ;;  %v1529_v48 = vadd.f32 %v1485_v22, %v487_v15  ;;  %v1976_v15 = vld [vmem:[%s6910_s4 + $0x1e8] sm:$0xff]  ;;  %v1977_v17 = vld [vmem:[%s6910_s4 + $0x1f0] sm:$0xff]  ;;  %v1978_v22 = vld [vmem:[%s6910_s4 + $0x1f8] sm:$0xff] }
 0x43e   : > { %v3625_v49 = vmul.f32 -1.442695, %v1528_v60  ;;  %v3626_v50 = vmul.f32 -1.442695, %v1529_v48  ;;  %v1971_v60 = vld [vmem:[%s6910_s4 + $0x1c0] sm:$0xff]  ;;  %v1972_v48 = vld [vmem:[%s6910_s4 + $0x1c8] sm:$0xff] }
 0x440   : > { %3785 = vpow2.f32 %v3625_v49  ;;  %v1973_v49 = vld [vmem:[%s6910_s4 + $0x1d0] sm:$0xff] }
 0x441   : > { %3787 = vpow2.f32 %v3626_v50  ;;  %v1974_v50 = vld [vmem:[%s6910_s4 + $0x1d8] sm:$0xff] }
 0x442   : > { %v1525_v53 = vpop.f32.mrf.mxu3  ;;  %v1505_v11 = vpop.f32.mrf.mxu2 }
 0x443   : > { %v1531_v51 = vadd.f32 %v1525_v53, %v569_v29  ;;  %v1530_v37 = vadd.f32 %v1505_v11, %v528_v43  ;;  %v1968_v29 = vld [vmem:[%s6910_s4 + $0x1a8] sm:$0xff]  ;;  %v1969_v53 = vld [vmem:[%s6910_s4 + $0x1b0] sm:$0xff]  ;;  %v449_v43 = vadd.f32 %v7389_v45, %v7381_v33 }
 0x444   : > { %v1960_v11 = vld [vmem:[%s6910_s4 + $0x168] sm:$0xff] }
 0x445   : > { %v3627_v42 = vmul.f32 -1.442695, %v1531_v51  ;;  %v1970_v51 = vld [vmem:[%s6910_s4 + $0x1b8] sm:$0xff] }
 0x446   : > { %v3786_v41 = vpop.eup %3785 }
 0x447   : > { %v3788_v40 = vpop.eup %3787  ;;  %v1535_v34 = vadd.f32 1.0, %v3786_v41  ;;  %3789 = vpow2.f32 %v3627_v42  ;;  %v1963_v42 = vld [vmem:[%s6910_s4 + $0x180] sm:$0xff]  ;;  %v1964_v41 = vld [vmem:[%s6910_s4 + $0x188] sm:$0xff] }
 0x448   : > { %v1554_v38 = vadd.f32 1.0, %v3788_v40  ;;  %v1965_v40 = vld [vmem:[%s6910_s4 + $0x190] sm:$0xff] }
 0x449   : > { %3791 = vrcp.f32 %v1535_v34  ;;  %v1547_v61 = vand.u32 2147483648, %v1535_v34  ;;  %v1545_v59 = vand.u32 2147483647, %v1535_v34  ;;  %vm1541_vm15 = vweird.f32 %v1535_v34 }
 0x44a   : > { %3793 = vrcp.f32 %v1554_v38  ;;  %v1566_v23 = vand.u32 2147483648, %v1554_v38  ;;  %v1564_v20 = vand.u32 2147483647, %v1554_v38  ;;  %vm1560_vm0 = vweird.f32 %v1554_v38 }
 0x44b   : > { %v1548_v0 = vor.u32 1.1754944e-38, %v1547_v61  ;;  %vm1546_vm3 = vcmp.eq.f32.partialorder %v1545_v59, 8.507059e+37  ;;  %v1951_v59 = vld [vmem:[%s6910_s4 + $0x120] sm:$0xff] }
 0x44c   : > { %v1567_v46 = vor.u32 1.1754944e-38, %v1566_v23  ;;  %vm1565_vm4 = vcmp.eq.f32.partialorder %v1564_v20, 8.507059e+37  ;;  %v1953_v20 = vld [vmem:[%s6910_s4 + $0x130] sm:$0xff] }
 0x44d   : > { %v3790_v57 = vpop.eup %3789 }
 0x44e   : > { %v1574_v47 = vadd.f32 1.0, %v3790_v57  ;;  %v1961_v57 = vld [vmem:[%s6910_s4 + $0x170] sm:$0xff] }
 0x44f   : > { %v3792_v55 = vpop.eup %3791 }
 0x450   : > { %v3794_v62 = vpop.eup %3793  ;;  %v1537_v1 = vmul.f32 %v3792_v55, %v1535_v34  ;;  %3795 = vrcp.f32 %v1574_v47  ;;  %vm1542_vm13 = vweird.f32 %v3792_v55  ;;  %v1586_v28 = vand.u32 2147483648, %v1574_v47  ;;  %v1966_v34 = vld [vmem:[%s6910_s4 + $0x198] sm:$0xff] }
 0x451   : > { %v1556_v54 = vmul.f32 %v3794_v62, %v1554_v38  ;;  %3797 = vtanh.f32 %v1530_v37  ;;  %vm1561_vm14 = vweird.f32 %v3794_v62  ;;  %vm1543_vm1 = vmor %vm1541_vm15, %vm1542_vm13  ;;  %vm1580_vm6 = vweird.f32 %v1574_v47  ;;  %v1959_v38 = vld [vmem:[%s6910_s4 + $0x160] sm:$0xff]  ;;  %v1962_v37 = vld [vmem:[%s6910_s4 + $0x178] sm:$0xff] }
 0x452   : > { %v1538_v39 = vsub.f32 1.0, %v1537_v1  ;;  %vm1562_vm2 = vmor %vm1560_vm0, %vm1561_vm14  ;;  %v1584_v8 = vand.u32 2147483647, %v1574_v47  ;;  %v1587_v25 = vor.u32 1.1754944e-38, %v1586_v28  ;;  %v1940_v28 = vld [vmem:[%s6910_s4 + $0xc8] sm:$0xff] }
 0x453   : > { %v1557_v52 = vsub.f32 1.0, %v1556_v54  ;;  %v1955_v54 = vld [vmem:[%s6910_s4 + $0x140] sm:$0xff] }
 0x454   : > { %v1539_v27 = vmul.f32 %v3792_v55, %v1538_v39  ;;  %vm1585_vm8 = vcmp.eq.f32.partialorder %v1584_v8, 8.507059e+37  ;;  %v1956_v39 = vld [vmem:[%s6910_s4 + $0x148] sm:$0xff]  ;;  %v1941_v8 = vld [vmem:[%s6910_s4 + $0xd0] sm:$0xff] }
 0x455   : > { %v1558_v24 = vmul.f32 %v3794_v62, %v1557_v52  ;;  %v1957_v52 = vld [vmem:[%s6910_s4 + $0x150] sm:$0xff] }
 0x456   : > { %v3796_v35 = vpop.eup %3795  ;;  %v1540_v63 = vadd.f32 %v3792_v55, %v1539_v27  ;;  %v1958_v27 = vld [vmem:[%s6910_s4 + $0x158] sm:$0xff] }
 0x457   : > { %v1559_v2 = vadd.f32 %v3794_v62, %v1558_v24  ;;  %v1576_v30 = vmul.f32 %v3796_v35, %v1574_v47  ;;  %v3798_v4 = vpop.eup %3797  ;;  %vm1581_vm5 = vweird.f32 %v3796_v35  ;;  %v7390_v47 = vld [vmem:[#allocation57_spill] sm:$0xff]  ;;  %v1952_v24 = vld [vmem:[%s6910_s4 + $0x128] sm:$0xff] }
 0x458   : > { %v1544_v3 = vsel %vm1543_vm1, %v3792_v55, %v1540_v63  ;;  %vm1582_vm7 = vmor %vm1580_vm6, %vm1581_vm5  ;;  %v490_v55 = vadd.f32 %v7390_v47, %v7383_v21  ;;  %v1921_v47 = vld [vmem:[%s6910_s4 + $0x30] sm:$0xff] }
 0x459   : > { %v1549_v5 = vsel %vm1546_vm3, %v1548_v0, %v1544_v3  ;;  %v1563_v6 = vsel %vm1562_vm2, %v3794_v62, %v1559_v2  ;;  %v1577_v7 = vsub.f32 1.0, %v1576_v30  ;;  %v1954_v0 = vld [vmem:[%s6910_s4 + $0x138] sm:$0xff]  ;;  %v1947_v2 = vld [vmem:[%s6910_s4 + $0x100] sm:$0xff]  ;;  %v1948_v30 = vld [vmem:[%s6910_s4 + $0x108] sm:$0xff] }
 0x45a   : > { %v1568_v9 = vsel %vm1565_vm4, %v1567_v46, %v1563_v6  ;;  %v1591_v10 = vmul.f32 %v3798_v4, %v1549_v5  ;;  %v1949_v46 = vld [vmem:[%s6910_s4 + $0x110] sm:$0xff]  ;;  %v1950_v3 = vld [vmem:[%s6910_s4 + $0x118] sm:$0xff]  ;;  %v7391_v4 = vld [vmem:[#allocation59_spill] sm:$0xff] }
 0x45b   : > { %v1590_v12 = vmul.f32 %v1568_v9, %v5594_v56  ;;  %v1578_v13 = vmul.f32 %v3796_v35, %v1577_v7  ;;  %v1975_v56 = vld [vmem:[%s6910_s4 + $0x1e0] sm:$0xff]  ;;  %v572_v5 = vadd.f32 %v7391_v4, %v7385_v36  ;;  %v1944_v7 = vld [vmem:[%s6910_s4 + $0xe8] sm:$0xff]  ;;  %v1945_v9 = vld [vmem:[%s6910_s4 + $0xf0] sm:$0xff] }
 0x45c   : > { %v1943_v6 = vld [vmem:[%s6910_s4 + $0xe0] sm:$0xff] }
 0x45d   : > { %v5676_v14 = vadd.f32 %v1591_v10, %v1590_v12  ;;  %v1579_v16 = vadd.f32 %v3796_v35, %v1578_v13  ;;  %v1946_v12 = vld [vmem:[%s6910_s4 + $0xf8] sm:$0xff] }
 0x45f   : > { %3799 = vtanh.f32 %v5676_v14  ;;  %v1583_v26 = vsel %vm1582_vm7, %v3796_v35, %v1579_v16  ;;  %v1939_v16 = vld [vmem:[%s6910_s4 + $0xc0] sm:$0xff] }
 0x460   : > { %v1588_v31 = vsel %vm1585_vm8, %v1587_v25, %v1583_v26  ;;  %v1942_v26 = vld [vmem:[%s6910_s4 + $0xd8] sm:$0xff] }
 0x465   : > { %v3800_v19 = vpop.eup %3799 }
 0x466   : > { %v5679_v32 = vmul.f32 %v3800_v19, %v1588_v31  ;;  %v1935_v19 = vld [vmem:[%s6910_s4 + $0xa0] sm:$0xff]  ;;  %v1936_v31 = vld [vmem:[%s6910_s4 + $0xa8] sm:$0xff] }
 0x468   : > { %1618 = vmatmul.f32.vlgmr.msrb.gmra.mxu0 %v5679_v32  ;;  %1638 = vmatmul.f32.vlgmr.msrb.gmra.mxu1 %v5679_v32 }
 0x469   : > { %1658 = vmatmul.f32.vlgmr.msrb.gmra.mxu2 %v5679_v32  ;;  %1678 = vmatmul.f32.vlgmr.msrb.gmra.mxu3 %v5679_v32 }
 0x46a   : > { %1989 = vmatpush.msrb.mxu0 %v1975_v56  ;;  %2030 = vmatpush.msrb.mxu1 %v1976_v15  ;;  %v1937_v56 = vld [vmem:[%s6910_s4 + $0xb0] sm:$0xff] }
 0x46b   : > { %2071 = vmatpush.msrb.mxu2 %v1977_v17  ;;  %2112 = vmatpush.msrb.mxu3 %v1978_v22  ;;  %v1938_v17 = vld [vmem:[%s6910_s4 + $0xb8] sm:$0xff]  ;;  %v1931_v22 = vld [vmem:[%s6910_s4 + $0x80] sm:$0xff] }
 0x46c   : > { %1990 = vmatpush.msrb.mxu0 %v1971_v60  ;;  %2031 = vmatpush.msrb.mxu1 %v1972_v48  ;;  %v1932_v60 = vld [vmem:[%s6910_s4 + $0x88] sm:$0xff] }
 0x46d   : > { %2072 = vmatpush.msrb.mxu2 %v1973_v49  ;;  %2113 = vmatpush.msrb.mxu3 %v1974_v50  ;;  %v1933_v50 = vld [vmem:[%s6910_s4 + $0x90] sm:$0xff] }
 0x46e   : > { %1991 = vmatpush.msrb.mxu0 %v1967_v18  ;;  %2032 = vmatpush.msrb.mxu1 %v1968_v29  ;;  %v1934_v18 = vld [vmem:[%s6910_s4 + $0x98] sm:$0xff] }
 0x46f   : > { %2073 = vmatpush.msrb.mxu2 %v1969_v53  ;;  %2114 = vmatpush.msrb.mxu3 %v1970_v51  ;;  %v1927_v53 = vld [vmem:[%s6910_s4 + $0x60] sm:$0xff]  ;;  %v1928_v51 = vld [vmem:[%s6910_s4 + $0x68] sm:$0xff] }
 0x470   : > { %1992 = vmatpush.msrb.mxu0 %v1963_v42  ;;  %2033 = vmatpush.msrb.mxu1 %v1964_v41  ;;  %v1929_v42 = vld [vmem:[%s6910_s4 + $0x70] sm:$0xff]  ;;  %v1930_v41 = vld [vmem:[%s6910_s4 + $0x78] sm:$0xff] }
 0x471   : > { %2074 = vmatpush.msrb.mxu2 %v1965_v40  ;;  %2115 = vmatpush.msrb.mxu3 %v1966_v34  ;;  %v1923_v40 = vld [vmem:[%s6910_s4 + $0x40] sm:$0xff]  ;;  %v1924_v34 = vld [vmem:[%s6910_s4 + $0x48] sm:$0xff] }
 0x472   : > { %1993 = vmatpush.msrb.mxu0 %v1959_v38  ;;  %2034 = vmatpush.msrb.mxu1 %v1960_v11  ;;  %v1925_v38 = vld [vmem:[%s6910_s4 + $0x50] sm:$0xff]  ;;  %v1926_v11 = vld [vmem:[%s6910_s4 + $0x58] sm:$0xff] }
 0x473   : > { %2075 = vmatpush.msrb.mxu2 %v1961_v57  ;;  %2116 = vmatpush.msrb.mxu3 %v1962_v37  ;;  %v1919_v57 = vld [vmem:[%s6910_s4 + $0x20] sm:$0xff] }
 0x474   : > { %1994 = vmatpush.msrb.mxu0 %v1955_v54  ;;  %2035 = vmatpush.msrb.mxu1 %v1956_v39  ;;  %v1915_v54 = vld [vmem:[%s6910_s4] sm:$0xff]  ;;  %v1916_v39 = vld [vmem:[%s6910_s4 + $0x8] sm:$0xff] }
 0x475   : > { %2076 = vmatpush.msrb.mxu2 %v1957_v52  ;;  %2117 = vmatpush.msrb.mxu3 %v1958_v27 }
 0x476   : > { %1995 = vmatpush.msrb.mxu0 %v1951_v59  ;;  %2036 = vmatpush.msrb.mxu1 %v1952_v24 }
 0x477   : > { %2077 = vmatpush.msrb.mxu2 %v1953_v20  ;;  %2118 = vmatpush.msrb.mxu3 %v1954_v0 }
 0x478   : > { %1996 = vmatpush.msrb.mxu0 %v1947_v2  ;;  %2037 = vmatpush.msrb.mxu1 %v1948_v30 }
 0x479   : > { %2078 = vmatpush.msrb.mxu2 %v1949_v46  ;;  %2119 = vmatpush.msrb.mxu3 %v1950_v3 }
 0x47a   : > { %1997 = vmatpush.msrb.mxu0 %v1943_v6  ;;  %2038 = vmatpush.msrb.mxu1 %v1944_v7 }
 0x47b   : > { %2079 = vmatpush.msrb.mxu2 %v1945_v9  ;;  %2120 = vmatpush.msrb.mxu3 %v1946_v12 }
 0x47c   : > { %1998 = vmatpush.msrb.mxu0 %v1939_v16  ;;  %2039 = vmatpush.msrb.mxu1 %v1940_v28 }
 0x47d   : > { %2080 = vmatpush.msrb.mxu2 %v1941_v8  ;;  %2121 = vmatpush.msrb.mxu3 %v1942_v26 }
 0x47e   : > { %1999 = vmatpush.msrb.mxu0 %v1935_v19  ;;  %2040 = vmatpush.msrb.mxu1 %v1936_v31 }
 0x47f   : > { %2081 = vmatpush.msrb.mxu2 %v1937_v56  ;;  %2122 = vmatpush.msrb.mxu3 %v1938_v17 }
 0x480   : > { %2000 = vmatpush.msrb.mxu0 %v1931_v22  ;;  %2041 = vmatpush.msrb.mxu1 %v1932_v60 }
 0x481   : > { %2082 = vmatpush.msrb.mxu2 %v1933_v50  ;;  %2123 = vmatpush.msrb.mxu3 %v1934_v18 }
 0x482   : > { %2001 = vmatpush.msrb.mxu0 %v1927_v53  ;;  %2042 = vmatpush.msrb.mxu1 %v1928_v51  ;;  %v7394_v51 = vld [vmem:[#allocation12_spill] sm:$0xff] }
 0x483   : > { %2083 = vmatpush.msrb.mxu2 %v1929_v42  ;;  %2124 = vmatpush.msrb.mxu3 %v1930_v41  ;;  %v7395_v42 = vld [vmem:[#allocation18_spill] sm:$0xff]  ;;  %v5915_v41 = vld [vmem:[#allocation8 + $0x1e0] sm:$0xff] }
 0x484   : > { %2002 = vmatpush.msrb.mxu0 %v1923_v40  ;;  %2043 = vmatpush.msrb.mxu1 %v1924_v34  ;;  %v5917_v40 = vld [vmem:[#allocation8 + $0x1e8] sm:$0xff]  ;;  %v5919_v34 = vld [vmem:[#allocation8 + $0x1c0] sm:$0xff] }
 0x485   : > { %2084 = vmatpush.msrb.mxu2 %v1925_v38  ;;  %2125 = vmatpush.msrb.mxu3 %v1926_v11  ;;  %v5923_v38 = vld [vmem:[#allocation8 + $0x1c8] sm:$0xff]  ;;  %v5925_v11 = vld [vmem:[#allocation8 + $0x1f8] sm:$0xff] }
 0x486   : > { %2003 = vmatpush.msrb.mxu0 %v1919_v57  ;;  %7396 = vst [vmem:[#allocation11_spill] sm:$0xff] %v5923_v38  ;;  %v5928_v57 = vld [vmem:[#allocation8 + $0x1a0] sm:$0xff] }
 0x487   : > { %2085 = vmatpush.msrb.mxu2 %v1921_v47  ;;  %7397 = vst [vmem:[#allocation13_spill] sm:$0xff] %v5925_v11  ;;  %v7400_v47 = vld [vmem:[#allocation43_spill] sm:$0xff] }
 0x488   : > { %2004 = vmatpush.msrb.mxu0 %v1915_v54  ;;  %7398 = vst [vmem:[#allocation14_spill] sm:$0xff] %v5928_v57  ;;  %v5968_v54 = vld [vmem:[#allocation8 + $0x168] sm:$0xff] }
 0x4e5   : > { %v1619_v62 = vpop.f32.mrf.mxu0  ;;  %v1639_v1 = vpop.f32.mrf.mxu1 }
 0x4e6   : > { %v1682_v61 = vadd.f32 %v1619_v62, %v449_v43  ;;  %v1683_v23 = vadd.f32 %v1639_v1, %v490_v55  ;;  %v1920_v43 = vld [vmem:[%s6910_s4 + $0x28] sm:$0xff]  ;;  %v1922_v55 = vld [vmem:[%s6910_s4 + $0x38] sm:$0xff] }
 0x4e7   : > { %v7392_v62 = vld [vmem:[#allocation64_spill] sm:$0xff]  ;;  %2044 = vmatpush.msrb.mxu1 %v1920_v43  ;;  %2126 = vmatpush.msrb.mxu3 %v1922_v55  ;;  %v5932_v43 = vld [vmem:[#allocation8 + $0x1d8] sm:$0xff]  ;;  %v5951_v55 = vld [vmem:[#allocation8 + $0x1f0] sm:$0xff] }
 0x4e8   : > { %v3628_v35 = vmul.f32 -1.442695, %v1682_v61  ;;  %v3629_v63 = vmul.f32 -1.442695, %v1683_v23  ;;  %v531_v1 = vadd.f32 %v7392_v62, %v7387_v44  ;;  %v1917_v61 = vld [vmem:[%s6910_s4 + $0x10] sm:$0xff]  ;;  %v1918_v23 = vld [vmem:[%s6910_s4 + $0x18] sm:$0xff] }
 0x4e9   : > { %2045 = vmatpush.msrb.mxu1 %v1916_v39  ;;  %2086 = vmatpush.msrb.mxu2 %v1917_v61  ;;  %v5956_v62 = vld [vmem:[#allocation8 + $0x1b8] sm:$0xff]  ;;  %v5976_v61 = vld [vmem:[#allocation8 + $0x190] sm:$0xff] }
 0x4ea   : > { %3801 = vpow2.f32 %v3628_v35  ;;  %2127 = vmatpush.msrb.mxu3 %v1918_v23  ;;  %7401 = vst [vmem:[#allocation15_spill] sm:$0xff] %v5956_v62  ;;  %v5970_v39 = vld [vmem:[#allocation8 + $0x198] sm:$0xff] }
 0x4eb   : > { %3803 = vpow2.f32 %v3629_v63  ;;  %v5980_v23 = vld [vmem:[#allocation8 + $0x178] sm:$0xff] }
 0x4ec   : > { %v1679_v10 = vpop.f32.mrf.mxu3  ;;  %v1659_v45 = vpop.f32.mrf.mxu2 }
 0x4ed   : > { %v1685_v13 = vadd.f32 %v1679_v10, %v572_v5  ;;  %v1684_v59 = vadd.f32 %v1659_v45, %v531_v1  ;;  %v5930_v45 = vld [vmem:[#allocation8 + $0x1a8] sm:$0xff] }
 0x4ee   : > { %7399 = vst [vmem:[#allocation16_spill] sm:$0xff] %v5930_v45  ;;  %v5961_v1 = vld [vmem:[#allocation8 + $0x188] sm:$0xff] }
 0x4ef   : > { %v3630_v25 = vmul.f32 -1.442695, %v1685_v13 }
 0x4f0   : > { %v3802_v15 = vpop.eup %3801 }
 0x4f1   : > { %v3804_v48 = vpop.eup %3803  ;;  %v5829_v49 = vadd.f32 1.0, %v3802_v15  ;;  %3805 = vpow2.f32 %v3630_v25 }
 0x4f2   : > { %v5837_v29 = vadd.f32 1.0, %v3804_v48 }
 0x4f3   : > { %3807 = vrcp.f32 %v5829_v49  ;;  %v1701_v2 = vand.u32 2147483648, %v5829_v49  ;;  %v1699_v3 = vand.u32 2147483647, %v5829_v49  ;;  %vm1695_vm11 = vweird.f32 %v5829_v49 }
 0x4f4   : > { %3809 = vrcp.f32 %v5837_v29  ;;  %v1720_v30 = vand.u32 2147483648, %v5837_v29  ;;  %v1718_v5 = vand.u32 2147483647, %v5837_v29  ;;  %vm1714_vm12 = vweird.f32 %v5837_v29 }
 0x4f5   : > { %v1702_v9 = vor.u32 1.1754944e-38, %v1701_v2  ;;  %vm1700_vm15 = vcmp.eq.f32.partialorder %v1699_v3, 8.507059e+37  ;;  %v5990_v2 = vld [vmem:[#allocation8 + $0x140] sm:$0xff] }
 0x4f6   : > { %v1721_v13 = vor.u32 1.1754944e-38, %v1720_v30  ;;  %vm1719_vm0 = vcmp.eq.f32.partialorder %v1718_v5, 8.507059e+37  ;;  %v5992_v30 = vld [vmem:[#allocation8 + $0x148] sm:$0xff] }
 0x4f7   : > { %v3806_v37 = vpop.eup %3805  ;;  %v6003_v5 = vld [vmem:[#allocation8 + $0x128] sm:$0xff] }
 0x4f8   : > { %v1728_v52 = vadd.f32 1.0, %v3806_v37  ;;  %v5954_v37 = vld [vmem:[#allocation8 + $0x1d0] sm:$0xff] }
 0x4f9   : > { %v3808_v27 = vpop.eup %3807 }
 0x4fa   : > { %v3810_v24 = vpop.eup %3809  ;;  %v1691_v20 = vmul.f32 %v3808_v27, %v5829_v49  ;;  %3811 = vrcp.f32 %v1728_v52  ;;  %vm1696_vm9 = vweird.f32 %v3808_v27  ;;  %v1740_v60 = vand.u32 2147483648, %v1728_v52 }
 0x4fb   : > { %v1710_v35 = vmul.f32 %v3810_v24, %v5837_v29  ;;  %3813 = vtanh.f32 %v1684_v59  ;;  %vm1715_vm10 = vweird.f32 %v3810_v24  ;;  %vm1697_vm13 = vmor %vm1695_vm11, %vm1696_vm9  ;;  %vm1734_vm2 = vweird.f32 %v1728_v52  ;;  %v7402_v59 = vld [vmem:[#allocation60_spill] sm:$0xff] }
 0x4fc   : > { %v1692_v63 = vsub.f32 1.0, %v1691_v20  ;;  %vm1716_vm14 = vmor %vm1714_vm12, %vm1715_vm10  ;;  %v1738_v48 = vand.u32 2147483647, %v1728_v52  ;;  %v1741_v50 = vor.u32 1.1754944e-38, %v1740_v60  ;;  %v7403_v20 = vld [vmem:[#allocation61_spill] sm:$0xff] }
 0x4fd   : > { %v1711_v0 = vsub.f32 1.0, %v1710_v35  ;;  %v493_v35 = vadd.f32 %v7403_v20, %v7383_v21  ;;  %v6001_v21 = vld [vmem:[#allocation8 + $0x120] sm:$0xff]  ;;  %v6040_v60 = vld [vmem:[#allocation8 + $0x110] sm:$0xff] }
 0x4fe   : > { %v1693_v46 = vmul.f32 %v3808_v27, %v1692_v63  ;;  %vm1739_vm4 = vcmp.eq.f32.partialorder %v1738_v48, 8.507059e+37 }
 0x4ff   : > { %v1712_v4 = vmul.f32 %v3810_v24, %v1711_v0 }
 0x500   : > { %v3812_v6 = vpop.eup %3811  ;;  %v1694_v7 = vadd.f32 %v3808_v27, %v1693_v46  ;;  %v5994_v46 = vld [vmem:[#allocation8 + $0x158] sm:$0xff] }
 0x501   : > { %v1713_v10 = vadd.f32 %v3810_v24, %v1712_v4  ;;  %v1730_v12 = vmul.f32 %v3812_v6, %v1728_v52  ;;  %v3814_v28 = vpop.eup %3813  ;;  %vm1735_vm1 = vweird.f32 %v3812_v6  ;;  %v5972_v52 = vld [vmem:[#allocation8 + $0x1b0] sm:$0xff] }
 0x502   : > { %v1698_v16 = vsel %vm1697_vm13, %v3808_v27, %v1694_v7  ;;  %vm1736_vm3 = vmor %vm1734_vm2, %vm1735_vm1  ;;  %v5983_v27 = vld [vmem:[#allocation8 + $0x170] sm:$0xff] }
 0x503   : > { %v1703_v8 = vsel %vm1700_vm15, %v1702_v9, %v1698_v16  ;;  %v1717_v26 = vsel %vm1716_vm14, %v3810_v24, %v1713_v10  ;;  %v1731_v25 = vsub.f32 1.0, %v1730_v12  ;;  %v452_v24 = vadd.f32 %v7402_v59, %v7381_v33  ;;  %v5999_v33 = vld [vmem:[#allocation8 + $0x150] sm:$0xff]  ;;  %v6013_v12 = vld [vmem:[#allocation8 + $0x100] sm:$0xff] }
 0x504   : > { %v1722_v19 = vsel %vm1719_vm0, %v1721_v13, %v1717_v26  ;;  %v1745_v31 = vmul.f32 %v3814_v28, %v1703_v8  ;;  %v6011_v10 = vld [vmem:[#allocation8 + $0x130] sm:$0xff]  ;;  %v6015_v13 = vld [vmem:[#allocation8 + $0x108] sm:$0xff]  ;;  %v6018_v16 = vld [vmem:[#allocation8 + $0xe0] sm:$0xff] }
 0x505   : > { %v1744_v56 = vmul.f32 %v1722_v19, %v5676_v14  ;;  %v1732_v15 = vmul.f32 %v3812_v6, %v1731_v25  ;;  %v7393_v14 = vld [vmem:[#allocation69_spill] sm:$0xff]  ;;  %v6023_v28 = vld [vmem:[#allocation8 + $0xe8] sm:$0xff]  ;;  %v6025_v8 = vld [vmem:[#allocation8 + $0x118] sm:$0xff] }
 0x506   : > { %v7404_v26 = vld [vmem:[#allocation65_spill] sm:$0xff]  ;;  %v6030_v19 = vld [vmem:[#allocation8 + $0xc0] sm:$0xff] }
 0x507   : > { %v5900_v17 = vadd.f32 %v1745_v31, %v1744_v56  ;;  %v1733_v22 = vadd.f32 %v3812_v6, %v1732_v15  ;;  %v575_v25 = vadd.f32 %v7404_v26, %v7385_v36  ;;  %v6032_v31 = vld [vmem:[#allocation8 + $0xc8] sm:$0xff]  ;;  %v6034_v56 = vld [vmem:[#allocation8 + $0xf8] sm:$0xff]  ;;  %v6043_v36 = vld [vmem:[#allocation8 + $0xa0] sm:$0xff] }
 0x508   : > { %7406 = vst [vmem:[#allocation46_spill] sm:$0xff] %v6043_v36  ;;  %v6066_v59 = vld [vmem:[#allocation8 + $0xb0] sm:$0xff] }
 0x509   : > { %3815 = vtanh.f32 %v5900_v17  ;;  %v1737_v49 = vsel %vm1736_vm3, %v3812_v6, %v1733_v22  ;;  %v6006_v6 = vld [vmem:[#allocation8 + $0x138] sm:$0xff]  ;;  %7413 = vst [vmem:[#allocation20_spill] sm:$0xff] %v6066_v59  ;;  %v6094_v26 = vld [vmem:[#allocation8 + $0x70] sm:$0xff] }
 0x50a   : > { %v1742_v29 = vsel %vm1739_vm4, %v1741_v50, %v1737_v49  ;;  %v6038_v22 = vld [vmem:[#allocation8 + $0xd8] sm:$0xff]  ;;  %v6045_v49 = vld [vmem:[#allocation8 + $0xa8] sm:$0xff]  ;;  %7420 = vst [vmem:[#allocation25_spill] sm:$0xff] %v6094_v26 }
 0x50b   : > { %7405 = vst [vmem:[#allocation45_spill] sm:$0xff] %v6038_v22  ;;  %v6050_v50 = vld [vmem:[#allocation8 + $0xb8] sm:$0xff] }
 0x50c   : > { %7407 = vst [vmem:[#allocation48_spill] sm:$0xff] %v6045_v49 }
 0x50d   : > { %7408 = vst [vmem:[#allocation47_spill] sm:$0xff] %v6050_v50 }
 0x50f   : > { %v3816_v18 = vpop.eup %3815 }
 0x510   : > { %v1748_v53 = vmul.f32 %v3816_v18, %v1742_v29  ;;  %v6052_v18 = vld [vmem:[#allocation8 + $0xf0] sm:$0xff] }
 0x512   : > { %1772 = vmatmul.f32.vlgmr.msra.gmra.mxu0 %v1748_v53  ;;  %1792 = vmatmul.f32.vlgmr.msra.gmra.mxu1 %v1748_v53 }
 0x513   : > { %1812 = vmatmul.f32.vlgmr.msra.gmra.mxu2 %v1748_v53  ;;  %1832 = vmatmul.f32.vlgmr.msra.gmra.mxu3 %v1748_v53 }
 0x514   : > { %2255 = vmatpush.msra.mxu0 %v5915_v41  ;;  %2275 = vmatpush.msra.mxu1 %v5917_v40 }
 0x515   : > { %2315 = vmatpush.msra.mxu3 %v5925_v11  ;;  %2295 = vmatpush.msra.mxu2 %v5951_v55 }
 0x516   : > { %2256 = vmatpush.msra.mxu0 %v5919_v34  ;;  %2276 = vmatpush.msra.mxu1 %v5923_v38 }
 0x517   : > { %2316 = vmatpush.msra.mxu3 %v5932_v43  ;;  %2296 = vmatpush.msra.mxu2 %v5954_v37 }
 0x518   : > { %2257 = vmatpush.msra.mxu0 %v5928_v57  ;;  %2277 = vmatpush.msra.mxu1 %v5930_v45 }
 0x519   : > { %2317 = vmatpush.msra.mxu3 %v5956_v62  ;;  %2297 = vmatpush.msra.mxu2 %v5972_v52 }
 0x51a   : > { %2005 = vmatmul.f32.vlgmr.msrb.gmra.mxu0 %v7393_v14  ;;  %2046 = vmatmul.f32.vlgmr.msrb.gmra.mxu1 %v7393_v14 }
 0x51b   : > { %2087 = vmatmul.f32.vlgmr.msrb.gmra.mxu2 %v7393_v14  ;;  %2128 = vmatmul.f32.vlgmr.msrb.gmra.mxu3 %v7393_v14  ;;  %v6057_v14 = vld [vmem:[#allocation8 + $0x88] sm:$0xff] }
 0x51c   : > { %2278 = vmatpush.msra.mxu1 %v5961_v1  ;;  %2318 = vmatpush.msra.mxu3 %v5970_v39  ;;  %7410 = vst [vmem:[#allocation50_spill] sm:$0xff] %v6057_v14 }
 0x51d   : > { %2298 = vmatpush.msra.mxu2 %v5976_v61 }
 0x51e   : > { %2279 = vmatpush.msra.mxu1 %v5968_v54  ;;  %2319 = vmatpush.msra.mxu3 %v5980_v23 }
 0x51f   : > { %2299 = vmatpush.msra.mxu2 %v5983_v27 }
 0x520   : > { %2280 = vmatpush.msra.mxu1 %v5992_v30  ;;  %2320 = vmatpush.msra.mxu3 %v5994_v46 }
 0x521   : > { %2300 = vmatpush.msra.mxu2 %v5999_v33 }
 0x522   : > { %2008 = vmatmul.f32.gmra.mxu0 %v7394_v51  ;;  %2049 = vmatmul.f32.gmra.mxu1 %v7394_v51 }
 0x523   : > { %2090 = vmatmul.f32.gmra.mxu2 %v7394_v51  ;;  %2131 = vmatmul.f32.gmra.mxu3 %v7394_v51  ;;  %v6060_v51 = vld [vmem:[#allocation8 + $0xd0] sm:$0xff] }
 0x524   : > { %2281 = vmatpush.msra.mxu1 %v6003_v5  ;;  %2321 = vmatpush.msra.mxu3 %v6006_v6  ;;  %7411 = vst [vmem:[#allocation51_spill] sm:$0xff] %v6060_v51 }
 0x525   : > { %2301 = vmatpush.msra.mxu2 %v6011_v10 }
 0x526   : > { %2282 = vmatpush.msra.mxu1 %v6015_v13  ;;  %2322 = vmatpush.msra.mxu3 %v6025_v8 }
 0x527   : > { %2302 = vmatpush.msra.mxu2 %v6040_v60 }
 0x528   : > { %2283 = vmatpush.msra.mxu1 %v6023_v28  ;;  %2323 = vmatpush.msra.mxu3 %v6034_v56 }
 0x529   : > { %2303 = vmatpush.msra.mxu2 %v6052_v18 }
 0x52a   : > { %2011 = vmatmul.f32.gmra.mxu0 %v7395_v42  ;;  %2052 = vmatmul.f32.gmra.mxu1 %v7395_v42 }
 0x52b   : > { %2093 = vmatmul.f32.gmra.mxu2 %v7395_v42  ;;  %2134 = vmatmul.f32.gmra.mxu3 %v7395_v42 }
 0x52c   : > { %2284 = vmatpush.msra.mxu1 %v6032_v31  ;;  %2324 = vmatpush.msra.mxu3 %v6038_v22 }
 0x52d   : > { %2304 = vmatpush.msra.mxu2 %v6060_v51 }
 0x52e   : > { %2285 = vmatpush.msra.mxu1 %v6045_v49  ;;  %2325 = vmatpush.msra.mxu3 %v6050_v50 }
 0x52f   : > { %2305 = vmatpush.msra.mxu2 %v6066_v59 }
 0x530   : > { %2286 = vmatpush.msra.mxu1 %v6057_v14 }
 0x532   : > { %2014 = vmatmul.f32.gmra.mxu0 %v7400_v47  ;;  %2055 = vmatmul.f32.gmra.mxu1 %v7400_v47 }
 0x533   : > { %2096 = vmatmul.f32.gmra.mxu2 %v7400_v47  ;;  %2137 = vmatmul.f32.gmra.mxu3 %v7400_v47  ;;  %v6064_v47 = vld [vmem:[#allocation8 + $0x98] sm:$0xff] }
 0x534   : > { %7412 = vst [vmem:[#allocation54_spill] sm:$0xff] %v6064_v47  ;;  %2326 = vmatpush.msra.mxu3 %v6064_v47  ;;  %v6114_v47 = vld [vmem:[#allocation8 + $0x8] sm:$0xff] }
 0x535   : > { %7427 = vst [vmem:[#allocation31_spill] sm:$0xff] %v6114_v47 }
 0x53a   : > { %2017 = vmatmul.f32.gmra.mxu0 %v5597_v58  ;;  %2058 = vmatmul.f32.gmra.mxu1 %v5597_v58 }
 0x53b   : > { %2099 = vmatmul.f32.gmra.mxu2 %v5597_v58  ;;  %2140 = vmatmul.f32.gmra.mxu3 %v5597_v58  ;;  %v5959_v58 = vld [vmem:[#allocation8 + $0x180] sm:$0xff] }
 0x53c   : > { %2258 = vmatpush.msra.mxu0 %v5959_v58 }
 0x542   : > { %2020 = vmatmul.f32.gmra.mxu0 %v5679_v32  ;;  %2061 = vmatmul.f32.gmra.mxu1 %v5679_v32 }
 0x543   : > { %2102 = vmatmul.f32.gmra.mxu2 %v5679_v32  ;;  %2143 = vmatmul.f32.gmra.mxu3 %v5679_v32  ;;  %v5964_v32 = vld [vmem:[#allocation8 + $0x160] sm:$0xff] }
 0x544   : > { %2259 = vmatpush.msra.mxu0 %v5964_v32 }
 0x546   : > { %2260 = vmatpush.msra.mxu0 %v5990_v2 }
 0x548   : > { %2261 = vmatpush.msra.mxu0 %v6001_v21 }
 0x54a   : > { %2023 = vmatmul.f32.gmra.mxu0 %v1748_v53  ;;  %2064 = vmatmul.f32.gmra.mxu1 %v1748_v53 }
 0x54b   : > { %2105 = vmatmul.f32.gmra.mxu2 %v1748_v53  ;;  %2146 = vmatmul.f32.gmra.mxu3 %v1748_v53  ;;  %v6055_v53 = vld [vmem:[#allocation8 + $0x80] sm:$0xff] }
 0x54c   : > { %2262 = vmatpush.msra.mxu0 %v6013_v12  ;;  %7409 = vst [vmem:[#allocation49_spill] sm:$0xff] %v6055_v53 }
 0x54e   : > { %2263 = vmatpush.msra.mxu0 %v6018_v16 }
 0x550   : > { %2264 = vmatpush.msra.mxu0 %v6030_v19 }
 0x552   : > { %2265 = vmatpush.msra.mxu0 %v6043_v36 }
 0x554   : > { %2266 = vmatpush.msra.mxu0 %v6055_v53 }
 0x58f   : > { %v1773_v63 = vpop.f32.mrf.mxu0  ;;  %v1793_v0 = vpop.f32.mrf.mxu1 }
 0x590   : > { %v1836_v3 = vadd.f32 %v1773_v63, %v452_v24  ;;  %v1837_v4 = vadd.f32 %v1793_v0, %v493_v35  ;;  %v6071_v35 = vld [vmem:[#allocation8 + $0x60] sm:$0xff]  ;;  %v6073_v63 = vld [vmem:[#allocation8 + $0x68] sm:$0xff] }
 0x591   : > { %7414 = vst [vmem:[#allocation17_spill] sm:$0xff] %v6071_v35  ;;  %2267 = vmatpush.msra.mxu0 %v6071_v35  ;;  %2287 = vmatpush.msra.mxu1 %v6073_v63 }
 0x592   : > { %v3631_v7 = vmul.f32 -1.442695, %v1836_v3  ;;  %v3632_v9 = vmul.f32 -1.442695, %v1837_v4  ;;  %7415 = vst [vmem:[#allocation19_spill] sm:$0xff] %v6073_v63  ;;  %v6080_v3 = vld [vmem:[#allocation8 + $0x78] sm:$0xff] }
 0x593   : > { %7416 = vst [vmem:[#allocation21_spill] sm:$0xff] %v6080_v3  ;;  %v6082_v4 = vld [vmem:[#allocation8 + $0x90] sm:$0xff]  ;;  %2327 = vmatpush.msra.mxu3 %v6080_v3  ;;  %v7425_v63 = vld [vmem:[#allocation67_spill] sm:$0xff] }
 0x594   : > { %3817 = vpow2.f32 %v3631_v7  ;;  %7417 = vst [vmem:[#allocation22_spill] sm:$0xff] %v6082_v4  ;;  %v6086_v7 = vld [vmem:[#allocation8 + $0x40] sm:$0xff]  ;;  %2306 = vmatpush.msra.mxu2 %v6082_v4  ;;  %v534_v35 = vadd.f32 %v7425_v63, %v7387_v44  ;;  %v6116_v4 = vld [vmem:[#allocation8 + $0x38] sm:$0xff] }
 0x595   : > { %3819 = vpow2.f32 %v3632_v9  ;;  %7418 = vst [vmem:[#allocation24_spill] sm:$0xff] %v6086_v7  ;;  %v6088_v9 = vld [vmem:[#allocation8 + $0x48] sm:$0xff]  ;;  %2268 = vmatpush.msra.mxu0 %v6086_v7  ;;  %v6112_v3 = vld [vmem:[#allocation8] sm:$0xff]  ;;  %v6124_v7 = vld [vmem:[#allocation8 + $0x18] sm:$0xff] }
 0x596   : > { %v1833_v15 = vpop.f32.mrf.mxu3  ;;  %7419 = vst [vmem:[#allocation23_spill] sm:$0xff] %v6088_v9  ;;  %2288 = vmatpush.msra.mxu1 %v6088_v9  ;;  %2307 = vmatpush.msra.mxu2 %v6094_v26  ;;  %v6122_v9 = vld [vmem:[#allocation8 + $0x30] sm:$0xff] }
 0x597   : > { %v1839_v48 = vadd.f32 %v1833_v15, %v575_v25  ;;  %v6096_v25 = vld [vmem:[#allocation8 + $0x58] sm:$0xff]  ;;  %v6100_v15 = vld [vmem:[#allocation8 + $0x20] sm:$0xff]  ;;  %7426 = vst [vmem:[#allocation30_spill] sm:$0xff] %v6112_v3 }
 0x598   : > { %7421 = vst [vmem:[#allocation26_spill] sm:$0xff] %v6096_v25  ;;  %2328 = vmatpush.msra.mxu3 %v6096_v25  ;;  %2269 = vmatpush.msra.mxu0 %v6100_v15 }
 0x599   : > { %v3633_v29 = vmul.f32 -1.442695, %v1839_v48  ;;  %7422 = vst [vmem:[#allocation28_spill] sm:$0xff] %v6100_v15  ;;  %v6102_v48 = vld [vmem:[#allocation8 + $0x28] sm:$0xff] }
 0x59a   : > { %v3818_v42 = vpop.eup %3817  ;;  %7423 = vst [vmem:[#allocation27_spill] sm:$0xff] %v6102_v48  ;;  %2289 = vmatpush.msra.mxu1 %v6102_v48  ;;  %2329 = vmatpush.msra.mxu3 %v6116_v4 }
 0x59b   : > { %v3820_v24 = vpop.eup %3819  ;;  %v6068_v20 = vadd.f32 1.0, %v3818_v42  ;;  %3821 = vpow2.f32 %v3633_v29  ;;  %v1813_v29 = vpop.f32.mrf.mxu2  ;;  %v6106_v42 = vld [vmem:[#allocation8 + $0x50] sm:$0xff]  ;;  %7428 = vst [vmem:[#allocation32_spill] sm:$0xff] %v6116_v4  ;;  %2270 = vmatpush.msra.mxu0 %v6112_v3 }
 0x59c   : > { %v6076_v0 = vadd.f32 1.0, %v3820_v24  ;;  %7424 = vst [vmem:[#allocation29_spill] sm:$0xff] %v6106_v42  ;;  %v1838_v63 = vadd.f32 %v1813_v29, %v534_v35  ;;  %2308 = vmatpush.msra.mxu2 %v6106_v42  ;;  %2290 = vmatpush.msra.mxu1 %v6114_v47 }
 0x59d   : > { %3823 = vrcp.f32 %v6068_v20  ;;  %7429 = vst [vmem:[#allocation33_spill] sm:$0xff] %v6122_v9  ;;  %2330 = vmatpush.msra.mxu3 %v6124_v7  ;;  %2407 = vmatpush.msrb.mxu0 %v5915_v41  ;;  %v1855_v4 = vand.u32 2147483648, %v6068_v20  ;;  %vm1849_vm7 = vweird.f32 %v6068_v20 }
 0x59e   : > { %3825 = vrcp.f32 %v6076_v0  ;;  %7430 = vst [vmem:[#allocation34_spill] sm:$0xff] %v6124_v7  ;;  %2309 = vmatpush.msra.mxu2 %v6122_v9  ;;  %2427 = vmatpush.msrb.mxu1 %v5917_v40  ;;  %v1874_v47 = vand.u32 2147483648, %v6076_v0  ;;  %v1853_v9 = vand.u32 2147483647, %v6068_v20  ;;  %vm1868_vm8 = vweird.f32 %v6076_v0 }
 0x59f   : > { %2467 = vmatpush.msrb.mxu3 %v5925_v11  ;;  %2408 = vmatpush.msrb.mxu0 %v5919_v34 }
 0x5a0   : > { %2428 = vmatpush.msrb.mxu1 %v5923_v38  ;;  %vm1854_vm11 = vcmp.eq.f32.partialorder %v1853_v9, 8.507059e+37 }
 0x5a1   : > { %v3822_v24 = vpop.eup %3821  ;;  %2468 = vmatpush.msrb.mxu3 %v5932_v43  ;;  %2409 = vmatpush.msrb.mxu0 %v5928_v57 }
 0x5a2   : > { %v6118_v14 = vadd.f32 1.0, %v3822_v24  ;;  %v6132_v24 = vld [vmem:[#allocation8 + $0x10] sm:$0xff]  ;;  %2429 = vmatpush.msrb.mxu1 %v5930_v45 }
 0x5a3   : > { %v3824_v44 = vpop.eup %3823  ;;  %7431 = vst [vmem:[#allocation35_spill] sm:$0xff] %v6132_v24  ;;  %2310 = vmatpush.msra.mxu2 %v6132_v24  ;;  %2469 = vmatpush.msrb.mxu3 %v5956_v62 }
 0x5a4   : > { %v3826_v25 = vpop.eup %3825  ;;  %v1845_v26 = vmul.f32 %v3824_v44, %v6068_v20  ;;  %3827 = vrcp.f32 %v6118_v14  ;;  %vm1850_vm5 = vweird.f32 %v3824_v44  ;;  %v1875_v20 = vor.u32 1.1754944e-38, %v1874_v47  ;;  %2410 = vmatpush.msrb.mxu0 %v5959_v58  ;;  %2430 = vmatpush.msrb.mxu1 %v5961_v1 }
 0x5a5   : > { %v1864_v48 = vmul.f32 %v3826_v25, %v6076_v0  ;;  %3829 = vtanh.f32 %v1838_v63  ;;  %2447 = vmatpush.msrb.mxu2 %v5951_v55  ;;  %vm1869_vm6 = vweird.f32 %v3826_v25  ;;  %vm1851_vm9 = vmor %vm1849_vm7, %vm1850_vm5  ;;  %2470 = vmatpush.msrb.mxu3 %v5970_v39  ;;  %vm1888_vm14 = vweird.f32 %v6118_v14 }
 0x5a6   : > { %v1846_v35 = vsub.f32 1.0, %v1845_v26  ;;  %vm1870_vm10 = vmor %vm1868_vm8, %vm1869_vm6  ;;  %2411 = vmatpush.msrb.mxu0 %v5964_v32  ;;  %2431 = vmatpush.msrb.mxu1 %v5968_v54 }
 0x5a7   : > { %v1865_v29 = vsub.f32 1.0, %v1864_v48  ;;  %v1872_v48 = vand.u32 2147483647, %v6076_v0  ;;  %2448 = vmatpush.msrb.mxu2 %v5954_v37  ;;  %2471 = vmatpush.msrb.mxu3 %v5980_v23 }
 0x5a8   : > { %v1847_v3 = vmul.f32 %v3824_v44, %v1846_v35  ;;  %v1856_v35 = vor.u32 1.1754944e-38, %v1855_v4  ;;  %2412 = vmatpush.msrb.mxu0 %v5990_v2  ;;  %2432 = vmatpush.msrb.mxu1 %v5992_v30 }
 0x5a9   : > { %v1866_v26 = vmul.f32 %v3826_v25, %v1865_v29  ;;  %2449 = vmatpush.msrb.mxu2 %v5972_v52  ;;  %vm1873_vm12 = vcmp.eq.f32.partialorder %v1872_v48, 8.507059e+37  ;;  %2472 = vmatpush.msrb.mxu3 %v5994_v46  ;;  %v7432_v48 = vld [vmem:[#allocation50_spill] sm:$0xff] }
 0x5aa   : > { %v6149_v63 = vpop.eup %3827  ;;  %v1848_v11 = vadd.f32 %v3824_v44, %v1847_v3  ;;  %2413 = vmatpush.msrb.mxu0 %v6001_v21  ;;  %2433 = vmatpush.msrb.mxu1 %v6003_v5 }
 0x5ab   : > { %v1867_v29 = vadd.f32 %v3826_v25, %v1866_v26  ;;  %v1884_v38 = vmul.f32 %v6149_v63, %v6118_v14  ;;  %v3830_v0 = vpop.eup %3829  ;;  %2450 = vmatpush.msrb.mxu2 %v5976_v61  ;;  %vm1889_vm13 = vweird.f32 %v6149_v63  ;;  %2473 = vmatpush.msrb.mxu3 %v6006_v6 }
 0x5ac   : > { %v1852_v3 = vsel %vm1851_vm9, %v3824_v44, %v1848_v11  ;;  %vm1890_vm15 = vmor %vm1888_vm14, %vm1889_vm13  ;;  %2414 = vmatpush.msrb.mxu0 %v6013_v12  ;;  %2434 = vmatpush.msrb.mxu1 %v6015_v13 }
 0x5ad   : > { %v1857_v57 = vsel %vm1854_vm11, %v1856_v35, %v1852_v3  ;;  %v1871_v4 = vsel %vm1870_vm10, %v3826_v25, %v1867_v29  ;;  %v1885_v26 = vsub.f32 1.0, %v1884_v38  ;;  %2451 = vmatpush.msrb.mxu2 %v5983_v27  ;;  %2474 = vmatpush.msrb.mxu3 %v6025_v8  ;;  %v7434_v35 = vld [vmem:[#allocation54_spill] sm:$0xff]  ;;  %v2249_v29 = vld [vmem:[#allocation6] sm:$0xff]  ;;  %v7436_v3 = vld [vmem:[#allocation19_spill] sm:$0xff] }
 0x5ae   : > { %v1876_v45 = vsel %vm1873_vm12, %v1875_v20, %v1871_v4  ;;  %v1899_v62 = vmul.f32 %v3830_v0, %v1857_v57  ;;  %2415 = vmatpush.msrb.mxu0 %v6018_v16  ;;  %2435 = vmatpush.msrb.mxu1 %v6023_v28  ;;  %v7435_v20 = vld [vmem:[#allocation17_spill] sm:$0xff] }
 0x5af   : > { %v1898_v11 = vmul.f32 %v1876_v45, %v5900_v17  ;;  %v1886_v47 = vmul.f32 %v6149_v63, %v1885_v26  ;;  %2452 = vmatpush.msrb.mxu2 %v5999_v33  ;;  %v1894_v17 = vand.u32 2147483648, %v6118_v14  ;;  %v1892_v45 = vand.u32 2147483647, %v6118_v14  ;;  %2475 = vmatpush.msrb.mxu3 %v6034_v56  ;;  %v7437_v0 = vld [vmem:[#allocation25_spill] sm:$0xff]  ;;  %v7439_v26 = vld [vmem:[#allocation24_spill] sm:$0xff] }
 0x5b0   : > { %2416 = vmatpush.msrb.mxu0 %v6030_v19  ;;  %2436 = vmatpush.msrb.mxu1 %v6032_v31  ;;  %v7438_v4 = vld [vmem:[#allocation21_spill] sm:$0xff] }
 0x5b1   : > { %v1900_v38 = vadd.f32 %v1899_v62, %v1898_v11  ;;  %v1887_v57 = vadd.f32 %v6149_v63, %v1886_v47  ;;  %2453 = vmatpush.msrb.mxu2 %v6011_v10  ;;  %v1895_v9 = vor.u32 1.1754944e-38, %v1894_v17  ;;  %vm1893_vm0 = vcmp.eq.f32.partialorder %v1892_v45, 8.507059e+37  ;;  %2476 = vmatpush.msrb.mxu3 %v6038_v22  ;;  %v7440_v11 = vld [vmem:[#allocation23_spill] sm:$0xff]  ;;  %v7441_v47 = vld [vmem:[#allocation26_spill] sm:$0xff]  ;;  %v7444_v17 = vld [vmem:[#allocation32_spill] sm:$0xff] }
 0x5b2   : > { %2417 = vmatpush.msrb.mxu0 %v6043_v36  ;;  %2437 = vmatpush.msrb.mxu1 %v6045_v49  ;;  %v7445_v45 = vld [vmem:[#allocation30_spill] sm:$0xff] }
 0x5b3   : > { %3831 = vtanh.f32 %v1900_v38  ;;  %1906 = vst [vmem:[#allocation5] sm:$0xff] %v1900_v38  ;;  %v1891_v62 = vsel %vm1890_vm15, %v6149_v63, %v1887_v57  ;;  %2454 = vmatpush.msrb.mxu2 %v6040_v60  ;;  %2477 = vmatpush.msrb.mxu3 %v6050_v50  ;;  %v7433_v63 = vld [vmem:[#allocation22_spill] sm:$0xff]  ;;  %v7442_v38 = vld [vmem:[#allocation27_spill] sm:$0xff]  ;;  %v7443_v57 = vld [vmem:[#allocation33_spill] sm:$0xff] }
 0x5b4   : > { %v1896_v25 = vsel %vm1893_vm0, %v1895_v9, %v1891_v62  ;;  %2418 = vmatpush.msrb.mxu0 %v6055_v53  ;;  %2438 = vmatpush.msrb.mxu1 %v7432_v48  ;;  %v7446_v62 = vld [vmem:[#allocation31_spill] sm:$0xff]  ;;  %v7447_v9 = vld [vmem:[#allocation13_spill] sm:$0xff] }
 0x5b5   : > { %2455 = vmatpush.msrb.mxu2 %v6052_v18  ;;  %2478 = vmatpush.msrb.mxu3 %v7434_v35 }
 0x5b6   : > { %2419 = vmatpush.msrb.mxu0 %v7435_v20  ;;  %2439 = vmatpush.msrb.mxu1 %v7436_v3 }
 0x5b7   : > { %2456 = vmatpush.msrb.mxu2 %v6060_v51  ;;  %2479 = vmatpush.msrb.mxu3 %v7438_v4 }
 0x5b8   : > { %2420 = vmatpush.msrb.mxu0 %v7439_v26  ;;  %2440 = vmatpush.msrb.mxu1 %v7440_v11 }
 0x5b9   : > { %v3832_v14 = vpop.eup %3831  ;;  %2457 = vmatpush.msrb.mxu2 %v6066_v59  ;;  %2480 = vmatpush.msrb.mxu3 %v7441_v47 }
 0x5ba   : > { %v1902_v44 = vmul.f32 %v3832_v14, %v1896_v25  ;;  %2421 = vmatpush.msrb.mxu0 %v6100_v15  ;;  %2441 = vmatpush.msrb.mxu1 %v7442_v38  ;;  %v7448_v14 = vld [vmem:[#allocation11_spill] sm:$0xff]  ;;  %v7449_v25 = vld [vmem:[#allocation14_spill] sm:$0xff] }
 0x5bb   : > { %2458 = vmatpush.msrb.mxu2 %v7433_v63  ;;  %2481 = vmatpush.msrb.mxu3 %v7444_v17 }
 0x5bc   : > { %1905 = vst [vmem:[#allocation4] sm:$0xff] %v1902_v44  ;;  %2026 = vmatmul.f32.gmra.mxu0 %v1902_v44  ;;  %2067 = vmatmul.f32.gmra.mxu1 %v1902_v44 }
 0x5bd   : > { %2108 = vmatmul.f32.gmra.mxu2 %v1902_v44  ;;  %2149 = vmatmul.f32.gmra.mxu3 %v1902_v44  ;;  %v7450_v44 = vld [vmem:[#allocation16_spill] sm:$0xff] }
 0x5be   : > { %2459 = vmatpush.msrb.mxu2 %v7437_v0  ;;  %2422 = vmatpush.msrb.mxu0 %v7445_v45 }
 0x5bf   : > { %2442 = vmatpush.msrb.mxu1 %v7446_v62  ;;  %2482 = vmatpush.msrb.mxu3 %v6124_v7 }
 0x5c0   : > { %2460 = vmatpush.msrb.mxu2 %v6106_v42 }
 0x5c2   : > { %2461 = vmatpush.msrb.mxu2 %v7443_v57 }
 0x5c4   : > { %2271 = vmatmul.f32.vlgmr.msra.gmra.mxu0 %v2249_v29  ;;  %2291 = vmatmul.f32.vlgmr.msra.gmra.mxu1 %v2249_v29 }
 0x5c5   : > { %2311 = vmatmul.f32.vlgmr.msra.gmra.mxu2 %v2249_v29  ;;  %2331 = vmatmul.f32.vlgmr.msra.gmra.mxu3 %v2249_v29  ;;  %v7451_v29 = vld [vmem:[#allocation15_spill] sm:$0xff] }
 0x5c6   : > { %2462 = vmatpush.msrb.mxu2 %v6132_v24  ;;  %2560 = vmatpush.msra.mxu0 %v5915_v41 }
 0x5c7   : > { %2580 = vmatpush.msra.mxu1 %v5917_v40  ;;  %2620 = vmatpush.msra.mxu3 %v7447_v9 }
 0x5c8   : > { %2600 = vmatpush.msra.mxu2 %v5951_v55  ;;  %2561 = vmatpush.msra.mxu0 %v5919_v34 }
 0x5c9   : > { %2581 = vmatpush.msra.mxu1 %v7448_v14  ;;  %2621 = vmatpush.msra.mxu3 %v5932_v43 }
 0x5ca   : > { %2601 = vmatpush.msra.mxu2 %v5954_v37  ;;  %2562 = vmatpush.msra.mxu0 %v7449_v25 }
 0x5cb   : > { %2582 = vmatpush.msra.mxu1 %v7450_v44  ;;  %2622 = vmatpush.msra.mxu3 %v7451_v29 }
 0x5cc   : > { %2602 = vmatpush.msra.mxu2 %v5972_v52  ;;  %2563 = vmatpush.msra.mxu0 %v5959_v58 }
 0x5cd   : > { %2583 = vmatpush.msra.mxu1 %v5961_v1  ;;  %2623 = vmatpush.msra.mxu3 %v5970_v39 }
 0x5ce   : > { %2603 = vmatpush.msra.mxu2 %v5976_v61  ;;  %2564 = vmatpush.msra.mxu0 %v5964_v32 }
 0x5cf   : > { %2584 = vmatpush.msra.mxu1 %v5968_v54  ;;  %2624 = vmatpush.msra.mxu3 %v5980_v23 }
 0x5d0   : > { %2604 = vmatpush.msra.mxu2 %v5983_v27  ;;  %2565 = vmatpush.msra.mxu0 %v5990_v2 }
 0x5d1   : > { %2585 = vmatpush.msra.mxu1 %v5992_v30  ;;  %2625 = vmatpush.msra.mxu3 %v5994_v46 }
 0x5d2   : > { %2605 = vmatpush.msra.mxu2 %v5999_v33  ;;  %2566 = vmatpush.msra.mxu0 %v6001_v21 }
 0x5d3   : > { %2586 = vmatpush.msra.mxu1 %v6003_v5  ;;  %2626 = vmatpush.msra.mxu3 %v6006_v6 }
 0x5d4   : > { %2606 = vmatpush.msra.mxu2 %v6011_v10  ;;  %2567 = vmatpush.msra.mxu0 %v6013_v12 }
 0x5d5   : > { %2587 = vmatpush.msra.mxu1 %v6015_v13  ;;  %2627 = vmatpush.msra.mxu3 %v6025_v8 }
 0x5d6   : > { %2607 = vmatpush.msra.mxu2 %v6040_v60  ;;  %2568 = vmatpush.msra.mxu0 %v6018_v16 }
 0x5d7   : > { %2588 = vmatpush.msra.mxu1 %v6023_v28  ;;  %2628 = vmatpush.msra.mxu3 %v6034_v56 }
 0x5d8   : > { %2608 = vmatpush.msra.mxu2 %v6052_v18  ;;  %2569 = vmatpush.msra.mxu0 %v6030_v19 }
 0x5d9   : > { %2589 = vmatpush.msra.mxu1 %v6032_v31  ;;  %2629 = vmatpush.msra.mxu3 %v6038_v22 }
 0x5da   : > { %2609 = vmatpush.msra.mxu2 %v6060_v51  ;;  %2570 = vmatpush.msra.mxu0 %v6043_v36 }
 0x5db   : > { %2590 = vmatpush.msra.mxu1 %v6045_v49  ;;  %2630 = vmatpush.msra.mxu3 %v6050_v50 }
 0x5dc   : > { %2610 = vmatpush.msra.mxu2 %v6066_v59  ;;  %2571 = vmatpush.msra.mxu0 %v6055_v53 }
 0x5dd   : > { %2591 = vmatpush.msra.mxu1 %v7432_v48  ;;  %2631 = vmatpush.msra.mxu3 %v7434_v35 }
 0x5de   : > { %2611 = vmatpush.msra.mxu2 %v7433_v63  ;;  %2572 = vmatpush.msra.mxu0 %v7435_v20 }
 0x5df   : > { %2592 = vmatpush.msra.mxu1 %v7436_v3  ;;  %2632 = vmatpush.msra.mxu3 %v7438_v4 }
 0x5e0   : > { %2612 = vmatpush.msra.mxu2 %v7437_v0  ;;  %2573 = vmatpush.msra.mxu0 %v7439_v26  ;;  %v2129_v26 = vpop.f32.mrf.mxu3 }
 0x5e1   : > { %2593 = vmatpush.msra.mxu1 %v7440_v11  ;;  %2633 = vmatpush.msra.mxu3 %v7441_v47  ;;  %v2006_v11 = vpop.f32.mrf.mxu0 }
 0x5e2   : > { %2613 = vmatpush.msra.mxu2 %v6106_v42  ;;  %2574 = vmatpush.msra.mxu0 %v6100_v15  ;;  %v2047_v42 = vpop.f32.mrf.mxu1 }
 0x5e3   : > { %2594 = vmatpush.msra.mxu1 %v7442_v38  ;;  %2634 = vmatpush.msra.mxu3 %v7444_v17  ;;  %v2088_v38 = vpop.f32.mrf.mxu2 }
 0x5e4   : > { %2614 = vmatpush.msra.mxu2 %v7443_v57  ;;  %2575 = vmatpush.msra.mxu0 %v7445_v45 }
 0x5e5   : > { %2595 = vmatpush.msra.mxu1 %v7446_v62  ;;  %2635 = vmatpush.msra.mxu3 %v6124_v7 }
 0x5e6   : > { %2615 = vmatpush.msra.mxu2 %v6132_v24 }
 0x5e8   : > { %v6290_v4 = vpop.f32.mrf.mxu3 }
 0x5e9   : > { %v6286_v47 = vpop.f32.mrf.mxu0  ;;  %7454 = vst [vmem:[#allocation38_spill] sm:$0xff] %v6290_v4 }
 0x5ea   : > { %7452 = vst [vmem:[#allocation36_spill] sm:$0xff] %v6286_v47  ;;  %v6288_v15 = vpop.f32.mrf.mxu1 }
 0x5eb   : > { %7453 = vst [vmem:[#allocation37_spill] sm:$0xff] %v6288_v15  ;;  %v6296_v45 = vpop.f32.mrf.mxu2 }
 0x5ec   : > { %7457 = vst [vmem:[#allocation41_spill] sm:$0xff] %v6296_v45 }
 0x5f0   : > { %v6298_v62 = vpop.f32.mrf.mxu3 }
 0x5f1   : > { %v6292_v57 = vpop.f32.mrf.mxu0  ;;  %7458 = vst [vmem:[#allocation42_spill] sm:$0xff] %v6298_v62 }
 0x5f2   : > { %7455 = vst [vmem:[#allocation40_spill] sm:$0xff] %v6292_v57  ;;  %v6294_v17 = vpop.f32.mrf.mxu1 }
 0x5f3   : > { %7456 = vst [vmem:[#allocation39_spill] sm:$0xff] %v6294_v17  ;;  %v6304_v0 = vpop.f32.mrf.mxu2 }
 0x5f4   : > { %7461 = vst [vmem:[#allocation52_spill] sm:$0xff] %v6304_v0 }
 0x5f8   : > { %v6306_v47 = vpop.f32.mrf.mxu3 }
 0x5f9   : > { %v6300_v24 = vpop.f32.mrf.mxu0  ;;  %7462 = vst [vmem:[#allocation63_spill] sm:$0xff] %v6306_v47 }
 0x5fa   : > { %7459 = vst [vmem:[#allocation44_spill] sm:$0xff] %v6300_v24  ;;  %v6302_v7 = vpop.f32.mrf.mxu1 }
 0x5fb   : > { %7460 = vst [vmem:[#allocation62_spill] sm:$0xff] %v6302_v7  ;;  %v6312_v4 = vpop.f32.mrf.mxu2 }
 0x5fc   : > { %7465 = vst [vmem:[#allocation55_spill] sm:$0xff] %v6312_v4 }
 0x600   : > { %v6314_v57 = vpop.f32.mrf.mxu3 }
 0x601   : > { %v6308_v15 = vpop.f32.mrf.mxu0  ;;  %7466 = vst [vmem:[#allocation68_spill] sm:$0xff] %v6314_v57  ;;  %v1979_v57 = vld [vmem:[%s6912_s6] sm:$0xf] }
 0x602   : > { %7463 = vst [vmem:[#allocation53_spill] sm:$0xff] %v6308_v15  ;;  %v6310_v3 = vpop.f32.mrf.mxu1  ;;  %v6349_v63 = vperm.slane %v1979_v57, 3 }
 0x603   : > { %7464 = vst [vmem:[#allocation66_spill] sm:$0xff] %v6310_v3  ;;  %v6320_v62 = vpop.f32.mrf.mxu2 }
 0x604   : > { %7469 = vst [vmem:[#allocation57_spill] sm:$0xff] %v6320_v62  ;;  %v6341_v62 = vperm.slane %v1979_v57, 1  ;;  %v2130_v48 = vadd.f32 %v2129_v26, %v6349_v63 }
 0x605   : > { %7481 = vst [vmem:[#allocation11_spill] sm:$0xff] %v6349_v63 }
 0x606   : > { %7478 = vst [vmem:[#allocation65_spill] sm:$0xff] %v6341_v62 }
 0x608   : > { %v6322_v24 = vpop.f32.mrf.mxu3 }
 0x609   : > { %v6316_v17 = vpop.f32.mrf.mxu0  ;;  %7470 = vst [vmem:[#allocation59_spill] sm:$0xff] %v6322_v24 }
 0x60a   : > { %7467 = vst [vmem:[#allocation58_spill] sm:$0xff] %v6316_v17  ;;  %v6318_v45 = vpop.f32.mrf.mxu1 }
 0x60b   : > { %7468 = vst [vmem:[#allocation56_spill] sm:$0xff] %v6318_v45  ;;  %v6328_v47 = vpop.f32.mrf.mxu2  ;;  %v6339_v45 = vperm.slane %v1979_v57, 0 }
 0x60c   : > { %7473 = vst [vmem:[#allocation12_spill] sm:$0xff] %v6328_v47 }
 0x60d   : > { %7477 = vst [vmem:[#allocation61_spill] sm:$0xff] %v6339_v45 }
 0x610   : > { %v6330_v15 = vpop.f32.mrf.mxu3 }
 0x611   : > { %v6324_v7 = vpop.f32.mrf.mxu0  ;;  %7474 = vst [vmem:[#allocation18_spill] sm:$0xff] %v6330_v15 }
 0x612   : > { %7471 = vst [vmem:[#allocation64_spill] sm:$0xff] %v6324_v7  ;;  %v6326_v0 = vpop.f32.mrf.mxu1  ;;  %v2007_v7 = vadd.f32 %v2006_v11, %v6339_v45 }
 0x613   : > { %7472 = vst [vmem:[#allocation69_spill] sm:$0xff] %v6326_v0  ;;  %v2048_v0 = vadd.f32 %v2047_v42, %v6341_v62  ;;  %v6345_v24 = vpop.f32.mrf.mxu2 }
 0x614   : > { %7479 = vst [vmem:[#allocation67_spill] sm:$0xff] %v6345_v24 }
 0x639   : > { %v6335_v3 = vpop.f32.mrf.mxu0  ;;  %v6337_v17 = vpop.f32.mrf.mxu1 }
 0x63a   : > { %7475 = vst [vmem:[#allocation43_spill] sm:$0xff] %v6335_v3 }
 0x63b   : > { %7476 = vst [vmem:[#allocation60_spill] sm:$0xff] %v6337_v17 }
 0x640   : > { %v6347_v47 = vpop.f32.mrf.mxu3  ;;  %v6352_v53 = vpop.f32.mrf.mxu2 }
 0x641   : > { %7480 = vst [vmem:[#allocation13_spill] sm:$0xff] %v6347_v47  ;;  %v2272_v15 = vpop.f32.mrf.mxu0  ;;  %v2292_v4 = vpop.f32.mrf.mxu1 }
 0x642   : > { %v2335_v20 = vadd.f32 %v2272_v15, %v2007_v7  ;;  %v2336_v35 = vadd.f32 %v2292_v4, %v2048_v0  ;;  %7482 = vst [vmem:[#allocation14_spill] sm:$0xff] %v6352_v53  ;;  %v6354_v7 = vperm.slane %v1979_v57, 2 }
 0x644   : > { %v3634_v3 = vmul.f32 -1.442695, %v2335_v20  ;;  %v3635_v17 = vmul.f32 -1.442695, %v2336_v35  ;;  %7483 = vst [vmem:[#allocation16_spill] sm:$0xff] %v6354_v7  ;;  %v2089_v20 = vadd.f32 %v2088_v38, %v6354_v7 }
 0x646   : > { %3833 = vpow2.f32 %v3634_v3 }
 0x647   : > { %3835 = vpow2.f32 %v3635_v17 }
 0x648   : > { %v2332_v11 = vpop.f32.mrf.mxu3  ;;  %v2312_v15 = vpop.f32.mrf.mxu2 }
 0x649   : > { %v2338_v42 = vadd.f32 %v2332_v11, %v2130_v48  ;;  %v2337_v4 = vadd.f32 %v2312_v15, %v2089_v20 }
 0x64b   : > { %v3636_v62 = vmul.f32 -1.442695, %v2338_v42 }
 0x64c   : > { %v3834_v24 = vpop.eup %3833 }
 0x64d   : > { %v3836_v45 = vpop.eup %3835  ;;  %v2342_v47 = vadd.f32 1.0, %v3834_v24  ;;  %3837 = vpow2.f32 %v3636_v62 }
 0x64e   : > { %v2361_v50 = vadd.f32 1.0, %v3836_v45 }
 0x64f   : > { %3839 = vrcp.f32 %v2342_v47  ;;  %v2354_v24 = vand.u32 2147483648, %v2342_v47  ;;  %v2352_v62 = vand.u32 2147483647, %v2342_v47  ;;  %vm2348_vm3 = vweird.f32 %v2342_v47 }
 0x650   : > { %3841 = vrcp.f32 %v2361_v50  ;;  %v2373_v45 = vand.u32 2147483648, %v2361_v50  ;;  %v2371_v63 = vand.u32 2147483647, %v2361_v50  ;;  %vm2367_vm4 = vweird.f32 %v2361_v50 }
 0x651   : > { %v2355_v15 = vor.u32 1.1754944e-38, %v2354_v24  ;;  %vm2353_vm7 = vcmp.eq.f32.partialorder %v2352_v62, 8.507059e+37 }
 0x652   : > { %vm2372_vm8 = vcmp.eq.f32.partialorder %v2371_v63, 8.507059e+37 }
 0x653   : > { %v3838_v35 = vpop.eup %3837 }
 0x654   : > { %v2381_v3 = vadd.f32 1.0, %v3838_v35 }
 0x655   : > { %v3840_v0 = vpop.eup %3839 }
 0x656   : > { %v3842_v26 = vpop.eup %3841  ;;  %v2344_v17 = vmul.f32 %v3840_v0, %v2342_v47  ;;  %3843 = vrcp.f32 %v2381_v3  ;;  %vm2349_vm1 = vweird.f32 %v3840_v0  ;;  %v2393_v24 = vand.u32 2147483648, %v2381_v3 }
 0x657   : > { %v2363_v48 = vmul.f32 %v3842_v26, %v2361_v50  ;;  %3845 = vtanh.f32 %v2337_v4  ;;  %vm2368_vm2 = vweird.f32 %v3842_v26  ;;  %vm2350_vm5 = vmor %vm2348_vm3, %vm2349_vm1  ;;  %vm2387_vm10 = vweird.f32 %v2381_v3 }
 0x658   : > { %v2345_v11 = vsub.f32 1.0, %v2344_v17  ;;  %vm2369_vm6 = vmor %vm2367_vm4, %vm2368_vm2  ;;  %v2374_v17 = vor.u32 1.1754944e-38, %v2373_v45 }
 0x659   : > { %v2364_v42 = vsub.f32 1.0, %v2363_v48  ;;  %v2250_v48 = vld [vmem:[#allocation7] sm:$0xff] }
 0x65a   : > { %v2346_v57 = vmul.f32 %v3840_v0, %v2345_v11 }
 0x65b   : > { %v2365_v53 = vmul.f32 %v3842_v26, %v2364_v42 }
 0x65c   : > { %v3844_v59 = vpop.eup %3843  ;;  %v2347_v38 = vadd.f32 %v3840_v0, %v2346_v57 }
 0x65d   : > { %v2366_v35 = vadd.f32 %v3842_v26, %v2365_v53  ;;  %v2383_v20 = vmul.f32 %v3844_v59, %v2381_v3  ;;  %v3846_v4 = vpop.eup %3845  ;;  %vm2388_vm9 = vweird.f32 %v3844_v59 }
 0x65e   : > { %v2351_v7 = vsel %vm2350_vm5, %v3840_v0, %v2347_v38  ;;  %v2391_v0 = vand.u32 2147483647, %v2381_v3  ;;  %vm2389_vm11 = vmor %vm2387_vm10, %vm2388_vm9 }
 0x65f   : > { %v2356_v11 = vsel %vm2353_vm7, %v2355_v15, %v2351_v7  ;;  %v2370_v49 = vsel %vm2369_vm6, %v3842_v26, %v2366_v35  ;;  %v2384_v42 = vsub.f32 1.0, %v2383_v20  ;;  %v2394_v7 = vor.u32 1.1754944e-38, %v2393_v24 }
 0x660   : > { %v2375_v36 = vsel %vm2372_vm8, %v2374_v17, %v2370_v49  ;;  %v2398_v22 = vmul.f32 %v3846_v4, %v2356_v11  ;;  %vm2392_vm12 = vcmp.eq.f32.partialorder %v2391_v0, 8.507059e+37  ;;  %v7517_v4 = vld [vmem:[#allocation41_spill] sm:$0xff] }
 0x661   : > { %v2397_v51 = vmul.f32 %v2375_v36, %v2250_v48  ;;  %v2385_v47 = vmul.f32 %v3844_v59, %v2384_v42  ;;  %v7516_v48 = vld [vmem:[#allocation16_spill] sm:$0xff] }
 0x662   : > { %v2092_v11 = vadd.f32 %v7517_v4, %v7516_v48  ;;  %v6498_v4 = vld [vmem:[#allocation8 + $0x140] sm:$0xff] }
 0x663   : > { %v6357_v50 = vadd.f32 %v2398_v22, %v2397_v51  ;;  %v2386_v53 = vadd.f32 %v3844_v59, %v2385_v47 }
 0x665   : > { %3847 = vtanh.f32 %v6357_v50  ;;  %v2390_v45 = vsel %vm2389_vm11, %v3844_v59, %v2386_v53 }
 0x666   : > { %v2395_v26 = vsel %vm2392_vm12, %v2394_v7, %v2390_v45 }
 0x66b   : > { %v3848_v63 = vpop.eup %3847 }
 0x66c   : > { %v2401_v49 = vmul.f32 %v3848_v63, %v2395_v26 }
 0x66e   : > { %2402 = vst [vmem:[%s4224_s20] sm:$0xff] %v2401_v49  ;;  %2423 = vmatmul.f32.vlgmr.msrb.gmra.mxu0 %v2401_v49  ;;  %2443 = vmatmul.f32.vlgmr.msrb.gmra.mxu1 %v2401_v49 }
 0x66f   : > { %2463 = vmatmul.f32.vlgmr.msrb.gmra.mxu2 %v2401_v49  ;;  %2483 = vmatmul.f32.vlgmr.msrb.gmra.mxu3 %v2401_v49 }
 0x670   : > { %2713 = vmatpush.msrb.mxu0 %v5915_v41  ;;  %2733 = vmatpush.msrb.mxu1 %v5917_v40  ;;  %v7484_v41 = vld [vmem:[#allocation51_spill] sm:$0xff]  ;;  %v7485_v40 = vld [vmem:[#allocation45_spill] sm:$0xff] }
 0x671   : > { %2753 = vmatpush.msrb.mxu2 %v5951_v55  ;;  %2773 = vmatpush.msrb.mxu3 %v7447_v9  ;;  %v7488_v55 = vld [vmem:[#allocation20_spill] sm:$0xff] }
 0x672   : > { %2714 = vmatpush.msrb.mxu0 %v5919_v34  ;;  %2734 = vmatpush.msrb.mxu1 %v7448_v14  ;;  %v7486_v34 = vld [vmem:[#allocation46_spill] sm:$0xff]  ;;  %v7514_v14 = vld [vmem:[#allocation11_spill] sm:$0xff] }
 0x673   : > { %2754 = vmatpush.msrb.mxu2 %v5954_v37  ;;  %2774 = vmatpush.msrb.mxu3 %v5932_v43  ;;  %v7487_v43 = vld [vmem:[#allocation48_spill] sm:$0xff]  ;;  %v7489_v37 = vld [vmem:[#allocation47_spill] sm:$0xff] }
 0x674   : > { %2715 = vmatpush.msrb.mxu0 %v7449_v25  ;;  %2735 = vmatpush.msrb.mxu1 %v7450_v44  ;;  %v7515_v25 = vld [vmem:[#allocation38_spill] sm:$0xff] }
 0x675   : > { %2755 = vmatpush.msrb.mxu2 %v5972_v52  ;;  %2775 = vmatpush.msrb.mxu3 %v7451_v29  ;;  %v7495_v52 = vld [vmem:[#allocation19_spill] sm:$0xff]  ;;  %v2133_v44 = vadd.f32 %v7515_v25, %v7514_v14  ;;  %v6465_v25 = vld [vmem:[#allocation8 + $0x1a8] sm:$0xff] }
 0x676   : > { %2716 = vmatpush.msrb.mxu0 %v5959_v58  ;;  %2736 = vmatpush.msrb.mxu1 %v5961_v1  ;;  %v7490_v58 = vld [vmem:[#allocation49_spill] sm:$0xff]  ;;  %v7491_v1 = vld [vmem:[#allocation50_spill] sm:$0xff] }
 0x677   : > { %2756 = vmatpush.msrb.mxu2 %v5976_v61  ;;  %2776 = vmatpush.msrb.mxu3 %v5970_v39  ;;  %v7494_v39 = vld [vmem:[#allocation17_spill] sm:$0xff] }
 0x678   : > { %2717 = vmatpush.msrb.mxu0 %v5964_v32  ;;  %2737 = vmatpush.msrb.mxu1 %v5968_v54  ;;  %v7492_v32 = vld [vmem:[#allocation22_spill] sm:$0xff]  ;;  %v7496_v61 = vld [vmem:[#allocation25_spill] sm:$0xff] }
 0x679   : > { %2757 = vmatpush.msrb.mxu2 %v5983_v27  ;;  %2777 = vmatpush.msrb.mxu3 %v5980_v23  ;;  %v7493_v54 = vld [vmem:[#allocation54_spill] sm:$0xff]  ;;  %v7497_v23 = vld [vmem:[#allocation21_spill] sm:$0xff]  ;;  %v7498_v27 = vld [vmem:[#allocation24_spill] sm:$0xff] }
 0x67a   : > { %2718 = vmatpush.msrb.mxu0 %v5990_v2  ;;  %2738 = vmatpush.msrb.mxu1 %v5992_v30  ;;  %v7499_v2 = vld [vmem:[#allocation23_spill] sm:$0xff]  ;;  %v7500_v30 = vld [vmem:[#allocation29_spill] sm:$0xff] }
 0x67b   : > { %2758 = vmatpush.msrb.mxu2 %v5999_v33  ;;  %2778 = vmatpush.msrb.mxu3 %v5994_v46  ;;  %v7501_v46 = vld [vmem:[#allocation26_spill] sm:$0xff]  ;;  %v7502_v33 = vld [vmem:[#allocation28_spill] sm:$0xff] }
 0x67c   : > { %2719 = vmatpush.msrb.mxu0 %v6001_v21  ;;  %2739 = vmatpush.msrb.mxu1 %v6003_v5  ;;  %v7503_v21 = vld [vmem:[#allocation27_spill] sm:$0xff]  ;;  %v7504_v5 = vld [vmem:[#allocation33_spill] sm:$0xff] }
 0x67d   : > { %2759 = vmatpush.msrb.mxu2 %v6011_v10  ;;  %2779 = vmatpush.msrb.mxu3 %v6006_v6  ;;  %v7505_v6 = vld [vmem:[#allocation32_spill] sm:$0xff]  ;;  %v7506_v10 = vld [vmem:[#allocation30_spill] sm:$0xff] }
 0x67e   : > { %2720 = vmatpush.msrb.mxu0 %v6013_v12  ;;  %2740 = vmatpush.msrb.mxu1 %v6015_v13  ;;  %v7507_v12 = vld [vmem:[#allocation31_spill] sm:$0xff] }
 0x67f   : > { %2760 = vmatpush.msrb.mxu2 %v6040_v60  ;;  %2780 = vmatpush.msrb.mxu3 %v6025_v8  ;;  %v7508_v13 = vld [vmem:[#allocation35_spill] sm:$0xff]  ;;  %v7511_v8 = vld [vmem:[#allocation36_spill] sm:$0xff] }
 0x680   : > { %2721 = vmatpush.msrb.mxu0 %v6018_v16  ;;  %2741 = vmatpush.msrb.mxu1 %v6023_v28  ;;  %v7509_v16 = vld [vmem:[#allocation34_spill] sm:$0xff]  ;;  %v7510_v28 = vld [vmem:[#allocation61_spill] sm:$0xff] }
 0x681   : > { %2761 = vmatpush.msrb.mxu2 %v6052_v18  ;;  %2781 = vmatpush.msrb.mxu3 %v6034_v56  ;;  %v7513_v56 = vld [vmem:[#allocation37_spill] sm:$0xff] }
 0x682   : > { %2722 = vmatpush.msrb.mxu0 %v6030_v19  ;;  %2742 = vmatpush.msrb.mxu1 %v6032_v31  ;;  %v2010_v19 = vadd.f32 %v7511_v8, %v7510_v28  ;;  %v7512_v31 = vld [vmem:[#allocation65_spill] sm:$0xff] }
 0x683   : > { %2762 = vmatpush.msrb.mxu2 %v7484_v41  ;;  %2782 = vmatpush.msrb.mxu3 %v7485_v40  ;;  %v2051_v22 = vadd.f32 %v7513_v56, %v7512_v31  ;;  %v6441_v56 = vld [vmem:[#allocation8 + $0x1e8] sm:$0xff] }
 0x684   : > { %2723 = vmatpush.msrb.mxu0 %v7486_v34  ;;  %2743 = vmatpush.msrb.mxu1 %v7487_v43 }
 0x685   : > { %2763 = vmatpush.msrb.mxu2 %v7488_v55  ;;  %2783 = vmatpush.msrb.mxu3 %v7489_v37 }
 0x686   : > { %2724 = vmatpush.msrb.mxu0 %v7490_v58  ;;  %2744 = vmatpush.msrb.mxu1 %v7491_v1 }
 0x687   : > { %2764 = vmatpush.msrb.mxu2 %v7492_v32  ;;  %2784 = vmatpush.msrb.mxu3 %v7493_v54 }
 0x688   : > { %2725 = vmatpush.msrb.mxu0 %v7494_v39  ;;  %2745 = vmatpush.msrb.mxu1 %v7495_v52 }
 0x689   : > { %2765 = vmatpush.msrb.mxu2 %v7496_v61  ;;  %2785 = vmatpush.msrb.mxu3 %v7497_v23 }
 0x68a   : > { %2726 = vmatpush.msrb.mxu0 %v7498_v27  ;;  %2746 = vmatpush.msrb.mxu1 %v7499_v2 }
 0x68b   : > { %2766 = vmatpush.msrb.mxu2 %v7500_v30  ;;  %2786 = vmatpush.msrb.mxu3 %v7501_v46 }
 0x68c   : > { %2727 = vmatpush.msrb.mxu0 %v7502_v33  ;;  %2747 = vmatpush.msrb.mxu1 %v7503_v21 }
 0x68d   : > { %2767 = vmatpush.msrb.mxu2 %v7504_v5  ;;  %2787 = vmatpush.msrb.mxu3 %v7505_v6 }
 0x68e   : > { %2728 = vmatpush.msrb.mxu0 %v7506_v10  ;;  %2748 = vmatpush.msrb.mxu1 %v7507_v12 }
 0x68f   : > { %2768 = vmatpush.msrb.mxu2 %v7508_v13  ;;  %2788 = vmatpush.msrb.mxu3 %v7509_v16 }
 0x6eb   : > { %v2424_v60 = vpop.f32.mrf.mxu0  ;;  %v2444_v36 = vpop.f32.mrf.mxu1 }
 0x6ec   : > { %v2487_v18 = vadd.f32 %v2424_v60, %v2010_v19  ;;  %v2488_v51 = vadd.f32 %v2444_v36, %v2051_v22  ;;  %v6444_v22 = vld [vmem:[#allocation8 + $0x1f0] sm:$0xff]  ;;  %v6447_v60 = vld [vmem:[#allocation8 + $0x1f8] sm:$0xff]  ;;  %v6450_v36 = vld [vmem:[#allocation8 + $0x1c0] sm:$0xff] }
 0x6ee   : > { %v3637_v59 = vmul.f32 -1.442695, %v2487_v18  ;;  %v3638_v9 = vmul.f32 -1.442695, %v2488_v51  ;;  %v6453_v18 = vld [vmem:[#allocation8 + $0x1c8] sm:$0xff]  ;;  %v6456_v51 = vld [vmem:[#allocation8 + $0x1d0] sm:$0xff] }
 0x6f0   : > { %3849 = vpow2.f32 %v3637_v59  ;;  %v6459_v59 = vld [vmem:[#allocation8 + $0x1d8] sm:$0xff] }
 0x6f1   : > { %3851 = vpow2.f32 %v3638_v9  ;;  %v6462_v9 = vld [vmem:[#allocation8 + $0x1a0] sm:$0xff] }
 0x6f2   : > { %v2484_v29 = vpop.f32.mrf.mxu3  ;;  %v2464_v20 = vpop.f32.mrf.mxu2 }
 0x6f3   : > { %v2490_v3 = vadd.f32 %v2484_v29, %v2133_v44  ;;  %v2489_v53 = vadd.f32 %v2464_v20, %v2092_v11  ;;  %v6468_v44 = vld [vmem:[#allocation8 + $0x1b0] sm:$0xff]  ;;  %v6471_v29 = vld [vmem:[#allocation8 + $0x1b8] sm:$0xff]  ;;  %v6501_v11 = vld [vmem:[#allocation8 + $0x148] sm:$0xff] }
 0x6f4   : > { %v6492_v20 = vld [vmem:[#allocation8 + $0x170] sm:$0xff] }
 0x6f5   : > { %v3639_v57 = vmul.f32 -1.442695, %v2490_v3  ;;  %v6474_v3 = vld [vmem:[#allocation8 + $0x180] sm:$0xff] }
 0x6f6   : > { %v3850_v62 = vpop.eup %3849 }
 0x6f7   : > { %v3852_v38 = vpop.eup %3851  ;;  %v2494_v15 = vadd.f32 1.0, %v3850_v62  ;;  %3853 = vpow2.f32 %v3639_v57  ;;  %v6477_v57 = vld [vmem:[#allocation8 + $0x188] sm:$0xff]  ;;  %v6480_v62 = vld [vmem:[#allocation8 + $0x190] sm:$0xff] }
 0x6f8   : > { %v2513_v35 = vadd.f32 1.0, %v3852_v38  ;;  %v6483_v38 = vld [vmem:[#allocation8 + $0x198] sm:$0xff] }
 0x6f9   : > { %3855 = vrcp.f32 %v2494_v15  ;;  %v2506_v26 = vand.u32 2147483648, %v2494_v15  ;;  %v2504_v40 = vand.u32 2147483647, %v2494_v15  ;;  %vm2500_vm15 = vweird.f32 %v2494_v15 }
 0x6fa   : > { %3857 = vrcp.f32 %v2513_v35  ;;  %v2525_v49 = vand.u32 2147483648, %v2513_v35  ;;  %v2523_v43 = vand.u32 2147483647, %v2513_v35  ;;  %vm2519_vm0 = vweird.f32 %v2513_v35 }
 0x6fb   : > { %v2507_v58 = vor.u32 1.1754944e-38, %v2506_v26  ;;  %vm2505_vm3 = vcmp.eq.f32.partialorder %v2504_v40, 8.507059e+37  ;;  %v6528_v26 = vld [vmem:[#allocation8 + $0x110] sm:$0xff]  ;;  %v6537_v40 = vld [vmem:[#allocation8 + $0xe8] sm:$0xff] }
 0x6fc   : > { %v2526_v54 = vor.u32 1.1754944e-38, %v2525_v49  ;;  %vm2524_vm4 = vcmp.eq.f32.partialorder %v2523_v43, 8.507059e+37  ;;  %v6531_v49 = vld [vmem:[#allocation8 + $0x118] sm:$0xff] }
 0x6fd   : > { %v3854_v17 = vpop.eup %3853  ;;  %v6543_v43 = vld [vmem:[#allocation8 + $0xf8] sm:$0xff] }
 0x6fe   : > { %v2533_v42 = vadd.f32 1.0, %v3854_v17  ;;  %v6495_v17 = vld [vmem:[#allocation8 + $0x178] sm:$0xff] }
 0x6ff   : > { %v3856_v47 = vpop.eup %3855 }
 0x700   : > { %v3858_v24 = vpop.eup %3857  ;;  %v2496_v0 = vmul.f32 %v3856_v47, %v2494_v15  ;;  %3859 = vrcp.f32 %v2533_v42  ;;  %vm2501_vm13 = vweird.f32 %v3856_v47  ;;  %v2545_v6 = vand.u32 2147483648, %v2533_v42  ;;  %v6486_v15 = vld [vmem:[#allocation8 + $0x160] sm:$0xff] }
 0x701   : > { %v2515_v45 = vmul.f32 %v3858_v24, %v2513_v35  ;;  %3861 = vtanh.f32 %v2489_v53  ;;  %vm2520_vm14 = vweird.f32 %v3858_v24  ;;  %vm2502_vm1 = vmor %vm2500_vm15, %vm2501_vm13  ;;  %vm2539_vm6 = vweird.f32 %v2533_v42  ;;  %v6489_v35 = vld [vmem:[#allocation8 + $0x168] sm:$0xff]  ;;  %v6510_v53 = vld [vmem:[#allocation8 + $0x120] sm:$0xff] }
 0x702   : > { %v2497_v7 = vsub.f32 1.0, %v2496_v0  ;;  %vm2521_vm2 = vmor %vm2519_vm0, %vm2520_vm14  ;;  %v2543_v10 = vand.u32 2147483647, %v2533_v42  ;;  %v2546_v13 = vor.u32 1.1754944e-38, %v2545_v6  ;;  %v6516_v0 = vld [vmem:[#allocation8 + $0x130] sm:$0xff]  ;;  %v6594_v6 = vld [vmem:[#allocation8 + $0x40] sm:$0xff] }
 0x703   : > { %v2516_v63 = vsub.f32 1.0, %v2515_v45  ;;  %v6519_v45 = vld [vmem:[#allocation8 + $0x138] sm:$0xff]  ;;  %7532 = vst [vmem:[#allocation21_spill] sm:$0xff] %v6594_v6 }
 0x704   : > { %v2498_v41 = vmul.f32 %v3856_v47, %v2497_v7  ;;  %vm2544_vm8 = vcmp.eq.f32.partialorder %v2543_v10, 8.507059e+37  ;;  %v6522_v7 = vld [vmem:[#allocation8 + $0x100] sm:$0xff]  ;;  %v6597_v10 = vld [vmem:[#allocation8 + $0x48] sm:$0xff] }
 0x705   : > { %v2517_v34 = vmul.f32 %v3858_v24, %v2516_v63  ;;  %v6525_v63 = vld [vmem:[#allocation8 + $0x108] sm:$0xff]  ;;  %7533 = vst [vmem:[#allocation24_spill] sm:$0xff] %v6597_v10 }
 0x706   : > { %v3860_v55 = vpop.eup %3859  ;;  %v2499_v37 = vadd.f32 %v3856_v47, %v2498_v41  ;;  %v6534_v41 = vld [vmem:[#allocation8 + $0xe0] sm:$0xff] }
 0x707   : > { %v2518_v1 = vadd.f32 %v3858_v24, %v2517_v34  ;;  %v2535_v32 = vmul.f32 %v3860_v55, %v2533_v42  ;;  %v3862_v52 = vpop.eup %3861  ;;  %vm2540_vm5 = vweird.f32 %v3860_v55  ;;  %v6504_v42 = vld [vmem:[#allocation8 + $0x150] sm:$0xff] }
 0x708   : > { %v2503_v39 = vsel %vm2502_vm1, %v3856_v47, %v2499_v37  ;;  %vm2541_vm7 = vmor %vm2539_vm6, %vm2540_vm5  ;;  %v6507_v47 = vld [vmem:[#allocation8 + $0x158] sm:$0xff]  ;;  %v6540_v34 = vld [vmem:[#allocation8 + $0xf0] sm:$0xff] }
 0x709   : > { %v2508_v61 = vsel %vm2505_vm3, %v2507_v58, %v2503_v39  ;;  %v2522_v23 = vsel %vm2521_vm2, %v3858_v24, %v2518_v1  ;;  %v2536_v27 = vsub.f32 1.0, %v2535_v32  ;;  %v6513_v24 = vld [vmem:[#allocation8 + $0x128] sm:$0xff]  ;;  %v6552_v58 = vld [vmem:[#allocation8 + $0xd0] sm:$0xff]  ;;  %v6555_v1 = vld [vmem:[#allocation8 + $0xd8] sm:$0xff] }
 0x70a   : > { %v2527_v2 = vsel %vm2524_vm4, %v2526_v54, %v2522_v23  ;;  %v2550_v30 = vmul.f32 %v3862_v52, %v2508_v61  ;;  %v6549_v37 = vld [vmem:[#allocation8 + $0xc8] sm:$0xff]  ;;  %7518 = vst [vmem:[#allocation15_spill] sm:$0xff] %v6552_v58  ;;  %v6558_v32 = vld [vmem:[#allocation8 + $0xa0] sm:$0xff]  ;;  %v6564_v39 = vld [vmem:[#allocation8 + $0xb0] sm:$0xff] }
 0x70b   : > { %v2549_v46 = vmul.f32 %v2527_v2, %v6357_v50  ;;  %v2537_v33 = vmul.f32 %v3860_v55, %v2536_v27  ;;  %v6438_v50 = vld [vmem:[#allocation8 + $0x1e0] sm:$0xff]  ;;  %7519 = vst [vmem:[#allocation51_spill] sm:$0xff] %v6555_v1  ;;  %v6561_v54 = vld [vmem:[#allocation8 + $0xa8] sm:$0xff]  ;;  %v6567_v52 = vld [vmem:[#allocation8 + $0xb8] sm:$0xff] }
 0x70c   : > { %7520 = vst [vmem:[#allocation45_spill] sm:$0xff] %v6558_v32  ;;  %v6570_v61 = vld [vmem:[#allocation8 + $0x80] sm:$0xff]  ;;  %v6573_v23 = vld [vmem:[#allocation8 + $0x88] sm:$0xff]  ;;  %v6576_v27 = vld [vmem:[#allocation8 + $0x90] sm:$0xff] }
 0x70d   : > { %v6434_v21 = vadd.f32 %v2550_v30, %v2549_v46  ;;  %v2538_v5 = vadd.f32 %v3860_v55, %v2537_v33  ;;  %7521 = vst [vmem:[#allocation46_spill] sm:$0xff] %v6561_v54  ;;  %v6579_v2 = vld [vmem:[#allocation8 + $0x98] sm:$0xff]  ;;  %v6582_v30 = vld [vmem:[#allocation8 + $0x60] sm:$0xff]  ;;  %v6585_v46 = vld [vmem:[#allocation8 + $0x68] sm:$0xff] }
 0x70e   : > { %7522 = vst [vmem:[#allocation48_spill] sm:$0xff] %v6564_v39  ;;  %v6588_v33 = vld [vmem:[#allocation8 + $0x70] sm:$0xff] }
 0x70f   : > { %3863 = vtanh.f32 %v6434_v21  ;;  %v2542_v12 = vsel %vm2541_vm7, %v3860_v55, %v2538_v5  ;;  %v6546_v55 = vld [vmem:[#allocation8 + $0xc0] sm:$0xff]  ;;  %7523 = vst [vmem:[#allocation20_spill] sm:$0xff] %v6567_v52  ;;  %v6591_v5 = vld [vmem:[#allocation8 + $0x78] sm:$0xff] }
 0x710   : > { %v2547_v8 = vsel %vm2544_vm8, %v2546_v13, %v2542_v12  ;;  %7524 = vst [vmem:[#allocation47_spill] sm:$0xff] %v6570_v61  ;;  %v6600_v12 = vld [vmem:[#allocation8 + $0x50] sm:$0xff]  ;;  %v6603_v13 = vld [vmem:[#allocation8 + $0x58] sm:$0xff] }
 0x711   : > { %7525 = vst [vmem:[#allocation49_spill] sm:$0xff] %v6573_v23 }
 0x712   : > { %7526 = vst [vmem:[#allocation50_spill] sm:$0xff] %v6576_v27 }
 0x713   : > { %7527 = vst [vmem:[#allocation22_spill] sm:$0xff] %v6579_v2 }
 0x714   : > { %7528 = vst [vmem:[#allocation54_spill] sm:$0xff] %v6582_v30 }
 0x715   : > { %v3864_v16 = vpop.eup %3863  ;;  %7529 = vst [vmem:[#allocation17_spill] sm:$0xff] %v6585_v46 }
 0x716   : > { %v2553_v19 = vmul.f32 %v3864_v16, %v2547_v8  ;;  %7530 = vst [vmem:[#allocation19_spill] sm:$0xff] %v6588_v33  ;;  %v6606_v16 = vld [vmem:[#allocation8 + $0x20] sm:$0xff]  ;;  %v6609_v8 = vld [vmem:[#allocation8 + $0x28] sm:$0xff] }
 0x717   : > { %7531 = vst [vmem:[#allocation25_spill] sm:$0xff] %v6591_v5 }
 0x718   : > { %3640 = vst [vmem:[%s4224_s20 + $0x8] sm:$0xff] %v2553_v19  ;;  %2576 = vmatmul.f32.vlgmr.msra.gmra.mxu0 %v2553_v19  ;;  %2596 = vmatmul.f32.vlgmr.msra.gmra.mxu1 %v2553_v19 }
 0x719   : > { %2616 = vmatmul.f32.vlgmr.msra.gmra.mxu2 %v2553_v19  ;;  %2636 = vmatmul.f32.vlgmr.msra.gmra.mxu3 %v2553_v19  ;;  %7534 = vst [vmem:[#allocation23_spill] sm:$0xff] %v6600_v12  ;;  %v6612_v19 = vld [vmem:[#allocation8 + $0x30] sm:$0xff] }
 0x71a   : > { %2866 = vmatpush.msra.mxu0 %v6438_v50  ;;  %2886 = vmatpush.msra.mxu1 %v6441_v56  ;;  %7535 = vst [vmem:[#allocation29_spill] sm:$0xff] %v6603_v13 }
 0x71b   : > { %2906 = vmatpush.msra.mxu2 %v6444_v22  ;;  %2926 = vmatpush.msra.mxu3 %v6447_v60  ;;  %7536 = vst [vmem:[#allocation26_spill] sm:$0xff] %v6606_v16 }
 0x71c   : > { %2867 = vmatpush.msra.mxu0 %v6450_v36  ;;  %2887 = vmatpush.msra.mxu1 %v6453_v18  ;;  %7537 = vst [vmem:[#allocation28_spill] sm:$0xff] %v6609_v8 }
 0x71d   : > { %2907 = vmatpush.msra.mxu2 %v6456_v51  ;;  %2927 = vmatpush.msra.mxu3 %v6459_v59  ;;  %7538 = vst [vmem:[#allocation27_spill] sm:$0xff] %v6612_v19 }
 0x71e   : > { %2868 = vmatpush.msra.mxu0 %v6462_v9  ;;  %2888 = vmatpush.msra.mxu1 %v6465_v25 }
 0x71f   : > { %2908 = vmatpush.msra.mxu2 %v6468_v44  ;;  %2928 = vmatpush.msra.mxu3 %v6471_v29 }
 0x720   : > { %2869 = vmatpush.msra.mxu0 %v6474_v3  ;;  %2889 = vmatpush.msra.mxu1 %v6477_v57 }
 0x721   : > { %2909 = vmatpush.msra.mxu2 %v6480_v62  ;;  %2929 = vmatpush.msra.mxu3 %v6483_v38 }
 0x722   : > { %2870 = vmatpush.msra.mxu0 %v6486_v15  ;;  %2890 = vmatpush.msra.mxu1 %v6489_v35 }
 0x723   : > { %2910 = vmatpush.msra.mxu2 %v6492_v20  ;;  %2930 = vmatpush.msra.mxu3 %v6495_v17 }
 0x724   : > { %2871 = vmatpush.msra.mxu0 %v6498_v4  ;;  %2891 = vmatpush.msra.mxu1 %v6501_v11 }
 0x725   : > { %2911 = vmatpush.msra.mxu2 %v6504_v42  ;;  %2931 = vmatpush.msra.mxu3 %v6507_v47 }
 0x726   : > { %2872 = vmatpush.msra.mxu0 %v6510_v53  ;;  %2892 = vmatpush.msra.mxu1 %v6513_v24 }
 0x727   : > { %2912 = vmatpush.msra.mxu2 %v6516_v0  ;;  %2932 = vmatpush.msra.mxu3 %v6519_v45 }
 0x728   : > { %2873 = vmatpush.msra.mxu0 %v6522_v7  ;;  %2893 = vmatpush.msra.mxu1 %v6525_v63 }
 0x729   : > { %2913 = vmatpush.msra.mxu2 %v6528_v26  ;;  %2933 = vmatpush.msra.mxu3 %v6531_v49 }
 0x72a   : > { %2874 = vmatpush.msra.mxu0 %v6534_v41  ;;  %2894 = vmatpush.msra.mxu1 %v6537_v40 }
 0x72b   : > { %2914 = vmatpush.msra.mxu2 %v6540_v34  ;;  %2934 = vmatpush.msra.mxu3 %v6543_v43 }
 0x72c   : > { %2875 = vmatpush.msra.mxu0 %v6546_v55  ;;  %2895 = vmatpush.msra.mxu1 %v6549_v37 }
 0x72d   : > { %2915 = vmatpush.msra.mxu2 %v6552_v58  ;;  %2935 = vmatpush.msra.mxu3 %v6555_v1 }
 0x72e   : > { %2876 = vmatpush.msra.mxu0 %v6558_v32  ;;  %2896 = vmatpush.msra.mxu1 %v6561_v54 }
 0x72f   : > { %2916 = vmatpush.msra.mxu2 %v6564_v39  ;;  %2936 = vmatpush.msra.mxu3 %v6567_v52 }
 0x730   : > { %2877 = vmatpush.msra.mxu0 %v6570_v61  ;;  %2897 = vmatpush.msra.mxu1 %v6573_v23 }
 0x731   : > { %2917 = vmatpush.msra.mxu2 %v6576_v27  ;;  %2937 = vmatpush.msra.mxu3 %v6579_v2  ;;  %v7546_v27 = vld [vmem:[#allocation42_spill] sm:$0xff] }
 0x732   : > { %2878 = vmatpush.msra.mxu0 %v6582_v30  ;;  %2898 = vmatpush.msra.mxu1 %v6585_v46 }
 0x733   : > { %2918 = vmatpush.msra.mxu2 %v6588_v33  ;;  %2938 = vmatpush.msra.mxu3 %v6591_v5 }
 0x734   : > { %2879 = vmatpush.msra.mxu0 %v6594_v6  ;;  %2899 = vmatpush.msra.mxu1 %v6597_v10  ;;  %v6615_v10 = vld [vmem:[#allocation8 + $0x38] sm:$0xff] }
 0x735   : > { %2919 = vmatpush.msra.mxu2 %v6600_v12  ;;  %2939 = vmatpush.msra.mxu3 %v6603_v13  ;;  %7539 = vst [vmem:[#allocation33_spill] sm:$0xff] %v6615_v10  ;;  %v6618_v12 = vld [vmem:[#allocation8] sm:$0xff]  ;;  %v6621_v13 = vld [vmem:[#allocation8 + $0x8] sm:$0xff] }
 0x736   : > { %2880 = vmatpush.msra.mxu0 %v6606_v16  ;;  %2900 = vmatpush.msra.mxu1 %v6609_v8  ;;  %7540 = vst [vmem:[#allocation32_spill] sm:$0xff] %v6618_v12  ;;  %v6624_v16 = vld [vmem:[#allocation8 + $0x10] sm:$0xff]  ;;  %v6627_v8 = vld [vmem:[#allocation8 + $0x18] sm:$0xff] }
 0x737   : > { %2920 = vmatpush.msra.mxu2 %v6612_v19  ;;  %2940 = vmatpush.msra.mxu3 %v6615_v10  ;;  %7541 = vst [vmem:[#allocation30_spill] sm:$0xff] %v6621_v13  ;;  %v7544_v19 = vld [vmem:[#allocation40_spill] sm:$0xff]  ;;  %v7545_v10 = vld [vmem:[#allocation39_spill] sm:$0xff] }
 0x738   : > { %2881 = vmatpush.msra.mxu0 %v6618_v12  ;;  %2901 = vmatpush.msra.mxu1 %v6621_v13  ;;  %7542 = vst [vmem:[#allocation31_spill] sm:$0xff] %v6624_v16  ;;  %v2013_v6 = vadd.f32 %v7544_v19, %v7510_v28  ;;  %v2054_v5 = vadd.f32 %v7545_v10, %v7512_v31 }
 0x739   : > { %2921 = vmatpush.msra.mxu2 %v6624_v16  ;;  %7543 = vst [vmem:[#allocation35_spill] sm:$0xff] %v6627_v8  ;;  %2941 = vmatpush.msra.mxu3 %v6627_v8  ;;  %v2136_v16 = vadd.f32 %v7546_v27, %v7514_v14 }
 0x795   : > { %v2577_v33 = vpop.f32.mrf.mxu0  ;;  %v2597_v12 = vpop.f32.mrf.mxu1 }
 0x796   : > { %v2640_v46 = vadd.f32 %v2577_v33, %v2013_v6  ;;  %v2641_v30 = vadd.f32 %v2597_v12, %v2054_v5 }
 0x798   : > { %v3641_v2 = vmul.f32 -1.442695, %v2640_v46  ;;  %v3642_v13 = vmul.f32 -1.442695, %v2641_v30  ;;  %v7547_v46 = vld [vmem:[#allocation52_spill] sm:$0xff] }
 0x799   : > { %v2095_v30 = vadd.f32 %v7547_v46, %v7516_v48 }
 0x79a   : > { %3865 = vpow2.f32 %v3641_v2 }
 0x79b   : > { %3867 = vpow2.f32 %v3642_v13 }
 0x79c   : > { %v2637_v23 = vpop.f32.mrf.mxu3  ;;  %v2617_v10 = vpop.f32.mrf.mxu2 }
 0x79d   : > { %v2643_v61 = vadd.f32 %v2637_v23, %v2136_v16  ;;  %v2642_v6 = vadd.f32 %v2617_v10, %v2095_v30 }
 0x79f   : > { %v3643_v8 = vmul.f32 -1.442695, %v2643_v61 }
 0x7a0   : > { %v3866_v52 = vpop.eup %3865 }
 0x7a1   : > { %v3868_v39 = vpop.eup %3867  ;;  %v2647_v19 = vadd.f32 1.0, %v3866_v52  ;;  %3869 = vpow2.f32 %v3643_v8 }
 0x7a2   : > { %v2666_v28 = vadd.f32 1.0, %v3868_v39 }
 0x7a3   : > { %3871 = vrcp.f32 %v2647_v19  ;;  %v2659_v16 = vand.u32 2147483648, %v2647_v19  ;;  %v2657_v8 = vand.u32 2147483647, %v2647_v19  ;;  %vm2653_vm11 = vweird.f32 %v2647_v19 }
 0x7a4   : > { %3873 = vrcp.f32 %v2666_v28  ;;  %v2678_v52 = vand.u32 2147483648, %v2666_v28  ;;  %v2676_v31 = vand.u32 2147483647, %v2666_v28  ;;  %vm2672_vm12 = vweird.f32 %v2666_v28 }
 0x7a5   : > { %v2660_v10 = vor.u32 1.1754944e-38, %v2659_v16  ;;  %vm2658_vm15 = vcmp.eq.f32.partialorder %v2657_v8, 8.507059e+37  ;;  %v7554_v8 = vld [vmem:[#allocation47_spill] sm:$0xff] }
 0x7a6   : > { %vm2677_vm0 = vcmp.eq.f32.partialorder %v2676_v31, 8.507059e+37 }
 0x7a7   : > { %v3870_v33 = vpop.eup %3869 }
 0x7a8   : > { %v2686_v2 = vadd.f32 1.0, %v3870_v33 }
 0x7a9   : > { %v3872_v5 = vpop.eup %3871 }
 0x7aa   : > { %v3874_v27 = vpop.eup %3873  ;;  %v2649_v12 = vmul.f32 %v3872_v5, %v2647_v19  ;;  %3875 = vrcp.f32 %v2686_v2  ;;  %vm2654_vm9 = vweird.f32 %v3872_v5  ;;  %v2698_v16 = vand.u32 2147483648, %v2686_v2 }
 0x7ab   : > { %v2668_v23 = vmul.f32 %v3874_v27, %v2666_v28  ;;  %3877 = vtanh.f32 %v2642_v6  ;;  %vm2673_vm10 = vweird.f32 %v3874_v27  ;;  %vm2655_vm13 = vmor %vm2653_vm11, %vm2654_vm9  ;;  %vm2692_vm2 = vweird.f32 %v2686_v2 }
 0x7ac   : > { %v2650_v61 = vsub.f32 1.0, %v2649_v12  ;;  %vm2674_vm14 = vmor %vm2672_vm12, %vm2673_vm10  ;;  %v2679_v12 = vor.u32 1.1754944e-38, %v2678_v52 }
 0x7ad   : > { %v2669_v13 = vsub.f32 1.0, %v2668_v23 }
 0x7ae   : > { %v2651_v39 = vmul.f32 %v3872_v5, %v2650_v61 }
 0x7af   : > { %v2670_v14 = vmul.f32 %v3874_v27, %v2669_v13 }
 0x7b0   : > { %v3876_v54 = vpop.eup %3875  ;;  %v2652_v46 = vadd.f32 %v3872_v5, %v2651_v39 }
 0x7b1   : > { %v2671_v33 = vadd.f32 %v3874_v27, %v2670_v14  ;;  %v2688_v30 = vmul.f32 %v3876_v54, %v2686_v2  ;;  %v3878_v6 = vpop.eup %3877  ;;  %vm2693_vm1 = vweird.f32 %v3876_v54 }
 0x7b2   : > { %v2656_v23 = vsel %vm2655_vm13, %v3872_v5, %v2652_v46  ;;  %v2696_v5 = vand.u32 2147483647, %v2686_v2  ;;  %vm2694_vm3 = vmor %vm2692_vm2, %vm2693_vm1  ;;  %v7553_v2 = vld [vmem:[#allocation20_spill] sm:$0xff]  ;;  %v7555_v46 = vld [vmem:[#allocation49_spill] sm:$0xff] }
 0x7b3   : > { %v2661_v48 = vsel %vm2658_vm15, %v2660_v10, %v2656_v23  ;;  %v2675_v61 = vsel %vm2674_vm14, %v3874_v27, %v2671_v33  ;;  %v2689_v32 = vsub.f32 1.0, %v2688_v30  ;;  %v2699_v27 = vor.u32 1.1754944e-38, %v2698_v16  ;;  %v7556_v10 = vld [vmem:[#allocation50_spill] sm:$0xff]  ;;  %v7560_v23 = vld [vmem:[#allocation19_spill] sm:$0xff] }
 0x7b4   : > { %v2680_v13 = vsel %vm2677_vm0, %v2679_v12, %v2675_v61  ;;  %v2703_v1 = vmul.f32 %v3878_v6, %v2661_v48  ;;  %vm2697_vm4 = vcmp.eq.f32.partialorder %v2696_v5, 8.507059e+37  ;;  %v7557_v33 = vld [vmem:[#allocation22_spill] sm:$0xff]  ;;  %v7559_v12 = vld [vmem:[#allocation17_spill] sm:$0xff]  ;;  %v7567_v5 = vld [vmem:[#allocation28_spill] sm:$0xff] }
 0x7b5   : > { %v2702_v58 = vmul.f32 %v2680_v13, %v6434_v21  ;;  %v2690_v19 = vmul.f32 %v3876_v54, %v2689_v32  ;;  %v7548_v21 = vld [vmem:[#allocation15_spill] sm:$0xff]  ;;  %v7551_v32 = vld [vmem:[#allocation46_spill] sm:$0xff]  ;;  %v7561_v6 = vld [vmem:[#allocation25_spill] sm:$0xff] }
 0x7b6   : > { %v7558_v30 = vld [vmem:[#allocation54_spill] sm:$0xff]  ;;  %v7562_v61 = vld [vmem:[#allocation21_spill] sm:$0xff]  ;;  %v7563_v13 = vld [vmem:[#allocation24_spill] sm:$0xff] }
 0x7b7   : > { %v6639_v28 = vadd.f32 %v2703_v1, %v2702_v58  ;;  %v2691_v14 = vadd.f32 %v3876_v54, %v2690_v19  ;;  %v7549_v58 = vld [vmem:[#allocation51_spill] sm:$0xff]  ;;  %v7550_v1 = vld [vmem:[#allocation45_spill] sm:$0xff]  ;;  %v7566_v16 = vld [vmem:[#allocation26_spill] sm:$0xff] }
 0x7b8   : > { %v7564_v19 = vld [vmem:[#allocation23_spill] sm:$0xff] }
 0x7b9   : > { %3879 = vtanh.f32 %v6639_v28  ;;  %v2695_v52 = vsel %vm2694_vm3, %v3876_v54, %v2691_v14  ;;  %v7552_v54 = vld [vmem:[#allocation48_spill] sm:$0xff]  ;;  %v7565_v14 = vld [vmem:[#allocation29_spill] sm:$0xff] }
 0x7ba   : > { %v2700_v39 = vsel %vm2697_vm4, %v2699_v27, %v2695_v52  ;;  %v7568_v52 = vld [vmem:[#allocation27_spill] sm:$0xff]  ;;  %v7569_v27 = vld [vmem:[#allocation33_spill] sm:$0xff] }
 0x7bf   : > { %v3880_v31 = vpop.eup %3879 }
 0x7c0   : > { %v2706_v48 = vmul.f32 %v3880_v31, %v2700_v39  ;;  %v7570_v31 = vld [vmem:[#allocation32_spill] sm:$0xff]  ;;  %v7571_v39 = vld [vmem:[#allocation30_spill] sm:$0xff] }
 0x7c2   : > { %3644 = vst [vmem:[%s4224_s20 + $0x10] sm:$0xff] %v2706_v48  ;;  %2729 = vmatmul.f32.vlgmr.msrb.gmra.mxu0 %v2706_v48  ;;  %2749 = vmatmul.f32.vlgmr.msrb.gmra.mxu1 %v2706_v48 }
 0x7c3   : > { %2769 = vmatmul.f32.vlgmr.msrb.gmra.mxu2 %v2706_v48  ;;  %2789 = vmatmul.f32.vlgmr.msrb.gmra.mxu3 %v2706_v48  ;;  %v7572_v48 = vld [vmem:[#allocation31_spill] sm:$0xff] }
 0x7c4   : > { %3019 = vmatpush.msrb.mxu0 %v6438_v50  ;;  %3039 = vmatpush.msrb.mxu1 %v6441_v56 }
 0x7c5   : > { %3059 = vmatpush.msrb.mxu2 %v6444_v22  ;;  %3079 = vmatpush.msrb.mxu3 %v6447_v60 }
 0x7c6   : > { %3020 = vmatpush.msrb.mxu0 %v6450_v36  ;;  %3040 = vmatpush.msrb.mxu1 %v6453_v18 }
 0x7c7   : > { %3060 = vmatpush.msrb.mxu2 %v6456_v51  ;;  %3080 = vmatpush.msrb.mxu3 %v6459_v59 }
 0x7c8   : > { %3021 = vmatpush.msrb.mxu0 %v6462_v9  ;;  %3041 = vmatpush.msrb.mxu1 %v6465_v25 }
 0x7c9   : > { %3061 = vmatpush.msrb.mxu2 %v6468_v44  ;;  %3081 = vmatpush.msrb.mxu3 %v6471_v29 }
 0x7ca   : > { %3022 = vmatpush.msrb.mxu0 %v6474_v3  ;;  %3042 = vmatpush.msrb.mxu1 %v6477_v57 }
 0x7cb   : > { %3062 = vmatpush.msrb.mxu2 %v6480_v62  ;;  %3082 = vmatpush.msrb.mxu3 %v6483_v38 }
 0x7cc   : > { %3023 = vmatpush.msrb.mxu0 %v6486_v15  ;;  %3043 = vmatpush.msrb.mxu1 %v6489_v35 }
 0x7cd   : > { %3063 = vmatpush.msrb.mxu2 %v6492_v20  ;;  %3083 = vmatpush.msrb.mxu3 %v6495_v17 }
 0x7ce   : > { %3024 = vmatpush.msrb.mxu0 %v6498_v4  ;;  %3044 = vmatpush.msrb.mxu1 %v6501_v11 }
 0x7cf   : > { %3064 = vmatpush.msrb.mxu2 %v6504_v42  ;;  %3084 = vmatpush.msrb.mxu3 %v6507_v47 }
 0x7d0   : > { %3025 = vmatpush.msrb.mxu0 %v6510_v53  ;;  %3045 = vmatpush.msrb.mxu1 %v6513_v24 }
 0x7d1   : > { %3065 = vmatpush.msrb.mxu2 %v6516_v0  ;;  %3085 = vmatpush.msrb.mxu3 %v6519_v45 }
 0x7d2   : > { %3026 = vmatpush.msrb.mxu0 %v6522_v7  ;;  %3046 = vmatpush.msrb.mxu1 %v6525_v63 }
 0x7d3   : > { %3066 = vmatpush.msrb.mxu2 %v6528_v26  ;;  %3086 = vmatpush.msrb.mxu3 %v6531_v49 }
 0x7d4   : > { %3027 = vmatpush.msrb.mxu0 %v6534_v41  ;;  %3047 = vmatpush.msrb.mxu1 %v6537_v40 }
 0x7d5   : > { %3067 = vmatpush.msrb.mxu2 %v6540_v34  ;;  %3087 = vmatpush.msrb.mxu3 %v6543_v43 }
 0x7d6   : > { %3028 = vmatpush.msrb.mxu0 %v6546_v55  ;;  %3048 = vmatpush.msrb.mxu1 %v6549_v37 }
 0x7d7   : > { %3068 = vmatpush.msrb.mxu2 %v7548_v21  ;;  %3088 = vmatpush.msrb.mxu3 %v7549_v58 }
 0x7d8   : > { %3029 = vmatpush.msrb.mxu0 %v7550_v1  ;;  %3049 = vmatpush.msrb.mxu1 %v7551_v32 }
 0x7d9   : > { %3069 = vmatpush.msrb.mxu2 %v7552_v54  ;;  %3089 = vmatpush.msrb.mxu3 %v7553_v2 }
 0x7da   : > { %3030 = vmatpush.msrb.mxu0 %v7554_v8  ;;  %3050 = vmatpush.msrb.mxu1 %v7555_v46 }
 0x7db   : > { %3070 = vmatpush.msrb.mxu2 %v7556_v10  ;;  %3090 = vmatpush.msrb.mxu3 %v7557_v33  ;;  %v7579_v10 = vld [vmem:[#allocation63_spill] sm:$0xff] }
 0x7dc   : > { %3031 = vmatpush.msrb.mxu0 %v7558_v30  ;;  %3051 = vmatpush.msrb.mxu1 %v7559_v12 }
 0x7dd   : > { %3071 = vmatpush.msrb.mxu2 %v7560_v23  ;;  %3091 = vmatpush.msrb.mxu3 %v7561_v6  ;;  %v7577_v23 = vld [vmem:[#allocation62_spill] sm:$0xff] }
 0x7de   : > { %3032 = vmatpush.msrb.mxu0 %v7562_v61  ;;  %3052 = vmatpush.msrb.mxu1 %v7563_v13  ;;  %v7573_v61 = vld [vmem:[#allocation35_spill] sm:$0xff]  ;;  %v7574_v13 = vld [vmem:[#allocation61_spill] sm:$0xff] }
 0x7df   : > { %3072 = vmatpush.msrb.mxu2 %v7564_v19  ;;  %3092 = vmatpush.msrb.mxu3 %v7565_v14  ;;  %v7575_v19 = vld [vmem:[#allocation44_spill] sm:$0xff]  ;;  %v7576_v14 = vld [vmem:[#allocation65_spill] sm:$0xff] }
 0x7e0   : > { %3033 = vmatpush.msrb.mxu0 %v7566_v16  ;;  %3053 = vmatpush.msrb.mxu1 %v7567_v5  ;;  %v2016_v6 = vadd.f32 %v7575_v19, %v7574_v13  ;;  %v2057_v16 = vadd.f32 %v7577_v23, %v7576_v14 }
 0x7e1   : > { %3073 = vmatpush.msrb.mxu2 %v7568_v52  ;;  %3093 = vmatpush.msrb.mxu3 %v7569_v27 }
 0x7e2   : > { %3034 = vmatpush.msrb.mxu0 %v7570_v31  ;;  %3054 = vmatpush.msrb.mxu1 %v7571_v39  ;;  %v7578_v31 = vld [vmem:[#allocation11_spill] sm:$0xff] }
 0x7e3   : > { %3074 = vmatpush.msrb.mxu2 %v7572_v48  ;;  %3094 = vmatpush.msrb.mxu3 %v7573_v61  ;;  %v2139_v39 = vadd.f32 %v7579_v10, %v7578_v31 }
 0x83f   : > { %v2730_v12 = vpop.f32.mrf.mxu0  ;;  %v2750_v5 = vpop.f32.mrf.mxu1 }
 0x840   : > { %v2793_v30 = vadd.f32 %v2730_v12, %v2016_v6  ;;  %v2794_v52 = vadd.f32 %v2750_v5, %v2057_v16  ;;  %v7580_v6 = vld [vmem:[#allocation16_spill] sm:$0xff] }
 0x842   : > { %v3645_v33 = vmul.f32 -1.442695, %v2793_v30  ;;  %v3646_v27 = vmul.f32 -1.442695, %v2794_v52  ;;  %v7581_v30 = vld [vmem:[#allocation55_spill] sm:$0xff] }
 0x843   : > { %v2098_v16 = vadd.f32 %v7581_v30, %v7580_v6 }
 0x844   : > { %3881 = vpow2.f32 %v3645_v33 }
 0x845   : > { %3883 = vpow2.f32 %v3646_v27 }
 0x846   : > { %v2790_v48 = vpop.f32.mrf.mxu3  ;;  %v2770_v23 = vpop.f32.mrf.mxu2 }
 0x847   : > { %v2796_v46 = vadd.f32 %v2790_v48, %v2139_v39  ;;  %v2795_v52 = vadd.f32 %v2770_v23, %v2098_v16 }
 0x849   : > { %v3647_v61 = vmul.f32 -1.442695, %v2796_v46 }
 0x84a   : > { %v3882_v8 = vpop.eup %3881 }
 0x84b   : > { %v3884_v2 = vpop.eup %3883  ;;  %v2800_v19 = vadd.f32 1.0, %v3882_v8  ;;  %3885 = vpow2.f32 %v3647_v61 }
 0x84c   : > { %v2819_v13 = vadd.f32 1.0, %v3884_v2 }
 0x84d   : > { %3887 = vrcp.f32 %v2800_v19  ;;  %v2812_v31 = vand.u32 2147483648, %v2800_v19  ;;  %v2810_v61 = vand.u32 2147483647, %v2800_v19  ;;  %vm2806_vm7 = vweird.f32 %v2800_v19 }
 0x84e   : > { %3889 = vrcp.f32 %v2819_v13  ;;  %v2831_v8 = vand.u32 2147483648, %v2819_v13  ;;  %v2829_v54 = vand.u32 2147483647, %v2819_v13  ;;  %vm2825_vm8 = vweird.f32 %v2819_v13 }
 0x84f   : > { %v2813_v23 = vor.u32 1.1754944e-38, %v2812_v31  ;;  %vm2811_vm11 = vcmp.eq.f32.partialorder %v2810_v61, 8.507059e+37  ;;  %v7588_v61 = vld [vmem:[#allocation47_spill] sm:$0xff] }
 0x850   : > { %vm2830_vm12 = vcmp.eq.f32.partialorder %v2829_v54, 8.507059e+37 }
 0x851   : > { %v3886_v12 = vpop.eup %3885 }
 0x852   : > { %v2839_v33 = vadd.f32 1.0, %v3886_v12 }
 0x853   : > { %v3888_v5 = vpop.eup %3887 }
 0x854   : > { %v3890_v10 = vpop.eup %3889  ;;  %v2802_v27 = vmul.f32 %v3888_v5, %v2800_v19  ;;  %3891 = vrcp.f32 %v2839_v33  ;;  %vm2807_vm5 = vweird.f32 %v3888_v5  ;;  %v2851_v31 = vand.u32 2147483648, %v2839_v33 }
 0x855   : > { %v2821_v39 = vmul.f32 %v3890_v10, %v2819_v13  ;;  %3893 = vtanh.f32 %v2795_v52  ;;  %vm2826_vm6 = vweird.f32 %v3890_v10  ;;  %vm2808_vm9 = vmor %vm2806_vm7, %vm2807_vm5  ;;  %vm2845_vm14 = vweird.f32 %v2839_v33 }
 0x856   : > { %v2803_v46 = vsub.f32 1.0, %v2802_v27  ;;  %vm2827_vm10 = vmor %vm2825_vm8, %vm2826_vm6  ;;  %v2832_v27 = vor.u32 1.1754944e-38, %v2831_v8 }
 0x857   : > { %v2822_v48 = vsub.f32 1.0, %v2821_v39 }
 0x858   : > { %v2804_v2 = vmul.f32 %v3888_v5, %v2803_v46 }
 0x859   : > { %v2823_v14 = vmul.f32 %v3890_v10, %v2822_v48 }
 0x85a   : > { %v3892_v32 = vpop.eup %3891  ;;  %v2805_v30 = vadd.f32 %v3888_v5, %v2804_v2 }
 0x85b   : > { %v2824_v12 = vadd.f32 %v3890_v10, %v2823_v14  ;;  %v2841_v16 = vmul.f32 %v3892_v32, %v2839_v33  ;;  %v3894_v52 = vpop.eup %3893  ;;  %vm2846_vm13 = vweird.f32 %v3892_v32 }
 0x85c   : > { %v2809_v39 = vsel %vm2808_vm9, %v3888_v5, %v2805_v30  ;;  %v2849_v5 = vand.u32 2147483647, %v2839_v33  ;;  %vm2847_vm15 = vmor %vm2845_vm14, %vm2846_vm13  ;;  %v7587_v33 = vld [vmem:[#allocation20_spill] sm:$0xff]  ;;  %v7589_v30 = vld [vmem:[#allocation49_spill] sm:$0xff] }
 0x85d   : > { %v2814_v6 = vsel %vm2811_vm11, %v2813_v23, %v2809_v39  ;;  %v2828_v46 = vsel %vm2827_vm10, %v3890_v10, %v2824_v12  ;;  %v2842_v1 = vsub.f32 1.0, %v2841_v16  ;;  %v2852_v10 = vor.u32 1.1754944e-38, %v2851_v31  ;;  %v7590_v23 = vld [vmem:[#allocation50_spill] sm:$0xff]  ;;  %v7594_v39 = vld [vmem:[#allocation19_spill] sm:$0xff] }
 0x85e   : > { %v2833_v48 = vsel %vm2830_vm12, %v2832_v27, %v2828_v46  ;;  %v2856_v58 = vmul.f32 %v3894_v52, %v2814_v6  ;;  %vm2850_vm0 = vcmp.eq.f32.partialorder %v2849_v5, 8.507059e+37  ;;  %v7591_v12 = vld [vmem:[#allocation22_spill] sm:$0xff]  ;;  %v7593_v27 = vld [vmem:[#allocation17_spill] sm:$0xff]  ;;  %v7601_v5 = vld [vmem:[#allocation28_spill] sm:$0xff] }
 0x85f   : > { %v2855_v21 = vmul.f32 %v2833_v48, %v6639_v28  ;;  %v2843_v19 = vmul.f32 %v3892_v32, %v2842_v1  ;;  %v7582_v28 = vld [vmem:[#allocation15_spill] sm:$0xff]  ;;  %v7585_v1 = vld [vmem:[#allocation46_spill] sm:$0xff]  ;;  %v7595_v52 = vld [vmem:[#allocation25_spill] sm:$0xff] }
 0x860   : > { %v7592_v16 = vld [vmem:[#allocation54_spill] sm:$0xff]  ;;  %v7596_v46 = vld [vmem:[#allocation21_spill] sm:$0xff]  ;;  %v7597_v48 = vld [vmem:[#allocation24_spill] sm:$0xff] }
 0x861   : > { %v6716_v13 = vadd.f32 %v2856_v58, %v2855_v21  ;;  %v2844_v14 = vadd.f32 %v3892_v32, %v2843_v19  ;;  %v7583_v21 = vld [vmem:[#allocation51_spill] sm:$0xff]  ;;  %v7584_v58 = vld [vmem:[#allocation45_spill] sm:$0xff]  ;;  %v7600_v31 = vld [vmem:[#allocation26_spill] sm:$0xff] }
 0x862   : > { %v7598_v19 = vld [vmem:[#allocation23_spill] sm:$0xff] }
 0x863   : > { %3895 = vtanh.f32 %v6716_v13  ;;  %v2848_v8 = vsel %vm2847_vm15, %v3892_v32, %v2844_v14  ;;  %v7586_v32 = vld [vmem:[#allocation48_spill] sm:$0xff]  ;;  %v7599_v14 = vld [vmem:[#allocation29_spill] sm:$0xff] }
 0x864   : > { %v2853_v2 = vsel %vm2850_vm0, %v2852_v10, %v2848_v8  ;;  %v7602_v8 = vld [vmem:[#allocation27_spill] sm:$0xff]  ;;  %v7603_v10 = vld [vmem:[#allocation33_spill] sm:$0xff] }
 0x869   : > { %v3896_v54 = vpop.eup %3895 }
 0x86a   : > { %v2859_v6 = vmul.f32 %v3896_v54, %v2853_v2  ;;  %v7604_v54 = vld [vmem:[#allocation32_spill] sm:$0xff]  ;;  %v7605_v2 = vld [vmem:[#allocation30_spill] sm:$0xff] }
 0x86c   : > { %3648 = vst [vmem:[%s4224_s20 + $0x18] sm:$0xff] %v2859_v6  ;;  %2882 = vmatmul.f32.vlgmr.msra.gmra.mxu0 %v2859_v6  ;;  %2902 = vmatmul.f32.vlgmr.msra.gmra.mxu1 %v2859_v6 }
 0x86d   : > { %2922 = vmatmul.f32.vlgmr.msra.gmra.mxu2 %v2859_v6  ;;  %2942 = vmatmul.f32.vlgmr.msra.gmra.mxu3 %v2859_v6  ;;  %v7606_v6 = vld [vmem:[#allocation31_spill] sm:$0xff] }
 0x86e   : > { %3172 = vmatpush.msra.mxu0 %v6438_v50  ;;  %3192 = vmatpush.msra.mxu1 %v6441_v56 }
 0x86f   : > { %3212 = vmatpush.msra.mxu2 %v6444_v22  ;;  %3232 = vmatpush.msra.mxu3 %v6447_v60 }
 0x870   : > { %3173 = vmatpush.msra.mxu0 %v6450_v36  ;;  %3193 = vmatpush.msra.mxu1 %v6453_v18 }
 0x871   : > { %3213 = vmatpush.msra.mxu2 %v6456_v51  ;;  %3233 = vmatpush.msra.mxu3 %v6459_v59 }
 0x872   : > { %3174 = vmatpush.msra.mxu0 %v6462_v9  ;;  %3194 = vmatpush.msra.mxu1 %v6465_v25 }
 0x873   : > { %3214 = vmatpush.msra.mxu2 %v6468_v44  ;;  %3234 = vmatpush.msra.mxu3 %v6471_v29 }
 0x874   : > { %3175 = vmatpush.msra.mxu0 %v6474_v3  ;;  %3195 = vmatpush.msra.mxu1 %v6477_v57 }
 0x875   : > { %3215 = vmatpush.msra.mxu2 %v6480_v62  ;;  %3235 = vmatpush.msra.mxu3 %v6483_v38 }
 0x876   : > { %3176 = vmatpush.msra.mxu0 %v6486_v15  ;;  %3196 = vmatpush.msra.mxu1 %v6489_v35 }
 0x877   : > { %3216 = vmatpush.msra.mxu2 %v6492_v20  ;;  %3236 = vmatpush.msra.mxu3 %v6495_v17 }
 0x878   : > { %3177 = vmatpush.msra.mxu0 %v6498_v4  ;;  %3197 = vmatpush.msra.mxu1 %v6501_v11 }
 0x879   : > { %3217 = vmatpush.msra.mxu2 %v6504_v42  ;;  %3237 = vmatpush.msra.mxu3 %v6507_v47 }
 0x87a   : > { %3178 = vmatpush.msra.mxu0 %v6510_v53  ;;  %3198 = vmatpush.msra.mxu1 %v6513_v24 }
 0x87b   : > { %3218 = vmatpush.msra.mxu2 %v6516_v0  ;;  %3238 = vmatpush.msra.mxu3 %v6519_v45 }
 0x87c   : > { %3179 = vmatpush.msra.mxu0 %v6522_v7  ;;  %3199 = vmatpush.msra.mxu1 %v6525_v63 }
 0x87d   : > { %3219 = vmatpush.msra.mxu2 %v6528_v26  ;;  %3239 = vmatpush.msra.mxu3 %v6531_v49 }
 0x87e   : > { %3180 = vmatpush.msra.mxu0 %v6534_v41  ;;  %3200 = vmatpush.msra.mxu1 %v6537_v40 }
 0x87f   : > { %3220 = vmatpush.msra.mxu2 %v6540_v34  ;;  %3240 = vmatpush.msra.mxu3 %v6543_v43 }
 0x880   : > { %3181 = vmatpush.msra.mxu0 %v6546_v55  ;;  %3201 = vmatpush.msra.mxu1 %v6549_v37 }
 0x881   : > { %3221 = vmatpush.msra.mxu2 %v7582_v28  ;;  %3241 = vmatpush.msra.mxu3 %v7583_v21 }
 0x882   : > { %3182 = vmatpush.msra.mxu0 %v7584_v58  ;;  %3202 = vmatpush.msra.mxu1 %v7585_v1 }
 0x883   : > { %3222 = vmatpush.msra.mxu2 %v7586_v32  ;;  %3242 = vmatpush.msra.mxu3 %v7587_v33 }
 0x884   : > { %3183 = vmatpush.msra.mxu0 %v7588_v61  ;;  %3203 = vmatpush.msra.mxu1 %v7589_v30 }
 0x885   : > { %3223 = vmatpush.msra.mxu2 %v7590_v23  ;;  %3243 = vmatpush.msra.mxu3 %v7591_v12  ;;  %v7613_v23 = vld [vmem:[#allocation68_spill] sm:$0xff] }
 0x886   : > { %3184 = vmatpush.msra.mxu0 %v7592_v16  ;;  %3204 = vmatpush.msra.mxu1 %v7593_v27 }
 0x887   : > { %3224 = vmatpush.msra.mxu2 %v7594_v39  ;;  %3244 = vmatpush.msra.mxu3 %v7595_v52  ;;  %v7611_v39 = vld [vmem:[#allocation66_spill] sm:$0xff] }
 0x888   : > { %3185 = vmatpush.msra.mxu0 %v7596_v46  ;;  %3205 = vmatpush.msra.mxu1 %v7597_v48  ;;  %v7607_v46 = vld [vmem:[#allocation35_spill] sm:$0xff]  ;;  %v7608_v48 = vld [vmem:[#allocation61_spill] sm:$0xff] }
 0x889   : > { %3225 = vmatpush.msra.mxu2 %v7598_v19  ;;  %3245 = vmatpush.msra.mxu3 %v7599_v14  ;;  %v7609_v19 = vld [vmem:[#allocation53_spill] sm:$0xff] }
 0x88a   : > { %3186 = vmatpush.msra.mxu0 %v7600_v31  ;;  %3206 = vmatpush.msra.mxu1 %v7601_v5  ;;  %v2019_v52 = vadd.f32 %v7609_v19, %v7608_v48  ;;  %v7610_v14 = vld [vmem:[#allocation65_spill] sm:$0xff] }
 0x88b   : > { %3226 = vmatpush.msra.mxu2 %v7602_v8  ;;  %3246 = vmatpush.msra.mxu3 %v7603_v10  ;;  %v2060_v31 = vadd.f32 %v7611_v39, %v7610_v14 }
 0x88c   : > { %3187 = vmatpush.msra.mxu0 %v7604_v54  ;;  %3207 = vmatpush.msra.mxu1 %v7605_v2  ;;  %v7612_v54 = vld [vmem:[#allocation11_spill] sm:$0xff] }
 0x88d   : > { %3227 = vmatpush.msra.mxu2 %v7606_v6  ;;  %3247 = vmatpush.msra.mxu3 %v7607_v46  ;;  %v2142_v2 = vadd.f32 %v7613_v23, %v7612_v54 }
 0x8e9   : > { %v2883_v27 = vpop.f32.mrf.mxu0  ;;  %v2903_v5 = vpop.f32.mrf.mxu1 }
 0x8ea   : > { %v2946_v16 = vadd.f32 %v2883_v27, %v2019_v52  ;;  %v2947_v8 = vadd.f32 %v2903_v5, %v2060_v31  ;;  %v7614_v52 = vld [vmem:[#allocation16_spill] sm:$0xff] }
 0x8ec   : > { %v3649_v12 = vmul.f32 -1.442695, %v2946_v16  ;;  %v3650_v10 = vmul.f32 -1.442695, %v2947_v8  ;;  %v7615_v16 = vld [vmem:[#allocation57_spill] sm:$0xff] }
 0x8ed   : > { %v2101_v31 = vadd.f32 %v7615_v16, %v7614_v52 }
 0x8ee   : > { %3897 = vpow2.f32 %v3649_v12 }
 0x8ef   : > { %3899 = vpow2.f32 %v3650_v10 }
 0x8f0   : > { %v2943_v6 = vpop.f32.mrf.mxu3  ;;  %v2923_v39 = vpop.f32.mrf.mxu2 }
 0x8f1   : > { %v2949_v30 = vadd.f32 %v2943_v6, %v2142_v2  ;;  %v2948_v8 = vadd.f32 %v2923_v39, %v2101_v31 }
 0x8f3   : > { %v3651_v46 = vmul.f32 -1.442695, %v2949_v30 }
 0x8f4   : > { %v3898_v61 = vpop.eup %3897 }
 0x8f5   : > { %v3900_v33 = vpop.eup %3899  ;;  %v2953_v19 = vadd.f32 1.0, %v3898_v61  ;;  %3901 = vpow2.f32 %v3651_v46 }
 0x8f6   : > { %v2972_v48 = vadd.f32 1.0, %v3900_v33 }
 0x8f7   : > { %3903 = vrcp.f32 %v2953_v19  ;;  %v2965_v54 = vand.u32 2147483648, %v2953_v19  ;;  %v2963_v46 = vand.u32 2147483647, %v2953_v19  ;;  %vm2959_vm3 = vweird.f32 %v2953_v19 }
 0x8f8   : > { %3905 = vrcp.f32 %v2972_v48  ;;  %v2984_v61 = vand.u32 2147483648, %v2972_v48  ;;  %v2982_v32 = vand.u32 2147483647, %v2972_v48  ;;  %vm2978_vm4 = vweird.f32 %v2972_v48 }
 0x8f9   : > { %v2966_v39 = vor.u32 1.1754944e-38, %v2965_v54  ;;  %vm2964_vm7 = vcmp.eq.f32.partialorder %v2963_v46, 8.507059e+37 }
 0x8fa   : > { %vm2983_vm8 = vcmp.eq.f32.partialorder %v2982_v32, 8.507059e+37 }
 0x8fb   : > { %v3902_v27 = vpop.eup %3901 }
 0x8fc   : > { %v2992_v12 = vadd.f32 1.0, %v3902_v27 }
 0x8fd   : > { %v3904_v5 = vpop.eup %3903 }
 0x8fe   : > { %v3906_v23 = vpop.eup %3905  ;;  %v2955_v10 = vmul.f32 %v3904_v5, %v2953_v19  ;;  %3907 = vrcp.f32 %v2992_v12  ;;  %vm2960_vm1 = vweird.f32 %v3904_v5  ;;  %v3004_v54 = vand.u32 2147483648, %v2992_v12 }
 0x8ff   : > { %v2974_v2 = vmul.f32 %v3906_v23, %v2972_v48  ;;  %3909 = vtanh.f32 %v2948_v8  ;;  %vm2979_vm2 = vweird.f32 %v3906_v23  ;;  %vm2961_vm5 = vmor %vm2959_vm3, %vm2960_vm1  ;;  %vm2998_vm10 = vweird.f32 %v2992_v12 }
 0x900   : > { %v2956_v30 = vsub.f32 1.0, %v2955_v10  ;;  %vm2980_vm6 = vmor %vm2978_vm4, %vm2979_vm2  ;;  %v2985_v10 = vor.u32 1.1754944e-38, %v2984_v61 }
 0x901   : > { %v2975_v6 = vsub.f32 1.0, %v2974_v2 }
 0x902   : > { %v2957_v33 = vmul.f32 %v3904_v5, %v2956_v30 }
 0x903   : > { %v2976_v14 = vmul.f32 %v3906_v23, %v2975_v6 }
 0x904   : > { %v3908_v1 = vpop.eup %3907  ;;  %v2958_v16 = vadd.f32 %v3904_v5, %v2957_v33 }
 0x905   : > { %v2977_v27 = vadd.f32 %v3906_v23, %v2976_v14  ;;  %v2994_v31 = vmul.f32 %v3908_v1, %v2992_v12  ;;  %v3910_v8 = vpop.eup %3909  ;;  %vm2999_vm9 = vweird.f32 %v3908_v1 }
 0x906   : > { %v2962_v2 = vsel %vm2961_vm5, %v3904_v5, %v2958_v16  ;;  %v3002_v5 = vand.u32 2147483647, %v2992_v12  ;;  %vm3000_vm11 = vmor %vm2998_vm10, %vm2999_vm9 }
 0x907   : > { %v2967_v52 = vsel %vm2964_vm7, %v2966_v39, %v2962_v2  ;;  %v2981_v30 = vsel %vm2980_vm6, %v3906_v23, %v2977_v27  ;;  %v2995_v58 = vsub.f32 1.0, %v2994_v31  ;;  %v3005_v23 = vor.u32 1.1754944e-38, %v3004_v54  ;;  %v7648_v2 = vld [vmem:[#allocation16_spill] sm:$0xff] }
 0x908   : > { %v2986_v6 = vsel %vm2983_vm8, %v2985_v10, %v2981_v30  ;;  %v3009_v21 = vmul.f32 %v3910_v8, %v2967_v52  ;;  %vm3003_vm12 = vcmp.eq.f32.partialorder %v3002_v5, 8.507059e+37  ;;  %v7649_v8 = vld [vmem:[#allocation12_spill] sm:$0xff] }
 0x909   : > { %v3008_v28 = vmul.f32 %v2986_v6, %v6716_v13  ;;  %v2996_v19 = vmul.f32 %v3908_v1, %v2995_v58  ;;  %v7646_v13 = vld [vmem:[#allocation11_spill] sm:$0xff]  ;;  %v2104_v30 = vadd.f32 %v7649_v8, %v7648_v2 }
 0x90b   : > { %v6793_v48 = vadd.f32 %v3009_v21, %v3008_v28  ;;  %v2997_v14 = vadd.f32 %v3908_v1, %v2996_v19  ;;  %v7647_v28 = vld [vmem:[#allocation59_spill] sm:$0xff] }
 0x90c   : > { %v2145_v21 = vadd.f32 %v7647_v28, %v7646_v13 }
 0x90d   : > { %3911 = vtanh.f32 %v6793_v48  ;;  %v3001_v61 = vsel %vm3000_vm11, %v3908_v1, %v2997_v14 }
 0x90e   : > { %v3006_v33 = vsel %vm3003_vm12, %v3005_v23, %v3001_v61 }
 0x913   : > { %v3912_v32 = vpop.eup %3911 }
 0x914   : > { %v3012_v52 = vmul.f32 %v3912_v32, %v3006_v33 }
 0x916   : > { %3652 = vst [vmem:[%s4224_s20 + $0x20] sm:$0xff] %v3012_v52  ;;  %3035 = vmatmul.f32.vlgmr.msrb.gmra.mxu0 %v3012_v52  ;;  %3055 = vmatmul.f32.vlgmr.msrb.gmra.mxu1 %v3012_v52 }
 0x917   : > { %3075 = vmatmul.f32.vlgmr.msrb.gmra.mxu2 %v3012_v52  ;;  %3095 = vmatmul.f32.vlgmr.msrb.gmra.mxu3 %v3012_v52 }
 0x918   : > { %3325 = vmatpush.msrb.mxu0 %v6438_v50  ;;  %3345 = vmatpush.msrb.mxu1 %v6441_v56  ;;  %v7616_v50 = vld [vmem:[#allocation15_spill] sm:$0xff] }
 0x919   : > { %3365 = vmatpush.msrb.mxu2 %v6444_v22  ;;  %3385 = vmatpush.msrb.mxu3 %v6447_v60  ;;  %v7617_v56 = vld [vmem:[#allocation51_spill] sm:$0xff]  ;;  %v7618_v22 = vld [vmem:[#allocation45_spill] sm:$0xff]  ;;  %v7619_v60 = vld [vmem:[#allocation46_spill] sm:$0xff] }
 0x91a   : > { %3326 = vmatpush.msrb.mxu0 %v6450_v36  ;;  %3346 = vmatpush.msrb.mxu1 %v6453_v18  ;;  %v7620_v36 = vld [vmem:[#allocation48_spill] sm:$0xff] }
 0x91b   : > { %3366 = vmatpush.msrb.mxu2 %v6456_v51  ;;  %3386 = vmatpush.msrb.mxu3 %v6459_v59  ;;  %v7621_v18 = vld [vmem:[#allocation20_spill] sm:$0xff]  ;;  %v7622_v51 = vld [vmem:[#allocation47_spill] sm:$0xff]  ;;  %v7623_v59 = vld [vmem:[#allocation49_spill] sm:$0xff] }
 0x91c   : > { %3327 = vmatpush.msrb.mxu0 %v6462_v9  ;;  %3347 = vmatpush.msrb.mxu1 %v6465_v25  ;;  %v7624_v9 = vld [vmem:[#allocation50_spill] sm:$0xff] }
 0x91d   : > { %3367 = vmatpush.msrb.mxu2 %v6468_v44  ;;  %3387 = vmatpush.msrb.mxu3 %v6471_v29  ;;  %v7625_v25 = vld [vmem:[#allocation22_spill] sm:$0xff]  ;;  %v7627_v29 = vld [vmem:[#allocation17_spill] sm:$0xff] }
 0x91e   : > { %3328 = vmatpush.msrb.mxu0 %v6474_v3  ;;  %3348 = vmatpush.msrb.mxu1 %v6477_v57  ;;  %v7626_v44 = vld [vmem:[#allocation54_spill] sm:$0xff]  ;;  %v7628_v3 = vld [vmem:[#allocation19_spill] sm:$0xff]  ;;  %v7629_v57 = vld [vmem:[#allocation25_spill] sm:$0xff] }
 0x91f   : > { %3368 = vmatpush.msrb.mxu2 %v6480_v62  ;;  %3388 = vmatpush.msrb.mxu3 %v6483_v38  ;;  %v7630_v62 = vld [vmem:[#allocation21_spill] sm:$0xff]  ;;  %v7631_v38 = vld [vmem:[#allocation24_spill] sm:$0xff] }
 0x920   : > { %3329 = vmatpush.msrb.mxu0 %v6486_v15  ;;  %3349 = vmatpush.msrb.mxu1 %v6489_v35  ;;  %v7632_v15 = vld [vmem:[#allocation23_spill] sm:$0xff]  ;;  %v7633_v35 = vld [vmem:[#allocation29_spill] sm:$0xff] }
 0x921   : > { %3369 = vmatpush.msrb.mxu2 %v6492_v20  ;;  %3389 = vmatpush.msrb.mxu3 %v6495_v17  ;;  %v7634_v20 = vld [vmem:[#allocation26_spill] sm:$0xff]  ;;  %v7635_v17 = vld [vmem:[#allocation28_spill] sm:$0xff] }
 0x922   : > { %3330 = vmatpush.msrb.mxu0 %v6498_v4  ;;  %3350 = vmatpush.msrb.mxu1 %v6501_v11  ;;  %v7636_v4 = vld [vmem:[#allocation27_spill] sm:$0xff]  ;;  %v7637_v11 = vld [vmem:[#allocation33_spill] sm:$0xff] }
 0x923   : > { %3370 = vmatpush.msrb.mxu2 %v6504_v42  ;;  %3390 = vmatpush.msrb.mxu3 %v6507_v47  ;;  %v7638_v42 = vld [vmem:[#allocation32_spill] sm:$0xff]  ;;  %v7639_v47 = vld [vmem:[#allocation30_spill] sm:$0xff] }
 0x924   : > { %3331 = vmatpush.msrb.mxu0 %v6510_v53  ;;  %3351 = vmatpush.msrb.mxu1 %v6513_v24  ;;  %v7640_v53 = vld [vmem:[#allocation31_spill] sm:$0xff] }
 0x925   : > { %3371 = vmatpush.msrb.mxu2 %v6516_v0  ;;  %3391 = vmatpush.msrb.mxu3 %v6519_v45  ;;  %v7641_v24 = vld [vmem:[#allocation35_spill] sm:$0xff]  ;;  %v7642_v0 = vld [vmem:[#allocation61_spill] sm:$0xff]  ;;  %v7643_v45 = vld [vmem:[#allocation58_spill] sm:$0xff] }
 0x926   : > { %3332 = vmatpush.msrb.mxu0 %v6522_v7  ;;  %3352 = vmatpush.msrb.mxu1 %v6525_v63  ;;  %v2022_v7 = vadd.f32 %v7643_v45, %v7642_v0  ;;  %v7644_v63 = vld [vmem:[#allocation65_spill] sm:$0xff] }
 0x927   : > { %3372 = vmatpush.msrb.mxu2 %v6528_v26  ;;  %3392 = vmatpush.msrb.mxu3 %v6531_v49  ;;  %v7645_v26 = vld [vmem:[#allocation56_spill] sm:$0xff] }
 0x928   : > { %3333 = vmatpush.msrb.mxu0 %v6534_v41  ;;  %3353 = vmatpush.msrb.mxu1 %v6537_v40  ;;  %v2063_v49 = vadd.f32 %v7645_v26, %v7644_v63 }
 0x929   : > { %3373 = vmatpush.msrb.mxu2 %v6540_v34  ;;  %3393 = vmatpush.msrb.mxu3 %v6543_v43 }
 0x92a   : > { %3334 = vmatpush.msrb.mxu0 %v6546_v55  ;;  %3354 = vmatpush.msrb.mxu1 %v6549_v37 }
 0x92b   : > { %3374 = vmatpush.msrb.mxu2 %v7616_v50  ;;  %3394 = vmatpush.msrb.mxu3 %v7617_v56 }
 0x92c   : > { %3335 = vmatpush.msrb.mxu0 %v7618_v22  ;;  %3355 = vmatpush.msrb.mxu1 %v7619_v60 }
 0x92d   : > { %3375 = vmatpush.msrb.mxu2 %v7620_v36  ;;  %3395 = vmatpush.msrb.mxu3 %v7621_v18 }
 0x92e   : > { %3336 = vmatpush.msrb.mxu0 %v7622_v51  ;;  %3356 = vmatpush.msrb.mxu1 %v7623_v59 }
 0x92f   : > { %3376 = vmatpush.msrb.mxu2 %v7624_v9  ;;  %3396 = vmatpush.msrb.mxu3 %v7625_v25 }
 0x930   : > { %3337 = vmatpush.msrb.mxu0 %v7626_v44  ;;  %3357 = vmatpush.msrb.mxu1 %v7627_v29 }
 0x931   : > { %3377 = vmatpush.msrb.mxu2 %v7628_v3  ;;  %3397 = vmatpush.msrb.mxu3 %v7629_v57 }
 0x932   : > { %3338 = vmatpush.msrb.mxu0 %v7630_v62  ;;  %3358 = vmatpush.msrb.mxu1 %v7631_v38 }
 0x933   : > { %3378 = vmatpush.msrb.mxu2 %v7632_v15  ;;  %3398 = vmatpush.msrb.mxu3 %v7633_v35 }
 0x934   : > { %3339 = vmatpush.msrb.mxu0 %v7634_v20  ;;  %3359 = vmatpush.msrb.mxu1 %v7635_v17 }
 0x935   : > { %3379 = vmatpush.msrb.mxu2 %v7636_v4  ;;  %3399 = vmatpush.msrb.mxu3 %v7637_v11 }
 0x936   : > { %3340 = vmatpush.msrb.mxu0 %v7638_v42  ;;  %3360 = vmatpush.msrb.mxu1 %v7639_v47 }
 0x937   : > { %3380 = vmatpush.msrb.mxu2 %v7640_v53  ;;  %3400 = vmatpush.msrb.mxu3 %v7641_v24 }
 0x993   : > { %v3036_v41 = vpop.f32.mrf.mxu0  ;;  %v3056_v40 = vpop.f32.mrf.mxu1 }
 0x994   : > { %v3099_v34 = vadd.f32 %v3036_v41, %v2022_v7  ;;  %v3100_v43 = vadd.f32 %v3056_v40, %v2063_v49  ;;  %v7651_v49 = vld [vmem:[#allocation69_spill] sm:$0xff] }
 0x995   : > { %v2066_v41 = vadd.f32 %v7651_v49, %v7644_v63 }
 0x996   : > { %v3653_v55 = vmul.f32 -1.442695, %v3099_v34  ;;  %v3654_v37 = vmul.f32 -1.442695, %v3100_v43 }
 0x998   : > { %3913 = vpow2.f32 %v3653_v55 }
 0x999   : > { %3915 = vpow2.f32 %v3654_v37 }
 0x99a   : > { %v3096_v58 = vpop.f32.mrf.mxu3  ;;  %v3076_v31 = vpop.f32.mrf.mxu2 }
 0x99b   : > { %v3102_v1 = vadd.f32 %v3096_v58, %v2145_v21  ;;  %v3101_v14 = vadd.f32 %v3076_v31, %v2104_v30  ;;  %v7652_v21 = vld [vmem:[#allocation18_spill] sm:$0xff]  ;;  %v7653_v30 = vld [vmem:[#allocation67_spill] sm:$0xff] }
 0x99c   : > { %v2148_v58 = vadd.f32 %v7652_v21, %v7646_v13 }
 0x99d   : > { %v3655_v12 = vmul.f32 -1.442695, %v3102_v1 }
 0x99e   : > { %v3914_v46 = vpop.eup %3913 }
 0x99f   : > { %v3916_v16 = vpop.eup %3915  ;;  %v3106_v39 = vadd.f32 1.0, %v3914_v46  ;;  %3917 = vpow2.f32 %v3655_v12 }
 0x9a0   : > { %v3125_v27 = vadd.f32 1.0, %v3916_v16 }
 0x9a1   : > { %3919 = vrcp.f32 %v3106_v39  ;;  %v3118_v33 = vand.u32 2147483648, %v3106_v39  ;;  %v3116_v56 = vand.u32 2147483647, %v3106_v39  ;;  %vm3112_vm15 = vweird.f32 %v3106_v39 }
 0x9a2   : > { %3921 = vrcp.f32 %v3125_v27  ;;  %v3137_v52 = vand.u32 2147483648, %v3125_v27  ;;  %v3135_v60 = vand.u32 2147483647, %v3125_v27  ;;  %vm3131_vm0 = vweird.f32 %v3125_v27 }
 0x9a3   : > { %v3119_v51 = vor.u32 1.1754944e-38, %v3118_v33  ;;  %vm3117_vm3 = vcmp.eq.f32.partialorder %v3116_v56, 8.507059e+37 }
 0x9a4   : > { %v3138_v25 = vor.u32 1.1754944e-38, %v3137_v52  ;;  %vm3136_vm4 = vcmp.eq.f32.partialorder %v3135_v60, 8.507059e+37 }
 0x9a5   : > { %v3918_v10 = vpop.eup %3917 }
 0x9a6   : > { %v3145_v6 = vadd.f32 1.0, %v3918_v10 }
 0x9a7   : > { %v3920_v19 = vpop.eup %3919 }
 0x9a8   : > { %v3922_v54 = vpop.eup %3921  ;;  %v3108_v5 = vmul.f32 %v3920_v19, %v3106_v39  ;;  %3923 = vrcp.f32 %v3145_v6  ;;  %vm3113_vm13 = vweird.f32 %v3920_v19  ;;  %v3157_v11 = vand.u32 2147483648, %v3145_v6 }
 0x9a9   : > { %v3127_v61 = vmul.f32 %v3922_v54, %v3125_v27  ;;  %3925 = vtanh.f32 %v3101_v14  ;;  %vm3132_vm14 = vweird.f32 %v3922_v54  ;;  %vm3114_vm1 = vmor %vm3112_vm15, %vm3113_vm13  ;;  %vm3151_vm6 = vweird.f32 %v3145_v6 }
 0x9aa   : > { %v3109_v23 = vsub.f32 1.0, %v3108_v5  ;;  %vm3133_vm2 = vmor %vm3131_vm0, %vm3132_vm14  ;;  %v3155_v42 = vand.u32 2147483647, %v3145_v6  ;;  %v3158_v53 = vor.u32 1.1754944e-38, %v3157_v11 }
 0x9ab   : > { %v3128_v32 = vsub.f32 1.0, %v3127_v61 }
 0x9ac   : > { %v3110_v50 = vmul.f32 %v3920_v19, %v3109_v23  ;;  %vm3156_vm8 = vcmp.eq.f32.partialorder %v3155_v42, 8.507059e+37 }
 0x9ad   : > { %v3129_v22 = vmul.f32 %v3922_v54, %v3128_v32 }
 0x9ae   : > { %v3924_v36 = vpop.eup %3923  ;;  %v3111_v18 = vadd.f32 %v3920_v19, %v3110_v50 }
 0x9af   : > { %v3130_v59 = vadd.f32 %v3922_v54, %v3129_v22  ;;  %v3147_v9 = vmul.f32 %v3924_v36, %v3145_v6  ;;  %v3926_v29 = vpop.eup %3925  ;;  %vm3152_vm5 = vweird.f32 %v3924_v36  ;;  %v2107_v6 = vadd.f32 %v7653_v30, %v7648_v2 }
 0x9b0   : > { %v3115_v44 = vsel %vm3114_vm1, %v3920_v19, %v3111_v18  ;;  %vm3153_vm7 = vmor %vm3151_vm6, %vm3152_vm5 }
 0x9b1   : > { %v3120_v3 = vsel %vm3117_vm3, %v3119_v51, %v3115_v44  ;;  %v3134_v57 = vsel %vm3133_vm2, %v3922_v54, %v3130_v59  ;;  %v3148_v62 = vsub.f32 1.0, %v3147_v9 }
 0x9b2   : > { %v3139_v38 = vsel %vm3136_vm4, %v3138_v25, %v3134_v57  ;;  %v3162_v15 = vmul.f32 %v3926_v29, %v3120_v3 }
 0x9b3   : > { %v3161_v35 = vmul.f32 %v3139_v38, %v6793_v48  ;;  %v3149_v20 = vmul.f32 %v3924_v36, %v3148_v62  ;;  %v7650_v48 = vld [vmem:[#allocation64_spill] sm:$0xff] }
 0x9b4   : > { %v2025_v26 = vadd.f32 %v7650_v48, %v7642_v0 }
 0x9b5   : > { %v6870_v17 = vadd.f32 %v3162_v15, %v3161_v35  ;;  %v3150_v4 = vadd.f32 %v3924_v36, %v3149_v20 }
 0x9b7   : > { %3927 = vtanh.f32 %v6870_v17  ;;  %v3154_v47 = vsel %vm3153_vm7, %v3924_v36, %v3150_v4 }
 0x9b8   : > { %v3159_v45 = vsel %vm3156_vm8, %v3158_v53, %v3154_v47 }
 0x9bd   : > { %v3928_v24 = vpop.eup %3927 }
 0x9be   : > { %v3165_v7 = vmul.f32 %v3928_v24, %v3159_v45 }
 0x9c0   : > { %3656 = vst [vmem:[%s4224_s20 + $0x28] sm:$0xff] %v3165_v7  ;;  %3188 = vmatmul.f32.vlgmr.msra.gmra.mxu0 %v3165_v7  ;;  %3208 = vmatmul.f32.vlgmr.msra.gmra.mxu1 %v3165_v7 }
 0x9c1   : > { %3228 = vmatmul.f32.vlgmr.msra.gmra.mxu2 %v3165_v7  ;;  %3248 = vmatmul.f32.vlgmr.msra.gmra.mxu3 %v3165_v7 }
 0xa3d   : > { %v3189_v40 = vpop.f32.mrf.mxu0  ;;  %v3209_v34 = vpop.f32.mrf.mxu1 }
 0xa3e   : > { %v3252_v43 = vadd.f32 %v3189_v40, %v2025_v26  ;;  %v3253_v55 = vadd.f32 %v3209_v34, %v2066_v41  ;;  %v7655_v41 = vld [vmem:[#allocation60_spill] sm:$0xff] }
 0xa3f   : > { %v2069_v40 = vadd.f32 %v7655_v41, %v7644_v63 }
 0xa40   : > { %v3657_v37 = vmul.f32 -1.442695, %v3252_v43  ;;  %v3658_v28 = vmul.f32 -1.442695, %v3253_v55 }
 0xa42   : > { %3929 = vpow2.f32 %v3657_v37 }
 0xa43   : > { %3931 = vpow2.f32 %v3658_v28 }
 0xa44   : > { %v3249_v1 = vpop.f32.mrf.mxu3  ;;  %v3229_v10 = vpop.f32.mrf.mxu2 }
 0xa45   : > { %v3255_v12 = vadd.f32 %v3249_v1, %v2148_v58  ;;  %v3254_v54 = vadd.f32 %v3229_v10, %v2107_v6  ;;  %v7656_v58 = vld [vmem:[#allocation13_spill] sm:$0xff] }
 0xa46   : > { %v2151_v1 = vadd.f32 %v7656_v58, %v7646_v13 }
 0xa47   : > { %v3659_v46 = vmul.f32 -1.442695, %v3255_v12 }
 0xa48   : > { %v3930_v16 = vpop.eup %3929 }
 0xa49   : > { %v3932_v39 = vpop.eup %3931  ;;  %v3259_v27 = vadd.f32 1.0, %v3930_v16  ;;  %3933 = vpow2.f32 %v3659_v46 }
 0xa4a   : > { %v3278_v31 = vadd.f32 1.0, %v3932_v39 }
 0xa4b   : > { %3935 = vrcp.f32 %v3259_v27  ;;  %v3271_v52 = vand.u32 2147483648, %v3259_v27  ;;  %v3269_v22 = vand.u32 2147483647, %v3259_v27  ;;  %vm3265_vm11 = vweird.f32 %v3259_v27 }
 0xa4c   : > { %3937 = vrcp.f32 %v3278_v31  ;;  %v3290_v50 = vand.u32 2147483648, %v3278_v31  ;;  %v3288_v36 = vand.u32 2147483647, %v3278_v31  ;;  %vm3284_vm12 = vweird.f32 %v3278_v31 }
 0xa4d   : > { %v3272_v59 = vor.u32 1.1754944e-38, %v3271_v52  ;;  %vm3270_vm15 = vcmp.eq.f32.partialorder %v3269_v22, 8.507059e+37 }
 0xa4e   : > { %v3291_v44 = vor.u32 1.1754944e-38, %v3290_v50  ;;  %vm3289_vm0 = vcmp.eq.f32.partialorder %v3288_v36, 8.507059e+37 }
 0xa4f   : > { %v3934_v8 = vpop.eup %3933 }
 0xa50   : > { %v3298_v19 = vadd.f32 1.0, %v3934_v8  ;;  %v7657_v8 = vld [vmem:[#allocation14_spill] sm:$0xff] }
 0xa51   : > { %v3936_v14 = vpop.eup %3935  ;;  %v2110_v30 = vadd.f32 %v7657_v8, %v7648_v2 }
 0xa52   : > { %v3938_v5 = vpop.eup %3937  ;;  %v3261_v61 = vmul.f32 %v3936_v14, %v3259_v27  ;;  %3939 = vrcp.f32 %v3298_v19  ;;  %vm3266_vm9 = vweird.f32 %v3936_v14  ;;  %v3310_v47 = vand.u32 2147483648, %v3298_v19 }
 0xa53   : > { %v3280_v23 = vmul.f32 %v3938_v5, %v3278_v31  ;;  %3941 = vtanh.f32 %v3254_v54  ;;  %vm3285_vm10 = vweird.f32 %v3938_v5  ;;  %vm3267_vm13 = vmor %vm3265_vm11, %vm3266_vm9  ;;  %vm3304_vm2 = vweird.f32 %v3298_v19 }
 0xa54   : > { %v3262_v32 = vsub.f32 1.0, %v3261_v61  ;;  %vm3286_vm14 = vmor %vm3284_vm12, %vm3285_vm10  ;;  %v3308_v53 = vand.u32 2147483647, %v3298_v19  ;;  %v3311_v45 = vor.u32 1.1754944e-38, %v3310_v47 }
 0xa55   : > { %v3281_v33 = vsub.f32 1.0, %v3280_v23 }
 0xa56   : > { %v3263_v56 = vmul.f32 %v3936_v14, %v3262_v32  ;;  %vm3309_vm4 = vcmp.eq.f32.partialorder %v3308_v53, 8.507059e+37 }
 0xa57   : > { %v3282_v60 = vmul.f32 %v3938_v5, %v3281_v33 }
 0xa58   : > { %v3940_v18 = vpop.eup %3939  ;;  %v3264_v51 = vadd.f32 %v3936_v14, %v3263_v56 }
 0xa59   : > { %v3283_v9 = vadd.f32 %v3938_v5, %v3282_v60  ;;  %v3300_v25 = vmul.f32 %v3940_v18, %v3298_v19  ;;  %v3942_v3 = vpop.eup %3941  ;;  %vm3305_vm1 = vweird.f32 %v3940_v18 }
 0xa5a   : > { %v3268_v29 = vsel %vm3267_vm13, %v3936_v14, %v3264_v51  ;;  %vm3306_vm3 = vmor %vm3304_vm2, %vm3305_vm1 }
 0xa5b   : > { %v3273_v57 = vsel %vm3270_vm15, %v3272_v59, %v3268_v29  ;;  %v3287_v62 = vsel %vm3286_vm14, %v3938_v5, %v3283_v9  ;;  %v3301_v38 = vsub.f32 1.0, %v3300_v25 }
 0xa5c   : > { %v3292_v15 = vsel %vm3289_vm0, %v3291_v44, %v3287_v62  ;;  %v3315_v35 = vmul.f32 %v3942_v3, %v3273_v57 }
 0xa5d   : > { %v3314_v20 = vmul.f32 %v3292_v15, %v6870_v17  ;;  %v3302_v4 = vmul.f32 %v3940_v18, %v3301_v38  ;;  %v7654_v17 = vld [vmem:[#allocation43_spill] sm:$0xff] }
 0xa5e   : > { %v2028_v49 = vadd.f32 %v7654_v17, %v7642_v0 }
 0xa5f   : > { %v6883_v11 = vadd.f32 %v3315_v35, %v3314_v20  ;;  %v3303_v42 = vadd.f32 %v3940_v18, %v3302_v4 }
 0xa61   : > { %3943 = vtanh.f32 %v6883_v11  ;;  %v3307_v24 = vsel %vm3306_vm3, %v3940_v18, %v3303_v42 }
 0xa62   : > { %v3312_v48 = vsel %vm3309_vm4, %v3311_v45, %v3307_v24 }
 0xa67   : > { %v3944_v7 = vpop.eup %3943 }
 0xa68   : > { %v3318_v26 = vmul.f32 %v3944_v7, %v3312_v48 }
 0xa6a   : > { %3660 = vst [vmem:[%s4224_s20 + $0x30] sm:$0xff] %v3318_v26  ;;  %3341 = vmatmul.f32.vlgmr.msrb.gmra.mxu0 %v3318_v26  ;;  %3361 = vmatmul.f32.vlgmr.msrb.gmra.mxu1 %v3318_v26 }
 0xa6b   : > { %3381 = vmatmul.f32.vlgmr.msrb.gmra.mxu2 %v3318_v26  ;;  %3401 = vmatmul.f32.vlgmr.msrb.gmra.mxu3 %v3318_v26 }
 0xae7   : > { %v3342_v34 = vpop.f32.mrf.mxu0  ;;  %v3362_v43 = vpop.f32.mrf.mxu1 }
 0xae8   : > { %v3405_v55 = vadd.f32 %v3342_v34, %v2028_v49  ;;  %v3406_v37 = vadd.f32 %v3362_v43, %v2069_v40 }
 0xaea   : > { %v3661_v28 = vmul.f32 -1.442695, %v3405_v55  ;;  %v3662_v21 = vmul.f32 -1.442695, %v3406_v37 }
 0xaec   : > { %3945 = vpow2.f32 %v3661_v28 }
 0xaed   : > { %3947 = vpow2.f32 %v3662_v21 }
 0xaee   : > { %v3402_v12 = vpop.f32.mrf.mxu3  ;;  %v3382_v63 = vpop.f32.mrf.mxu2 }
 0xaef   : > { %v3408_v46 = vadd.f32 %v3402_v12, %v2151_v1  ;;  %v3407_v14 = vadd.f32 %v3382_v63, %v2110_v30 }
 0xaf1   : > { %v3663_v16 = vmul.f32 -1.442695, %v3408_v46 }
 0xaf2   : > { %v3946_v39 = vpop.eup %3945 }
 0xaf3   : > { %v3948_v27 = vpop.eup %3947  ;;  %v3412_v0 = vadd.f32 1.0, %v3946_v39  ;;  %3949 = vpow2.f32 %v3663_v16 }
 0xaf4   : > { %v3431_v31 = vadd.f32 1.0, %v3948_v27 }
 0xaf5   : > { %3951 = vrcp.f32 %v3412_v0  ;;  %v3424_v32 = vand.u32 2147483648, %v3412_v0  ;;  %v3422_v50 = vand.u32 2147483647, %v3412_v0  ;;  %vm3418_vm7 = vweird.f32 %v3412_v0 }
 0xaf6   : > { %3953 = vrcp.f32 %v3431_v31  ;;  %v3443_v33 = vand.u32 2147483648, %v3431_v31  ;;  %v3441_v22 = vand.u32 2147483647, %v3431_v31  ;;  %vm3437_vm8 = vweird.f32 %v3431_v31 }
 0xaf7   : > { %v3425_v36 = vor.u32 1.1754944e-38, %v3424_v32  ;;  %vm3423_vm11 = vcmp.eq.f32.partialorder %v3422_v50, 8.507059e+37 }
 0xaf8   : > { %v3444_v59 = vor.u32 1.1754944e-38, %v3443_v33  ;;  %vm3442_vm12 = vcmp.eq.f32.partialorder %v3441_v22, 8.507059e+37 }
 0xaf9   : > { %v3950_v10 = vpop.eup %3949 }
 0xafa   : > { %v3451_v6 = vadd.f32 1.0, %v3950_v10 }
 0xafb   : > { %v3952_v19 = vpop.eup %3951 }
 0xafc   : > { %v3954_v13 = vpop.eup %3953  ;;  %v3414_v54 = vmul.f32 %v3952_v19, %v3412_v0  ;;  %3955 = vrcp.f32 %v3451_v6  ;;  %vm3419_vm5 = vweird.f32 %v3952_v19  ;;  %v3463_v4 = vand.u32 2147483648, %v3451_v6 }
 0xafd   : > { %v3433_v5 = vmul.f32 %v3954_v13, %v3431_v31  ;;  %3957 = vtanh.f32 %v3407_v14  ;;  %vm3438_vm6 = vweird.f32 %v3954_v13  ;;  %vm3420_vm9 = vmor %vm3418_vm7, %vm3419_vm5  ;;  %vm3457_vm14 = vweird.f32 %v3451_v6 }
 0xafe   : > { %v3415_v61 = vsub.f32 1.0, %v3414_v54  ;;  %vm3439_vm10 = vmor %vm3437_vm8, %vm3438_vm6  ;;  %v3461_v42 = vand.u32 2147483647, %v3451_v6  ;;  %v3464_v53 = vor.u32 1.1754944e-38, %v3463_v4 }
 0xaff   : > { %v3434_v23 = vsub.f32 1.0, %v3433_v5 }
 0xb00   : > { %v3416_v52 = vmul.f32 %v3952_v19, %v3415_v61  ;;  %vm3462_vm0 = vcmp.eq.f32.partialorder %v3461_v42, 8.507059e+37 }
 0xb01   : > { %v3435_v56 = vmul.f32 %v3954_v13, %v3434_v23 }
 0xb02   : > { %v3956_v60 = vpop.eup %3955  ;;  %v3417_v2 = vadd.f32 %v3952_v19, %v3416_v52 }
 0xb03   : > { %v3436_v18 = vadd.f32 %v3954_v13, %v3435_v56  ;;  %v3453_v51 = vmul.f32 %v3956_v60, %v3451_v6  ;;  %v3958_v25 = vpop.eup %3957  ;;  %vm3458_vm13 = vweird.f32 %v3956_v60 }
 0xb04   : > { %v3421_v9 = vsel %vm3420_vm9, %v3952_v19, %v3417_v2  ;;  %vm3459_vm15 = vmor %vm3457_vm14, %vm3458_vm13 }
 0xb05   : > { %v3426_v44 = vsel %vm3423_vm11, %v3425_v36, %v3421_v9  ;;  %v3440_v29 = vsel %vm3439_vm10, %v3954_v13, %v3436_v18  ;;  %v3454_v3 = vsub.f32 1.0, %v3453_v51 }
 0xb06   : > { %v3445_v57 = vsel %vm3442_vm12, %v3444_v59, %v3440_v29  ;;  %v3468_v62 = vmul.f32 %v3958_v25, %v3426_v44 }
 0xb07   : > { %v3467_v38 = vmul.f32 %v3445_v57, %v6883_v11  ;;  %v3455_v15 = vmul.f32 %v3956_v60, %v3454_v3 }
 0xb09   : > { %v3469_v35 = vadd.f32 %v3468_v62, %v3467_v38  ;;  %v3456_v20 = vadd.f32 %v3956_v60, %v3455_v15 }
 0xb0b   : > { %3959 = vtanh.f32 %v3469_v35  ;;  %3475 = vst [vmem:[#allocation7] sm:$0xff] %v3469_v35  ;;  %v3460_v47 = vsel %vm3459_vm15, %v3956_v60, %v3456_v20 }
 0xb0c   : > { %v3465_v45 = vsel %vm3462_vm0, %v3464_v53, %v3460_v47 }
 0xb11   : > { %v3960_v24 = vpop.eup %3959 }
 0xb12   : > { %v3471_v7 = vmul.f32 %v3960_v24, %v3465_v45 }
 0xb14   : > { %3664 = vst [vmem:[%s4224_s20 + $0x38] sm:$0xff] %v3471_v7 }
 0xb15   : > { %3474 = vst [vmem:[#allocation6] sm:$0xff] %v3471_v7 }
 0xb16 PF: > { %s18_s26 = sadd.s32 1, %s4145_s26   ;;  %s7658_s24 = smov %s4141_s25 }
 0xb17   : > { %p15_p9 = scmp.ge.s32.totalorder %s18_s26, 4   ;;  %s7659_s25 = smov %s7661_s28 }
 0xb19   :  { %17 = sbr.rel (!%p15_p9) target bundleno = 2 (0x2), region = 108 }
 0xb1e   :  { %3504 = vsyncpa [#allocation9], 1 }
 0xb1f   :  { %3506 = vsyncpa [#allocation9 + $0x1], 1 }

</bundles_post_ra>
